<compile_context>
chip_gen: v5e
topology: v5e:2x2
jax: 0.10.0
libtpu: 0.0.40
codegen_flags: <defaults>
</compile_context>

<pallas_src>
import jax
import jax.numpy as jnp
from jax.experimental import pallas as pl
from jax.experimental.pallas import tpu as pltpu


def ffnn_kernel(x_ref, w1_ref, b1_ref, w2_ref, b2_ref, o_ref, acc_ref):
    """One (batch-tile, hidden-tile) grid step of  y = relu(x@W1 + b1)@W2 + b2."""
    j = pl.program_id(1)

    @pl.when(j == 0)
    def _init():
        acc_ref[...] = jnp.zeros_like(acc_ref)

    # fc1 partial over this hidden-slice: MXU matmul, f32 accumulation, then
    # bias + ReLU on the f32 accumulator (VPU).
    h = jnp.dot(x_ref[...], w1_ref[...], preferred_element_type=jnp.float32)
    h = jnp.maximum(h + b1_ref[...], 0.0)          # b1 block is (1, th) f32

    # fc2 partial: cast activations back to the MXU compute dtype (bf16 in the
    # fast path) and accumulate into the resident f32 scratch.
    acc_ref[...] += jnp.dot(h.astype(w2_ref.dtype), w2_ref[...],
                            preferred_element_type=jnp.float32)

    @pl.when(j == pl.num_programs(1) - 1)
    def _finalize():
        o_ref[...] = (acc_ref[...] + b2_ref[...]).astype(o_ref.dtype)


def _vmem_cap_bytes():
    try:
        return int(0.85 * pltpu.get_tpu_info().vmem_capacity_bytes)
    except Exception:
        # Conservative fallback: v7x per-TensorCore VMEM (64 MiB).
        return int(0.85 * (64 << 20))


def _pick_hidden_tile(input_dim, hidden_dim, output_dim, wbytes, budget):
    """Full hidden dim if both weights fit the budget, else a 128-multiple
    divisor of hidden_dim whose double-buffered tiles fit."""
    full = (input_dim + output_dim) * hidden_dim * wbytes
    if full <= budget:
        return hidden_dim
    th = (hidden_dim // 128) * 128
    while th >= 128:
        if hidden_dim % th == 0 and 2 * (input_dim + output_dim) * th * wbytes <= budget:
            return th
        th -= 128
    return hidden_dim  # no clean divisor found; let the compiler try


def ffnn_forward(x, w1, b1, w2, b2, *, block_b=512, compute_dtype=jnp.bfloat16):
    """Fused forward of the PyTorch FFNN module.

    x: [B, input_dim]; w1: [input_dim, hidden]; w2: [hidden, output_dim]
    (weights pre-transposed vs. PyTorch); biases may be 1-D or (1, N).
    """
    B, input_dim = x.shape
    hidden_dim = w1.shape[1]
    output_dim = w2.shape[1]
    out_dtype = x.dtype

    # Accept PyTorch-style 1-D biases; keep them f32 so bias + ReLU run on the
    # f32 accumulator regardless of the matmul compute dtype.
    b1 = jnp.asarray(b1, jnp.float32).reshape(1, hidden_dim)
    b2 = jnp.asarray(b2, jnp.float32).reshape(1, output_dim)

    # Feed the MXU its native dtype (bf16 by default).
    x_c = x.astype(compute_dtype)
    w1_c = w1.astype(compute_dtype)
    w2_c = w2.astype(compute_dtype)

    cap = _vmem_cap_bytes()
    wbytes = jnp.dtype(compute_dtype).itemsize
    act_bytes = jnp.dtype(compute_dtype).itemsize
    out_bytes = jnp.dtype(out_dtype).itemsize

    # Hidden-axis tiling (engaged only when the weights don't fit in VMEM).
    th = _pick_hidden_tile(input_dim, hidden_dim, output_dim, wbytes,
                           budget=int(0.4 * cap))
    num_h = pl.cdiv(hidden_dim, th)
    weights_resident = num_h == 1

    # Batch tile: big (amortizes per-step overhead) but keep >=8 batch tiles
    # when B allows so DMAs stay pipelined and v7x's two TensorCores each get
    # several steps along the "parallel" axis.
    tb = B if B <= block_b else block_b
    if tb != B:
        tb = max((tb // 8) * 8, 8)
    while tb >= 256 and pl.cdiv(B, tb) < 8:
        tb //= 2

    weight_buf = (1 if weights_resident else 2) * (input_dim + output_dim) * th * wbytes

    def _tile_need(rows):
        return (2 * rows * input_dim * act_bytes        # double-buffered x tiles
                + 2 * rows * output_dim * out_bytes     # double-buffered out tiles
                + rows * output_dim * 4                 # f32 accumulator scratch
                + rows * th * 4)                        # f32 fc1 intermediate

    while tb > 8 and weight_buf + _tile_need(tb) > cap and tb != B:
        tb = max(((tb // 2) // 8) * 8, 8)
    num_b = pl.cdiv(B, tb)

    vmem_limit = int(min(cap, max(2 * (weight_buf + _tile_need(tb)), 32 << 20)))

    flops = 2 * B * (input_dim * hidden_dim + hidden_dim * output_dim)
    bytes_accessed = int(x_c.size * act_bytes + w1_c.size * wbytes
                         + w2_c.size * wbytes + b1.size * 4 + b2.size * 4
                         + B * output_dim * out_bytes)
    cost = pl.CostEstimate(flops=flops, transcendentals=0,
                           bytes_accessed=bytes_accessed)

    def _build(single_buffer_weights):
        def wspec(shape, index_map):
            # Constant-block weights: single-buffer to halve their VMEM
            # footprint (matters most under v7x's 64 MiB VMEM).
            if single_buffer_weights:
                return pl.BlockSpec(shape, index_map,
                                    pipeline_mode=pl.Buffered(1))
            return pl.BlockSpec(shape, index_map)

        return pl.pallas_call(
            ffnn_kernel,
            out_shape=jax.ShapeDtypeStruct((B, output_dim), out_dtype),
            grid=(num_b, num_h),
            in_specs=[
                # Activation tiles stream through VMEM, pipelined by BlockSpec.
                pl.BlockSpec((tb, input_dim), lambda i, j: (i, 0)),
                # Weights/biases: constant along the batch axis (resident when
                # num_h == 1, streamed along the hidden axis otherwise).
                wspec((input_dim, th), lambda i, j: (0, j)),
                wspec((1, th), lambda i, j: (0, j)),
                wspec((th, output_dim), lambda i, j: (j, 0)),
                wspec((1, output_dim), lambda i, j: (0, 0)),
            ],
            out_specs=pl.BlockSpec((tb, output_dim), lambda i, j: (i, 0)),
            scratch_shapes=[pltpu.VMEM((tb, output_dim), jnp.float32)],
            compiler_params=pltpu.CompilerParams(
                dimension_semantics=("parallel", "arbitrary"),
                vmem_limit_bytes=vmem_limit,
            ),
            cost_estimate=cost,
        )

    args = (x_c, w1_c, b1, w2_c, b2)
    if weights_resident:
        try:
            return _build(True)(*args)
        except Exception:
            # pipeline_mode=pl.Buffered(1) not supported on this jax build ->
            # fall back to default double-buffered weight specs.
            pass
    return _build(False)(*args)


if __name__ == "__main__":
    # 256-multiple feature dims keep the v6e/v7x 256x256 MXU fully fed and
    # output stores lane-dense; B=1024 with tb=128 gives 8 pipelined batch
    # tiles (>=4 per TensorCore when sharded across v7x's 2 cores).
    B, input_dim, hidden_dim, output_dim = 1024, 256, 512, 256

    key = jax.random.PRNGKey(0)
    kx, k1, kb1, k2, kb2 = jax.random.split(key, 5)

    # Deterministic synthetic parameters (PyTorch-style uniform fan-in init).
    bound1 = 1.0 / (input_dim ** 0.5)
    bound2 = 1.0 / (hidden_dim ** 0.5)
    x = jax.random.normal(kx, (B, input_dim), dtype=jnp.float32)
    w1 = jax.random.uniform(k1, (input_dim, hidden_dim), jnp.float32, -bound1, bound1)
    b1 = jax.random.uniform(kb1, (hidden_dim,), jnp.float32, -bound1, bound1)
    w2 = jax.random.uniform(k2, (hidden_dim, output_dim), jnp.float32, -bound2, bound2)
    b2 = jax.random.uniform(kb2, (output_dim,), jnp.float32, -bound2, bound2)

    # Pure-JAX f32 reference of the PyTorch forward.
    ref_f32 = jnp.maximum(x @ w1 + b1[None, :], 0.0) @ w2 + b2[None, :]

    # Exact-precision path (f32 MXU operands) -> tight tolerance vs. f32 ref.
    out_f32 = jax.block_until_ready(
        ffnn_forward(x, w1, b1, w2, b2, compute_dtype=jnp.float32))
    assert out_f32.shape == (B, output_dim)
    assert jnp.allclose(out_f32, ref_f32, atol=1e-4, rtol=1e-4)

    # Fast path (bf16 MXU operands, f32 accumulation) -> compare against a
    # reference that applies the same bf16 casts, plus a loose sanity check
    # against the true f32 forward.
    out_bf16 = jax.block_until_ready(ffnn_forward(x, w1, b1, w2, b2))
    h_ref = jnp.maximum(
        jnp.dot(x.astype(jnp.bfloat16), w1.astype(jnp.bfloat16),
                preferred_element_type=jnp.float32) + b1[None, :], 0.0)
    ref_bf16 = jnp.dot(h_ref.astype(jnp.bfloat16), w2.astype(jnp.bfloat16),
                       preferred_element_type=jnp.float32) + b2[None, :]
    assert out_bf16.shape == (B, output_dim)
    assert jnp.allclose(out_bf16, ref_bf16, atol=2e-2, rtol=2e-2)
    assert jnp.allclose(out_bf16, ref_f32, atol=1e-1, rtol=1e-1)

    print("KERNEL_OK")
</pallas_src>

<mosaic_0001>
module attributes {stable_mosaic.version = 11 : i64} {
  func.func @ffnn_kernel(%arg0: i32, %arg1: i32, %arg2: memref<128x256xf32, #tpu.memory_space<vmem>>, %arg3: memref<256x512xf32, #tpu.memory_space<vmem>>, %arg4: memref<1x512xf32, #tpu.memory_space<vmem>>, %arg5: memref<512x256xf32, #tpu.memory_space<vmem>>, %arg6: memref<1x256xf32, #tpu.memory_space<vmem>>, %arg7: memref<128x256xf32, #tpu.memory_space<vmem>>, %arg8: memref<128x256xf32, #tpu.memory_space<vmem>>) attributes {dimension_semantics = [#tpu.dimension_semantics<parallel>, #tpu.dimension_semantics<arbitrary>], iteration_bounds = array<i64: 8, 1>, scalar_prefetch = 0 : i64, scratch_operands = 1 : i64, tpu.core_type = #tpu.core_type<tc>, window_params = [{transform_indices = @transform_0, window_bounds = array<i64: 128, 256>}, {pipeline_mode = #tpu.pipeline_mode<synchronous>, transform_indices = @transform_1, window_bounds = array<i64: 256, 512>}, {pipeline_mode = #tpu.pipeline_mode<synchronous>, transform_indices = @transform_2, window_bounds = array<i64: 1, 512>}, {pipeline_mode = #tpu.pipeline_mode<synchronous>, transform_indices = @transform_3, window_bounds = array<i64: 512, 256>}, {pipeline_mode = #tpu.pipeline_mode<synchronous>, transform_indices = @transform_4, window_bounds = array<i64: 1, 256>}, {transform_indices = @transform_5, window_bounds = array<i64: 128, 256>}]} {
    %c0_i32 = arith.constant 0 : i32
    %0 = arith.cmpi eq, %arg1, %c0_i32 : i32
    %1 = arith.extui %0 : i1 to i32
    %c0_i32_0 = arith.constant 0 : i32
    %2 = arith.cmpi ne, %1, %c0_i32_0 : i32
    scf.if %2 {
      %cst_16 = arith.constant 0.000000e+00 : f32
      %19 = vector.broadcast %cst_16 : f32 to vector<128x256xf32>
      %c0_17 = arith.constant 0 : index
      %c0_18 = arith.constant 0 : index
      %20 = vector.load %arg8[%c0_17, %c0_18] : memref<128x256xf32, #tpu.memory_space<vmem>>, vector<128x256xf32>
      tpu.vector_store %arg8[%c0_17, %c0_18], %19 {strides = array<i32>} : memref<128x256xf32, #tpu.memory_space<vmem>>, vector<128x256xf32>,
    } else {
    }
    %c0 = arith.constant 0 : index
    %c0_1 = arith.constant 0 : index
    %3 = vector.load %arg2[%c0, %c0_1] : memref<128x256xf32, #tpu.memory_space<vmem>>, vector<128x256xf32>
    %c0_2 = arith.constant 0 : index
    %c0_3 = arith.constant 0 : index
    %4 = vector.load %arg3[%c0_2, %c0_3] : memref<256x512xf32, #tpu.memory_space<vmem>>, vector<256x512xf32>
    %cst = arith.constant dense<0.000000e+00> : vector<128x512xf32>
    %5 = tpu.matmul %3, %4, %cst {dimension_numbers = #tpu.dot_dimension_numbers<[1], [0], [0], [1], [0, 0, 1, 1], [], []>} : vector<128x256xf32>, vector<256x512xf32>, vector<128x512xf32> -> vector<128x512xf32>
    %c0_4 = arith.constant 0 : index
    %c0_5 = arith.constant 0 : index
    %6 = vector.load %arg4[%c0_4, %c0_5] : memref<1x512xf32, #tpu.memory_space<vmem>>, vector<1x512xf32>
    %7 = vector.broadcast %6 : vector<1x512xf32> to vector<128x512xf32>
    %8 = arith.addf %5, %7 : vector<128x512xf32>
    %cst_6 = arith.constant 0.000000e+00 : f32
    %9 = vector.broadcast %cst_6 : f32 to vector<128x512xf32>
    %10 = arith.maximumf %8, %9 : vector<128x512xf32>
    %c0_7 = arith.constant 0 : index
    %c0_8 = arith.constant 0 : index
    %11 = vector.load %arg8[%c0_7, %c0_8] : memref<128x256xf32, #tpu.memory_space<vmem>>, vector<128x256xf32>
    %c0_9 = arith.constant 0 : index
    %c0_10 = arith.constant 0 : index
    %12 = vector.load %arg5[%c0_9, %c0_10] : memref<512x256xf32, #tpu.memory_space<vmem>>, vector<512x256xf32>
    %cst_11 = arith.constant dense<0.000000e+00> : vector<128x256xf32>
    %13 = tpu.matmul %10, %12, %cst_11 {dimension_numbers = #tpu.dot_dimension_numbers<[1], [0], [0], [1], [0, 0, 1, 1], [], []>} : vector<128x512xf32>, vector<512x256xf32>, vector<128x256xf32> -> vector<128x256xf32>
    %14 = arith.addf %11, %13 : vector<128x256xf32>
    %c0_12 = arith.constant 0 : index
    %c0_13 = arith.constant 0 : index
    %15 = vector.load %arg8[%c0_12, %c0_13] : memref<128x256xf32, #tpu.memory_space<vmem>>, vector<128x256xf32>
    tpu.vector_store %arg8[%c0_12, %c0_13], %14 {strides = array<i32>} : memref<128x256xf32, #tpu.memory_space<vmem>>, vector<128x256xf32>,
    %c0_i32_14 = arith.constant 0 : i32
    %16 = arith.cmpi eq, %arg1, %c0_i32_14 : i32
    %17 = arith.extui %16 : i1 to i32
    %c0_i32_15 = arith.constant 0 : i32
    %18 = arith.cmpi ne, %17, %c0_i32_15 : i32
    scf.if %18 {
      %c0_16 = arith.constant 0 : index
      %c0_17 = arith.constant 0 : index
      %19 = vector.load %arg8[%c0_16, %c0_17] : memref<128x256xf32, #tpu.memory_space<vmem>>, vector<128x256xf32>
      %c0_18 = arith.constant 0 : index
      %c0_19 = arith.constant 0 : index
      %20 = vector.load %arg6[%c0_18, %c0_19] : memref<1x256xf32, #tpu.memory_space<vmem>>, vector<1x256xf32>
      %21 = vector.broadcast %20 : vector<1x256xf32> to vector<128x256xf32>
      %22 = arith.addf %19, %21 : vector<128x256xf32>
      %c0_20 = arith.constant 0 : index
      %c0_21 = arith.constant 0 : index
      %23 = vector.load %arg7[%c0_20, %c0_21] : memref<128x256xf32, #tpu.memory_space<vmem>>, vector<128x256xf32>
      tpu.vector_store %arg7[%c0_20, %c0_21], %22 {strides = array<i32>} : memref<128x256xf32, #tpu.memory_space<vmem>>, vector<128x256xf32>,
    } else {
    }
    return
  }
  func.func @transform_0(%arg0: i32, %arg1: i32) -> (i32, i32) {
    %c0_i32 = arith.constant 0 : i32
    %c0_i32_0 = arith.constant 0 : i32
    return %arg0, %c0_i32 : i32, i32
  }
  func.func @transform_1(%arg0: i32, %arg1: i32) -> (i32, i32) {
    %c0_i32 = arith.constant 0 : i32
    %c0_i32_0 = arith.constant 0 : i32
    return %c0_i32, %arg1 : i32, i32
  }
  func.func @transform_2(%arg0: i32, %arg1: i32) -> (i32, i32) {
    %c0_i32 = arith.constant 0 : i32
    %c0_i32_0 = arith.constant 0 : i32
    return %c0_i32, %arg1 : i32, i32
  }
  func.func @transform_3(%arg0: i32, %arg1: i32) -> (i32, i32) {
    %c0_i32 = arith.constant 0 : i32
    %c0_i32_0 = arith.constant 0 : i32
    return %arg1, %c0_i32 : i32, i32
  }
  func.func @transform_4(%arg0: i32, %arg1: i32) -> (i32, i32) {
    %c0_i32 = arith.constant 0 : i32
    %c0_i32_0 = arith.constant 0 : i32
    %c0_i32_1 = arith.constant 0 : i32
    return %c0_i32, %c0_i32_0 : i32, i32
  }
  func.func @transform_5(%arg0: i32, %arg1: i32) -> (i32, i32) {
    %c0_i32 = arith.constant 0 : i32
    %c0_i32_0 = arith.constant 0 : i32
    return %arg0, %c0_i32 : i32, i32
  }
}

module attributes {stable_mosaic.version = 11 : i64} {
  func.func @ffnn_kernel(%arg0: i32, %arg1: i32, %arg2: memref<128x256xf32, #tpu.memory_space<vmem>>, %arg3: memref<256x512xf32, #tpu.memory_space<vmem>>, %arg4: memref<1x512xf32, #tpu.memory_space<vmem>>, %arg5: memref<512x256xf32, #tpu.memory_space<vmem>>, %arg6: memref<1x256xf32, #tpu.memory_space<vmem>>, %arg7: memref<128x256xf32, #tpu.memory_space<vmem>>, %arg8: memref<128x256xf32, #tpu.memory_space<vmem>>) attributes {dimension_semantics = [#tpu.dimension_semantics<parallel>, #tpu.dimension_semantics<arbitrary>], iteration_bounds = array<i64: 8, 1>, scalar_prefetch = 0 : i64, scratch_operands = 1 : i64, tpu.core_type = #tpu.core_type<tc>, window_params = [{transform_indices = @transform_0, window_bounds = array<i64: 128, 256>}, {transform_indices = @transform_1, window_bounds = array<i64: 256, 512>}, {transform_indices = @transform_2, window_bounds = array<i64: 1, 512>}, {transform_indices = @transform_3, window_bounds = array<i64: 512, 256>}, {pipeline_mode = #tpu.pipeline_mode<synchronous>, transform_indices = @transform_4, window_bounds = array<i64: 1, 256>}, {transform_indices = @transform_5, window_bounds = array<i64: 128, 256>}]} {
    %c0_i32 = arith.constant 0 : i32
    %0 = arith.cmpi eq, %arg1, %c0_i32 : i32
    %1 = arith.extui %0 : i1 to i32
    %c0_i32_0 = arith.constant 0 : i32
    %2 = arith.cmpi ne, %1, %c0_i32_0 : i32
    scf.if %2 {
      %cst_16 = arith.constant 0.000000e+00 : f32
      %19 = vector.broadcast %cst_16 : f32 to vector<128x256xf32>
      %c0_17 = arith.constant 0 : index
      %c0_18 = arith.constant 0 : index
      %20 = vector.load %arg8[%c0_17, %c0_18] : memref<128x256xf32, #tpu.memory_space<vmem>>, vector<128x256xf32>
      tpu.vector_store %arg8[%c0_17, %c0_18], %19 {strides = array<i32>} : memref<128x256xf32, #tpu.memory_space<vmem>>, vector<128x256xf32>,
    } else {
    }
    %c0 = arith.constant 0 : index
    %c0_1 = arith.constant 0 : index
    %3 = vector.load %arg2[%c0, %c0_1] : memref<128x256xf32, #tpu.memory_space<vmem>>, vector<128x256xf32>
    %c0_2 = arith.constant 0 : index
    %c0_3 = arith.constant 0 : index
    %4 = vector.load %arg3[%c0_2, %c0_3] : memref<256x512xf32, #tpu.memory_space<vmem>>, vector<256x512xf32>
    %cst = arith.constant dense<0.000000e+00> : vector<128x512xf32>
    %5 = tpu.matmul %3, %4, %cst {dimension_numbers = #tpu.dot_dimension_numbers<[1], [0], [0], [1], [0, 0, 1, 1], [], []>} : vector<128x256xf32>, vector<256x512xf32>, vector<128x512xf32> -> vector<128x512xf32>
    %c0_4 = arith.constant 0 : index
    %c0_5 = arith.constant 0 : index
    %6 = vector.load %arg4[%c0_4, %c0_5] : memref<1x512xf32, #tpu.memory_space<vmem>>, vector<1x512xf32>
    %7 = vector.broadcast %6 : vector<1x512xf32> to vector<128x512xf32>
    %8 = arith.addf %5, %7 : vector<128x512xf32>
    %cst_6 = arith.constant 0.000000e+00 : f32
    %9 = vector.broadcast %cst_6 : f32 to vector<128x512xf32>
    %10 = arith.maximumf %8, %9 : vector<128x512xf32>
    %c0_7 = arith.constant 0 : index
    %c0_8 = arith.constant 0 : index
    %11 = vector.load %arg8[%c0_7, %c0_8] : memref<128x256xf32, #tpu.memory_space<vmem>>, vector<128x256xf32>
    %c0_9 = arith.constant 0 : index
    %c0_10 = arith.constant 0 : index
    %12 = vector.load %arg5[%c0_9, %c0_10] : memref<512x256xf32, #tpu.memory_space<vmem>>, vector<512x256xf32>
    %cst_11 = arith.constant dense<0.000000e+00> : vector<128x256xf32>
    %13 = tpu.matmul %10, %12, %cst_11 {dimension_numbers = #tpu.dot_dimension_numbers<[1], [0], [0], [1], [0, 0, 1, 1], [], []>} : vector<128x512xf32>, vector<512x256xf32>, vector<128x256xf32> -> vector<128x256xf32>
    %14 = arith.addf %11, %13 : vector<128x256xf32>
    %c0_12 = arith.constant 0 : index
    %c0_13 = arith.constant 0 : index
    %15 = vector.load %arg8[%c0_12, %c0_13] : memref<128x256xf32, #tpu.memory_space<vmem>>, vector<128x256xf32>
    tpu.vector_store %arg8[%c0_12, %c0_13], %14 {strides = array<i32>} : memref<128x256xf32, #tpu.memory_space<vmem>>, vector<128x256xf32>,
    %c0_i32_14 = arith.constant 0 : i32
    %16 = arith.cmpi eq, %arg1, %c0_i32_14 : i32
    %17 = arith.extui %16 : i1 to i32
    %c0_i32_15 = arith.constant 0 : i32
    %18 = arith.cmpi ne, %17, %c0_i32_15 : i32
    scf.if %18 {
      %c0_16 = arith.constant 0 : index
      %c0_17 = arith.constant 0 : index
      %19 = vector.load %arg8[%c0_16, %c0_17] : memref<128x256xf32, #tpu.memory_space<vmem>>, vector<128x256xf32>
      %c0_18 = arith.constant 0 : index
      %c0_19 = arith.constant 0 : index
      %20 = vector.load %arg6[%c0_18, %c0_19] : memref<1x256xf32, #tpu.memory_space<vmem>>, vector<1x256xf32>
      %21 = vector.broadcast %20 : vector<1x256xf32> to vector<128x256xf32>
      %22 = arith.addf %19, %21 : vector<128x256xf32>
      %c0_20 = arith.constant 0 : index
      %c0_21 = arith.constant 0 : index
      %23 = vector.load %arg7[%c0_20, %c0_21] : memref<128x256xf32, #tpu.memory_space<vmem>>, vector<128x256xf32>
      tpu.vector_store %arg7[%c0_20, %c0_21], %22 {strides = array<i32>} : memref<128x256xf32, #tpu.memory_space<vmem>>, vector<128x256xf32>,
    } else {
    }
    return
  }
  func.func @transform_0(%arg0: i32, %arg1: i32) -> (i32, i32) {
    %c0_i32 = arith.constant 0 : i32
    %c0_i32_0 = arith.constant 0 : i32
    return %arg0, %c0_i32 : i32, i32
  }
  func.func @transform_1(%arg0: i32, %arg1: i32) -> (i32, i32) {
    %c0_i32 = arith.constant 0 : i32
    %c0_i32_0 = arith.constant 0 : i32
    return %c0_i32, %arg1 : i32, i32
  }
  func.func @transform_2(%arg0: i32, %arg1: i32) -> (i32, i32) {
    %c0_i32 = arith.constant 0 : i32
    %c0_i32_0 = arith.constant 0 : i32
    return %c0_i32, %arg1 : i32, i32
  }
  func.func @transform_3(%arg0: i32, %arg1: i32) -> (i32, i32) {
    %c0_i32 = arith.constant 0 : i32
    %c0_i32_0 = arith.constant 0 : i32
    return %arg1, %c0_i32 : i32, i32
  }
  func.func @transform_4(%arg0: i32, %arg1: i32) -> (i32, i32) {
    %c0_i32 = arith.constant 0 : i32
    %c0_i32_0 = arith.constant 0 : i32
    %c0_i32_1 = arith.constant 0 : i32
    return %c0_i32, %c0_i32_0 : i32, i32
  }
  func.func @transform_5(%arg0: i32, %arg1: i32) -> (i32, i32) {
    %c0_i32 = arith.constant 0 : i32
    %c0_i32_0 = arith.constant 0 : i32
    return %arg0, %c0_i32 : i32, i32
  }
}

</mosaic_0001>

<bundles_post_ra>
// kernel: tpu_custom_call.1
= control target key start
LH: loop header
LB: loop body
LE: loop exit
PB: predicated region body
PF: predicated region fallthrough
CT: control target
= control target key end

     0   :  { %s3637_s0 = inlined_call_operand.hbm [shape: f32[1024,256], index: 0, kind: input, shape index: {}]   ;;  %s3638_s1 = inlined_call_operand.hbm [shape: f32[256,512], index: 1, kind: input, shape index: {}]   ;;  %s3639_s2 = inlined_call_operand.hbm [shape: f32[1,512], index: 2, kind: input, shape index: {}]   ;;  %s3640_s3 = inlined_call_operand.hbm [shape: f32[512,256], index: 3, kind: input, shape index: {}]   ;;  %s3641_s4 = inlined_call_operand.vmem [shape: f32[1,256], index: 4, kind: input, shape index: {}]   ;;  %s3642_s5 = inlined_call_operand.hbm [shape: f32[1024,256], index: 5, kind: output, shape index: {}]  }
   0x1   :  { %3723 = sst [smem:[#allocation34_spill]] %s3638_s1 }
   0x2   :  { %3724 = sst [smem:[#allocation35_spill]] %s3639_s2 }
   0x3   :  { %3725 = sst [smem:[#allocation36_spill]] %s3640_s3 }
   0x4   :  { %10 = vsyncpa [#allocation4], 0 }
   0x5   :  { %12 = vsyncpa [#allocation4 + $0x1], 0 }
   0x6   :  { %13 = vsyncpa [#allocation7], 0 }
   0x7   :  { %14 = vsyncpa [#allocation10], 0 }
   0x8   :  { %15 = vsyncpa [#allocation5], 0 }
   0x9   :  { %17 = vsyncpa [#allocation5 + $0x1], 0  ;;  %s2484_s18 = smov 0   ;;  %s2486_s19 = smov 0  }
   0xa   :  { %s2488_s20 = smov 0   ;;  %s2490_s21 = smov 0  }
   0xb   :  { %s2492_s22 = smov 0   ;;  %s2494_s23 = smov 0  }
   0xc LB: > { %s2107_s24 = sadd.s32 4294967295, %s2443_s23   ;;  %s2108_s25 = sadd.s32 4294967294, %s2443_s23   ;;  %s2443_s23 = sphi %s2494_s23, %s23_s23   ;;  %s2439_s22 = sphi %s2492_s22, %s3852_s22   ;;  %s2435_s21 = sphi %s2490_s21, %s3851_s21   ;;  %s2431_s20 = sphi %s2488_s20, %s3850_s20   ;;  %s2427_s19 = sphi %s2486_s19, %s3849_s19   ;;  %s2423_s18 = sphi %s2484_s18, %s3848_s18  }
   0xd   : > { %p55_p0 = scmp.ne.s32.totalorder %s2427_s19, %s2423_s18  ;;  %p2518_p1 = scmp.eq.s32.totalorder %s2107_s24, 0 }
   0xe   : > { %p2522_p2 = scmp.eq.s32.totalorder %s2107_s24, 7  ;;  %p184_p3 = scmp.eq.s32.totalorder %s2108_s25, 7 }
   0xf   : > { %p2528_p4 = por %p2518_p1, %p55_p0  ;;  %p2109_p5 = scmp.ge.s32.totalorder %s2443_s23, 1 }
  0x10   : > { %p2533_p6 = por %p184_p3, %p55_p0  ;;  %p191_p7 = scmp.lt.s32.totalorder %s2443_s23, 9 }
  0x11   : > { %s3730_s1 = sld [smem:[#allocation34_spill]]  ;;  %s2445_s9 = smov [#allocation6]  }
  0x12   : > { %p2541_p8 = pnand %p2109_p5, %p191_p7  ;;  %s207_s10 = sshll.u32 %s2445_s9, 4  ;;  %s208_s10 = int_to_ptr.vmem [resolvable:$true] %s207_s10 }
  0x13   : > { %s3733_s2 = sld [smem:[#allocation35_spill]]  ;;  %s2446_s15 = smov 512  }
  0x14   : > { %p2150_p9 = pneg %p2541_p8  ;;  %s2447_s16 = smov 32  }
  0x15   : > { %s2448_s17 = smov [#allocation8]   ;;  %s3734_s3 = sld [smem:[#allocation36_spill]] }
  0x16   : > { %p2549_p10 = pnand %p2150_p9, %p2518_p1  ;;  %s224_s24 = sshll.u32 %s2448_s17, 4  ;;  %s225_s24 = int_to_ptr.vmem [resolvable:$true] %s224_s24 }
  0x17   : > { %s205_s7 = sshll.u32 %s3730_s1, 4  ;;  %s2449_s9 = smov [#allocation9]   ;;  %s206_s7 = int_to_ptr.hbm [resolvable:$true] %s205_s7 }
  0x18   : > { %2153 = dma.hbm_to_vmem [thread:$0]  (!%p2549_p10), %s206_s7, 16384, %s208_s10, [#allocation7], %s2446_s15, %s2446_s15, %s2447_s16  }
  0x19   : > { %s222_s14 = sshll.u32 %s3733_s2, 4  ;;  %s239_s12 = sshll.u32 %s2449_s9, 4  ;;  %s223_s14 = int_to_ptr.hbm [resolvable:$true] %s222_s14  ;;  %s240_s12 = int_to_ptr.vmem [resolvable:$true] %s239_s12 }
  0x1a   : > { %2156 = dma.hbm_to_vmem [thread:$0]  (!%p2549_p10), %s223_s14, 64, %s225_s24, [#allocation7]  }
  0x1b   : > { %s237_s6 = sshll.u32 %s3734_s3, 4  ;;  %s3643_s13 = smov 256   ;;  %s238_s6 = int_to_ptr.hbm [resolvable:$true] %s237_s6 }
  0x1c   : > { %s3644_s7 = smov 16   ;;  %s42_s10 = sadd.s32 1, %s2431_s20 }
  0x1d   : > { %2159 = dma.hbm_to_vmem [thread:$0]  (!%p2549_p10), %s238_s6, 16384, %s240_s12, [#allocation10], %s3643_s13, %s3643_s13, %s3644_s7  }
  0x1e   : > { %s35_s15 = sadd.s32 1, %s2439_s22  ;;  %p49_p11 = scmp.ne.s32.totalorder %s2431_s20, %s2427_s19 }
  0x1f   : > { %p37_p12 = scmp.ge.s32.totalorder %s35_s15, 8  ;;  %p50_p13 = scmp.eq.s32.totalorder %s2443_s23, 0 }
  0x20   : > { %p2575_p0 = por %p2522_p2, %p49_p11  ;;  %p2171_p3 = scmp.lt.s32.totalorder %s2443_s23, 8 }
  0x21   : > { %s3854_s15 = smov (%p37_p12, %s35_s15), 0  ;;  %p2582_p5 = por %p50_p13, %p49_p11 }
  0x22   : > { %s256_s16 = sand.u32 1, %s2431_s20   ;;  %s39_s17 = ssub.s32 %s2439_s22, %s3854_s15 }
  0x23   : > { %p40_p7 = scmp.eq.s32.totalorder %s39_s17, 0  ;;  %s2114_s24 = sshll.u32 %s256_s16, 8 }
  0x24   : > { %s2131_s25 = sshll.u32 %s2439_s22, 8  ;;  %s260_s12 = scalar_lea.vmem [#allocation3], %s2114_s24 }
  0x25   : > { %s2591_s27 = scalar_select %p40_p7, %s2431_s20, %s42_s10  }
  0x26   : > { %s266_s9 = scalar_lea.hbm %s3637_s0, %s2131_s25  ;;  %s269_s13 = sshll.u32 %s260_s12, 4  ;;  %s270_s13 = int_to_ptr.vmem [resolvable:$true] %s269_s13 }
  0x27   : > { %s267_s7 = sshll.u32 %s266_s9, 4  ;;  %p2161_p2 = pnand %p2171_p3, %p2582_p5  ;;  %s268_s7 = int_to_ptr.hbm [resolvable:$true] %s267_s7 }
  0x28   : > { %s257_s1 = scalar_lea.sflag [#allocation4], %s256_s16  ;;  %s3737_s2 = smov 16  }
  0x29   : > { %s3738_s3 = smov 256   ;;  %281 = sbr.rel (%p2541_p8) target bundleno = 742 (0x2e6), region = 40 }
  0x2a   : > { %2163 = dma.hbm_to_vmem [thread:$0]  (!%p2161_p2), %s268_s7, 4096, %s270_s13, %s257_s1, %s3738_s3, %s3738_s3, %s3737_s2  }
  0x2e   : > { %s2606_s10 = sand.u32 1, %s2427_s19  }
  0x2f   : > { %s2119_s17 = sshll.u32 %s2606_s10, 8  ;;  %s284_s24 = scalar_lea.sflag [#allocation4], %s2606_s10 }
  0x30   : > { %s2612_s11 = scalar_lea.vmem [#allocation3], %s2119_s17 }
  0x31   : > { %2406 = dma.done.wait (%p2528_p4), %s284_s24, 4096  }
  0x32   : > { %2408 = vsyncadd (%p2528_p4), %s284_s24, 4294963200 }
  0x33   : > { %2410 = dma.done.wait (%p2518_p1), [#allocation7], 16448  }
  0x34   : > { %2412 = vsyncadd (%p2518_p1), [#allocation7], 4294950848 }
  0x35   : > { %2414 = dma.done.wait (%p2518_p1), [#allocation10], 16384  }
  0x36   : > { %2416 = vsyncadd (%p2518_p1), [#allocation10], 4294950912  ;;  %v463_v0 = vld [vmem:[#allocation6 + $0x1e0] sm:$0xff]  ;;  %v464_v2 = vld [vmem:[#allocation6 + $0x1e8] sm:$0xff]  ;;  %s3421_s3 = scalar_lea.vmem [#allocation11], %s2119_s17  ;;  %s2133_s26 = sshll.u32 %s2435_s21, 8 }
  0x37   : > { %v527_v1 = vld [vmem:[#allocation6 + $0x3e0] sm:$0xff]  ;;  %541 = vmatpush.msra.mxu0 %v463_v0  ;;  %v460_v5 = vld [vmem:[#allocation6 + $0x1c8] sm:$0xff]  ;;  %671 = vmatpush.msra.mxu2 %v464_v2  ;;  %v466_v2 = vld [vmem:[#allocation6 + $0x1f8] sm:$0xff]  ;;  %s1987_s13 = scalar_lea.hbm %s3642_s5, %s2133_s26  ;;  %s1988_s7 = sshll.u32 %s3421_s3, 4  ;;  %s1989_s7 = int_to_ptr.vmem [resolvable:$true] %s1988_s7 }
  0x38   : > { %606 = vmatpush.msra.mxu1 %v527_v1  ;;  %v459_v3 = vld [vmem:[#allocation6 + $0x1c0] sm:$0xff]  ;;  %v528_v6 = vld [vmem:[#allocation6 + $0x3e8] sm:$0xff]  ;;  %s1990_s16 = sshll.u32 %s1987_s13, 4  ;;  %s1975_s21 = scalar_lea.sflag [#allocation5], %s2606_s10  ;;  %s1991_s16 = int_to_ptr.hbm [resolvable:$true] %s1990_s16 }
  0x39   : > { %v523_v4 = vld [vmem:[#allocation6 + $0x3c0] sm:$0xff]  ;;  %542 = vmatpush.msra.mxu0 %v459_v3  ;;  %v456_v9 = vld [vmem:[#allocation6 + $0x1a8] sm:$0xff]  ;;  %672 = vmatpush.msra.mxu2 %v460_v5  ;;  %v530_v3 = vld [vmem:[#allocation6 + $0x3f8] sm:$0xff]  ;;  %s2367_s25 = sshra.s32 %s1991_s16, 4  ;;  %s2373_s12 = scalar_lea.hbm %s3642_s5, 2048  ;;  %s2368_s25 = int_to_ptr.hbm [resolvable:$true] %s2367_s25 }
  0x3a   : > { %v455_v7 = vld [vmem:[#allocation6 + $0x1a0] sm:$0xff]  ;;  %607 = vmatpush.msra.mxu1 %v523_v4  ;;  %v524_v10 = vld [vmem:[#allocation6 + $0x3c8] sm:$0xff]  ;;  %736 = vmatpush.msra.mxu3 %v528_v6  ;;  %v465_v4 = vld [vmem:[#allocation6 + $0x1f0] sm:$0xff]  ;;  %s2369_s30 = scalar_lea.hbm %s2368_s25, 256  ;;  %p2374_p9 = scmp.lt.s32.totalorder %s2368_s25, %s3642_s5 }
  0x3b   : > { %v519_v8 = vld [vmem:[#allocation6 + $0x3a0] sm:$0xff]  ;;  %543 = vmatpush.msra.mxu0 %v455_v7  ;;  %v452_v13 = vld [vmem:[#allocation6 + $0x188] sm:$0xff]  ;;  %673 = vmatpush.msra.mxu2 %v456_v9  ;;  %v529_v5 = vld [vmem:[#allocation6 + $0x3f0] sm:$0xff]  ;;  %p2370_p1 = scmp.ne.s32.totalorder %s2368_s25, %s2369_s30  ;;  %p2375_p10 = scmp.lt.s32.totalorder %s2373_s12, %s2369_s30 }
  0x3c   : > { %v451_v11 = vld [vmem:[#allocation6 + $0x180] sm:$0xff]  ;;  %608 = vmatpush.msra.mxu1 %v519_v8  ;;  %v520_v14 = vld [vmem:[#allocation6 + $0x3a8] sm:$0xff]  ;;  %737 = vmatpush.msra.mxu3 %v524_v10  ;;  %v462_v6 = vld [vmem:[#allocation6 + $0x1d8] sm:$0xff] }
  0x3d   : > { %v515_v12 = vld [vmem:[#allocation6 + $0x380] sm:$0xff]  ;;  %544 = vmatpush.msra.mxu0 %v451_v11  ;;  %v448_v17 = vld [vmem:[#allocation6 + $0x168] sm:$0xff]  ;;  %674 = vmatpush.msra.mxu2 %v452_v13  ;;  %v526_v7 = vld [vmem:[#allocation6 + $0x3d8] sm:$0xff]  ;;  %p2371_p4 = pnand %p2370_p1, %p2575_p0  ;;  %p2376_p11 = por %p2375_p10, %p2374_p9 }
  0x3e   : > { %v447_v15 = vld [vmem:[#allocation6 + $0x160] sm:$0xff]  ;;  %609 = vmatpush.msra.mxu1 %v515_v12  ;;  %v516_v18 = vld [vmem:[#allocation6 + $0x388] sm:$0xff]  ;;  %738 = vmatpush.msra.mxu3 %v520_v14  ;;  %v461_v8 = vld [vmem:[#allocation6 + $0x1d0] sm:$0xff] }
  0x3f   : > { %v511_v16 = vld [vmem:[#allocation6 + $0x360] sm:$0xff]  ;;  %545 = vmatpush.msra.mxu0 %v447_v15  ;;  %v444_v21 = vld [vmem:[#allocation6 + $0x148] sm:$0xff]  ;;  %675 = vmatpush.msra.mxu2 %v448_v17  ;;  %v525_v9 = vld [vmem:[#allocation6 + $0x3d0] sm:$0xff]  ;;  %p2372_p8 = pneg %p2371_p4 }
  0x40   : > { %v443_v19 = vld [vmem:[#allocation6 + $0x140] sm:$0xff]  ;;  %610 = vmatpush.msra.mxu1 %v511_v16  ;;  %v512_v22 = vld [vmem:[#allocation6 + $0x368] sm:$0xff]  ;;  %739 = vmatpush.msra.mxu3 %v516_v18  ;;  %v458_v10 = vld [vmem:[#allocation6 + $0x1b8] sm:$0xff] }
  0x41   : > { %v507_v20 = vld [vmem:[#allocation6 + $0x340] sm:$0xff]  ;;  %546 = vmatpush.msra.mxu0 %v443_v19  ;;  %v440_v25 = vld [vmem:[#allocation6 + $0x128] sm:$0xff]  ;;  %676 = vmatpush.msra.mxu2 %v444_v21  ;;  %v522_v11 = vld [vmem:[#allocation6 + $0x3b8] sm:$0xff]  ;;  %p2377_p12 = pnand %p2376_p11, %p2372_p8 }
  0x42   : > { %v439_v23 = vld [vmem:[#allocation6 + $0x120] sm:$0xff]  ;;  %611 = vmatpush.msra.mxu1 %v507_v20  ;;  %v508_v26 = vld [vmem:[#allocation6 + $0x348] sm:$0xff]  ;;  %740 = vmatpush.msra.mxu3 %v512_v22  ;;  %v457_v12 = vld [vmem:[#allocation6 + $0x1b0] sm:$0xff] }
  0x43   : > { %v503_v24 = vld [vmem:[#allocation6 + $0x320] sm:$0xff]  ;;  %547 = vmatpush.msra.mxu0 %v439_v23  ;;  %v436_v29 = vld [vmem:[#allocation6 + $0x108] sm:$0xff]  ;;  %677 = vmatpush.msra.mxu2 %v440_v25  ;;  %v2637_v13 = vld [vmem:[%s2612_s11 + $0x10] sm:$0xff] }
  0x44   : > { %v435_v27 = vld [vmem:[#allocation6 + $0x100] sm:$0xff]  ;;  %612 = vmatpush.msra.mxu1 %v503_v24  ;;  %v504_v30 = vld [vmem:[#allocation6 + $0x328] sm:$0xff]  ;;  %741 = vmatpush.msra.mxu3 %v508_v26  ;;  %v2640_v14 = vld [vmem:[%s2612_s11 + $0x18] sm:$0xff] }
  0x45   : > { %v499_v28 = vld [vmem:[#allocation6 + $0x300] sm:$0xff]  ;;  %548 = vmatpush.msra.mxu0 %v435_v27  ;;  %v432_v33 = vld [vmem:[#allocation6 + $0xe8] sm:$0xff]  ;;  %678 = vmatpush.msra.mxu2 %v436_v29  ;;  %v521_v15 = vld [vmem:[#allocation6 + $0x3b0] sm:$0xff] }
  0x46   : > { %v431_v31 = vld [vmem:[#allocation6 + $0xe0] sm:$0xff]  ;;  %613 = vmatpush.msra.mxu1 %v499_v28  ;;  %v500_v34 = vld [vmem:[#allocation6 + $0x308] sm:$0xff]  ;;  %742 = vmatpush.msra.mxu3 %v504_v30  ;;  %v454_v16 = vld [vmem:[#allocation6 + $0x198] sm:$0xff] }
  0x47   : > { %v495_v32 = vld [vmem:[#allocation6 + $0x2e0] sm:$0xff]  ;;  %549 = vmatpush.msra.mxu0 %v431_v31  ;;  %v428_v37 = vld [vmem:[#allocation6 + $0xc8] sm:$0xff]  ;;  %679 = vmatpush.msra.mxu2 %v432_v33  ;;  %v518_v17 = vld [vmem:[#allocation6 + $0x398] sm:$0xff] }
  0x48   : > { %v427_v35 = vld [vmem:[#allocation6 + $0xc0] sm:$0xff]  ;;  %614 = vmatpush.msra.mxu1 %v495_v32  ;;  %v496_v38 = vld [vmem:[#allocation6 + $0x2e8] sm:$0xff]  ;;  %743 = vmatpush.msra.mxu3 %v500_v34  ;;  %v453_v18 = vld [vmem:[#allocation6 + $0x190] sm:$0xff] }
  0x49   : > { %v491_v36 = vld [vmem:[#allocation6 + $0x2c0] sm:$0xff]  ;;  %550 = vmatpush.msra.mxu0 %v427_v35  ;;  %v424_v41 = vld [vmem:[#allocation6 + $0xa8] sm:$0xff]  ;;  %680 = vmatpush.msra.mxu2 %v428_v37  ;;  %v517_v19 = vld [vmem:[#allocation6 + $0x390] sm:$0xff] }
  0x4a   : > { %v423_v39 = vld [vmem:[#allocation6 + $0xa0] sm:$0xff]  ;;  %615 = vmatpush.msra.mxu1 %v491_v36  ;;  %v492_v42 = vld [vmem:[#allocation6 + $0x2c8] sm:$0xff]  ;;  %744 = vmatpush.msra.mxu3 %v496_v38  ;;  %v450_v20 = vld [vmem:[#allocation6 + $0x178] sm:$0xff] }
  0x4b   : > { %v487_v40 = vld [vmem:[#allocation6 + $0x2a0] sm:$0xff]  ;;  %551 = vmatpush.msra.mxu0 %v423_v39  ;;  %v420_v45 = vld [vmem:[#allocation6 + $0x88] sm:$0xff]  ;;  %681 = vmatpush.msra.mxu2 %v424_v41  ;;  %v514_v21 = vld [vmem:[#allocation6 + $0x378] sm:$0xff] }
  0x4c   : > { %v419_v43 = vld [vmem:[#allocation6 + $0x80] sm:$0xff]  ;;  %616 = vmatpush.msra.mxu1 %v487_v40  ;;  %v488_v46 = vld [vmem:[#allocation6 + $0x2a8] sm:$0xff]  ;;  %745 = vmatpush.msra.mxu3 %v492_v42  ;;  %v449_v22 = vld [vmem:[#allocation6 + $0x170] sm:$0xff] }
  0x4d   : > { %v483_v44 = vld [vmem:[#allocation6 + $0x280] sm:$0xff]  ;;  %552 = vmatpush.msra.mxu0 %v419_v43  ;;  %v416_v49 = vld [vmem:[#allocation6 + $0x68] sm:$0xff]  ;;  %682 = vmatpush.msra.mxu2 %v420_v45  ;;  %v513_v23 = vld [vmem:[#allocation6 + $0x370] sm:$0xff] }
  0x4e   : > { %v415_v47 = vld [vmem:[#allocation6 + $0x60] sm:$0xff]  ;;  %617 = vmatpush.msra.mxu1 %v483_v44  ;;  %v484_v50 = vld [vmem:[#allocation6 + $0x288] sm:$0xff]  ;;  %746 = vmatpush.msra.mxu3 %v488_v46  ;;  %v446_v24 = vld [vmem:[#allocation6 + $0x158] sm:$0xff] }
  0x4f   : > { %v479_v48 = vld [vmem:[#allocation6 + $0x260] sm:$0xff]  ;;  %553 = vmatpush.msra.mxu0 %v415_v47  ;;  %v412_v53 = vld [vmem:[#allocation6 + $0x48] sm:$0xff]  ;;  %683 = vmatpush.msra.mxu2 %v416_v49  ;;  %v510_v25 = vld [vmem:[#allocation6 + $0x358] sm:$0xff] }
  0x50   : > { %v411_v51 = vld [vmem:[#allocation6 + $0x40] sm:$0xff]  ;;  %618 = vmatpush.msra.mxu1 %v479_v48  ;;  %v480_v54 = vld [vmem:[#allocation6 + $0x268] sm:$0xff]  ;;  %747 = vmatpush.msra.mxu3 %v484_v50  ;;  %v445_v26 = vld [vmem:[#allocation6 + $0x150] sm:$0xff] }
  0x51   : > { %v475_v52 = vld [vmem:[#allocation6 + $0x240] sm:$0xff]  ;;  %554 = vmatpush.msra.mxu0 %v411_v51  ;;  %v408_v57 = vld [vmem:[#allocation6 + $0x28] sm:$0xff]  ;;  %684 = vmatpush.msra.mxu2 %v412_v53  ;;  %v509_v29 = vld [vmem:[#allocation6 + $0x350] sm:$0xff] }
  0x52   : > { %v407_v55 = vld [vmem:[#allocation6 + $0x20] sm:$0xff]  ;;  %619 = vmatpush.msra.mxu1 %v475_v52  ;;  %v476_v58 = vld [vmem:[#allocation6 + $0x248] sm:$0xff]  ;;  %748 = vmatpush.msra.mxu3 %v480_v54  ;;  %v442_v30 = vld [vmem:[#allocation6 + $0x138] sm:$0xff] }
  0x53   : > { %v471_v56 = vld [vmem:[#allocation6 + $0x220] sm:$0xff]  ;;  %555 = vmatpush.msra.mxu0 %v407_v55  ;;  %v404_v61 = vld [vmem:[#allocation6 + $0x8] sm:$0xff]  ;;  %685 = vmatpush.msra.mxu2 %v408_v57  ;;  %v506_v31 = vld [vmem:[#allocation6 + $0x338] sm:$0xff] }
  0x54   : > { %v403_v59 = vld [vmem:[#allocation6] sm:$0xff]  ;;  %620 = vmatpush.msra.mxu1 %v471_v56  ;;  %v472_v62 = vld [vmem:[#allocation6 + $0x228] sm:$0xff]  ;;  %749 = vmatpush.msra.mxu3 %v476_v58  ;;  %v441_v32 = vld [vmem:[#allocation6 + $0x130] sm:$0xff] }
  0x55   : > { %v467_v60 = vld [vmem:[#allocation6 + $0x200] sm:$0xff]  ;;  %v2630_v0 = vld [vmem:[%s2612_s11 + $0x8] sm:$0xff]  ;;  %556 = vmatpush.msra.mxu0 %v403_v59  ;;  %686 = vmatpush.msra.mxu2 %v404_v61  ;;  %v505_v33 = vld [vmem:[#allocation6 + $0x330] sm:$0xff] }
  0x56   : > { %v2627_v63 = vld [vmem:[%s2612_s11] sm:$0xff]  ;;  %621 = vmatpush.msra.mxu1 %v467_v60  ;;  %v468_v1 = vld [vmem:[#allocation6 + $0x208] sm:$0xff]  ;;  %750 = vmatpush.msra.mxu3 %v472_v62  ;;  %v2657_v34 = vld [vmem:[%s2612_s11 + $0x30] sm:$0xff] }
  0x57   : > { %557 = vmatmul.f32.vlgmr.msra.gmra.mxu0 %v2627_v63  ;;  %622 = vmatmul.f32.vlgmr.msra.gmra.mxu1 %v2630_v0  ;;  %v2647_v27 = vld [vmem:[%s2612_s11 + $0x20] sm:$0xff]  ;;  %v2650_v28 = vld [vmem:[%s2612_s11 + $0x28] sm:$0xff]  ;;  %v2660_v35 = vld [vmem:[%s2612_s11 + $0x38] sm:$0xff] }
  0x58   : > { %687 = vmatmul.f32.vlgmr.msra.gmra.mxu2 %v2627_v63  ;;  %751 = vmatpush.msra.mxu3 %v468_v1  ;;  %v438_v36 = vld [vmem:[#allocation6 + $0x118] sm:$0xff]  ;;  %v437_v38 = vld [vmem:[#allocation6 + $0x110] sm:$0xff]  ;;  %v2667_v40 = vld [vmem:[%s2612_s11 + $0x40] sm:$0xff] }
  0x59   : > { %931 = vmatpush.msrb.mxu2 %v466_v2  ;;  %752 = vmatmul.f32.vlgmr.msra.gmra.mxu3 %v2630_v0  ;;  %v502_v37 = vld [vmem:[#allocation6 + $0x318] sm:$0xff]  ;;  %v501_v39 = vld [vmem:[#allocation6 + $0x310] sm:$0xff]  ;;  %v2670_v41 = vld [vmem:[%s2612_s11 + $0x48] sm:$0xff] }
  0x5a   : > { %996 = vmatpush.msrb.mxu3 %v530_v3  ;;  %801 = vmatpush.msrb.mxu0 %v465_v4  ;;  %v434_v42 = vld [vmem:[#allocation6 + $0xf8] sm:$0xff]  ;;  %v433_v44 = vld [vmem:[#allocation6 + $0xf0] sm:$0xff]  ;;  %v2687_v52 = vld [vmem:[%s2612_s11 + $0x60] sm:$0xff] }
  0x5b   : > { %866 = vmatpush.msrb.mxu1 %v529_v5  ;;  %932 = vmatpush.msrb.mxu2 %v462_v6  ;;  %v498_v43 = vld [vmem:[#allocation6 + $0x2f8] sm:$0xff]  ;;  %v497_v45 = vld [vmem:[#allocation6 + $0x2f0] sm:$0xff]  ;;  %v2690_v53 = vld [vmem:[%s2612_s11 + $0x68] sm:$0xff] }
  0x5c   : > { %997 = vmatpush.msrb.mxu3 %v526_v7  ;;  %802 = vmatpush.msrb.mxu0 %v461_v8  ;;  %v2677_v46 = vld [vmem:[%s2612_s11 + $0x50] sm:$0xff]  ;;  %v2680_v47 = vld [vmem:[%s2612_s11 + $0x58] sm:$0xff]  ;;  %v2707_v2 = vld [vmem:[%s2612_s11 + $0x80] sm:$0xff] }
  0x5d   : > { %867 = vmatpush.msrb.mxu1 %v525_v9  ;;  %933 = vmatpush.msrb.mxu2 %v458_v10  ;;  %v430_v48 = vld [vmem:[#allocation6 + $0xd8] sm:$0xff]  ;;  %v429_v50 = vld [vmem:[#allocation6 + $0xd0] sm:$0xff]  ;;  %v2710_v3 = vld [vmem:[%s2612_s11 + $0x88] sm:$0xff] }
  0x5e   : > { %998 = vmatpush.msrb.mxu3 %v522_v11  ;;  %803 = vmatpush.msrb.mxu0 %v457_v12  ;;  %v494_v49 = vld [vmem:[#allocation6 + $0x2d8] sm:$0xff]  ;;  %v493_v51 = vld [vmem:[#allocation6 + $0x2d0] sm:$0xff] }
  0x5f   : > { %560 = vmatmul.f32.gmra.mxu0 %v2637_v13  ;;  %625 = vmatmul.f32.gmra.mxu1 %v2640_v14  ;;  %v426_v54 = vld [vmem:[#allocation6 + $0xb8] sm:$0xff]  ;;  %v425_v56 = vld [vmem:[#allocation6 + $0xb0] sm:$0xff] }
  0x60   : > { %690 = vmatmul.f32.gmra.mxu2 %v2637_v13  ;;  %868 = vmatpush.msrb.mxu1 %v521_v15  ;;  %v490_v55 = vld [vmem:[#allocation6 + $0x2b8] sm:$0xff]  ;;  %v489_v57 = vld [vmem:[#allocation6 + $0x2b0] sm:$0xff] }
  0x61   : > { %755 = vmatmul.f32.gmra.mxu3 %v2640_v14  ;;  %934 = vmatpush.msrb.mxu2 %v454_v16  ;;  %v2697_v58 = vld [vmem:[%s2612_s11 + $0x70] sm:$0xff]  ;;  %v2700_v59 = vld [vmem:[%s2612_s11 + $0x78] sm:$0xff]  ;;  %v2727_v16 = vld [vmem:[%s2612_s11 + $0xa0] sm:$0xff] }
  0x62   : > { %999 = vmatpush.msrb.mxu3 %v518_v17  ;;  %804 = vmatpush.msrb.mxu0 %v453_v18  ;;  %v422_v60 = vld [vmem:[#allocation6 + $0x98] sm:$0xff]  ;;  %v421_v62 = vld [vmem:[#allocation6 + $0x90] sm:$0xff]  ;;  %v2730_v17 = vld [vmem:[%s2612_s11 + $0xa8] sm:$0xff] }
  0x63   : > { %869 = vmatpush.msrb.mxu1 %v517_v19  ;;  %935 = vmatpush.msrb.mxu2 %v450_v20  ;;  %v486_v61 = vld [vmem:[#allocation6 + $0x298] sm:$0xff]  ;;  %v485_v1 = vld [vmem:[#allocation6 + $0x290] sm:$0xff] }
  0x64   : > { %1000 = vmatpush.msrb.mxu3 %v514_v21  ;;  %805 = vmatpush.msrb.mxu0 %v449_v22  ;;  %v418_v4 = vld [vmem:[#allocation6 + $0x78] sm:$0xff]  ;;  %v417_v6 = vld [vmem:[#allocation6 + $0x70] sm:$0xff] }
  0x65   : > { %870 = vmatpush.msrb.mxu1 %v513_v23  ;;  %936 = vmatpush.msrb.mxu2 %v446_v24  ;;  %v482_v5 = vld [vmem:[#allocation6 + $0x278] sm:$0xff]  ;;  %v481_v7 = vld [vmem:[#allocation6 + $0x270] sm:$0xff] }
  0x66   : > { %1001 = vmatpush.msrb.mxu3 %v510_v25  ;;  %806 = vmatpush.msrb.mxu0 %v445_v26  ;;  %v2717_v8 = vld [vmem:[%s2612_s11 + $0x90] sm:$0xff]  ;;  %v2720_v9 = vld [vmem:[%s2612_s11 + $0x98] sm:$0xff] }
  0x67   : > { %563 = vmatmul.f32.gmra.mxu0 %v2647_v27  ;;  %628 = vmatmul.f32.gmra.mxu1 %v2650_v28  ;;  %v414_v10 = vld [vmem:[#allocation6 + $0x58] sm:$0xff]  ;;  %v413_v12 = vld [vmem:[#allocation6 + $0x50] sm:$0xff] }
  0x68   : > { %693 = vmatmul.f32.gmra.mxu2 %v2647_v27  ;;  %871 = vmatpush.msrb.mxu1 %v509_v29  ;;  %v478_v11 = vld [vmem:[#allocation6 + $0x258] sm:$0xff]  ;;  %v477_v15 = vld [vmem:[#allocation6 + $0x250] sm:$0xff]  ;;  %v2747_v29 = vld [vmem:[%s2612_s11 + $0xc0] sm:$0xff] }
  0x69   : > { %758 = vmatmul.f32.gmra.mxu3 %v2650_v28  ;;  %937 = vmatpush.msrb.mxu2 %v442_v30  ;;  %v410_v18 = vld [vmem:[#allocation6 + $0x38] sm:$0xff]  ;;  %v409_v20 = vld [vmem:[#allocation6 + $0x30] sm:$0xff]  ;;  %v2750_v30 = vld [vmem:[%s2612_s11 + $0xc8] sm:$0xff] }
  0x6a   : > { %1002 = vmatpush.msrb.mxu3 %v506_v31  ;;  %807 = vmatpush.msrb.mxu0 %v441_v32  ;;  %v474_v19 = vld [vmem:[#allocation6 + $0x238] sm:$0xff]  ;;  %v473_v21 = vld [vmem:[#allocation6 + $0x230] sm:$0xff] }
  0x6b   : > { %872 = vmatpush.msrb.mxu1 %v505_v33  ;;  %938 = vmatpush.msrb.mxu2 %v438_v36  ;;  %v2737_v22 = vld [vmem:[%s2612_s11 + $0xb0] sm:$0xff]  ;;  %v2740_v23 = vld [vmem:[%s2612_s11 + $0xb8] sm:$0xff] }
  0x6c   : > { %1003 = vmatpush.msrb.mxu3 %v502_v37  ;;  %808 = vmatpush.msrb.mxu0 %v437_v38  ;;  %v406_v24 = vld [vmem:[#allocation6 + $0x18] sm:$0xff]  ;;  %v405_v26 = vld [vmem:[#allocation6 + $0x10] sm:$0xff]  ;;  %v2767_v38 = vld [vmem:[%s2612_s11 + $0xe0] sm:$0xff] }
  0x6d   : > { %873 = vmatpush.msrb.mxu1 %v501_v39  ;;  %939 = vmatpush.msrb.mxu2 %v434_v42  ;;  %v470_v25 = vld [vmem:[#allocation6 + $0x218] sm:$0xff]  ;;  %v469_v31 = vld [vmem:[#allocation6 + $0x210] sm:$0xff]  ;;  %v2770_v39 = vld [vmem:[%s2612_s11 + $0xe8] sm:$0xff] }
  0x6e   : > { %1004 = vmatpush.msrb.mxu3 %v498_v43  ;;  %809 = vmatpush.msrb.mxu0 %v433_v44  ;;  %v2757_v32 = vld [vmem:[%s2612_s11 + $0xd0] sm:$0xff]  ;;  %v2760_v33 = vld [vmem:[%s2612_s11 + $0xd8] sm:$0xff]  ;;  %v1249_v44 = vld [vmem:[#allocation9 + $0x2e0] sm:$0xff] }
  0x6f   : > { %566 = vmatmul.f32.gmra.mxu0 %v2657_v34  ;;  %631 = vmatmul.f32.gmra.mxu1 %v2660_v35  ;;  %v1251_v36 = vld [vmem:[#allocation9 + $0x2f0] sm:$0xff] }
  0x70   : > { %696 = vmatmul.f32.gmra.mxu2 %v2657_v34  ;;  %874 = vmatpush.msrb.mxu1 %v497_v45  ;;  %v1283_v37 = vld [vmem:[#allocation9 + $0x3f0] sm:$0xff]  ;;  %v1281_v45 = vld [vmem:[#allocation9 + $0x3e0] sm:$0xff] }
  0x71   : > { %761 = vmatmul.f32.gmra.mxu3 %v2660_v35  ;;  %940 = vmatpush.msrb.mxu2 %v430_v48  ;;  %v1187_v42 = vld [vmem:[#allocation9 + $0xf0] sm:$0xff] }
  0x72   : > { %1005 = vmatpush.msrb.mxu3 %v494_v49  ;;  %810 = vmatpush.msrb.mxu0 %v429_v50  ;;  %v1219_v43 = vld [vmem:[#allocation9 + $0x1f0] sm:$0xff]  ;;  %v1185_v50 = vld [vmem:[#allocation9 + $0xe0] sm:$0xff] }
  0x73   : > { %875 = vmatpush.msrb.mxu1 %v493_v51  ;;  %941 = vmatpush.msrb.mxu2 %v426_v54  ;;  %v2777_v48 = vld [vmem:[%s2612_s11 + $0xf0] sm:$0xff]  ;;  %v2780_v49 = vld [vmem:[%s2612_s11 + $0xf8] sm:$0xff]  ;;  %v1217_v51 = vld [vmem:[#allocation9 + $0x1e0] sm:$0xff] }
  0x74   : > { %1006 = vmatpush.msrb.mxu3 %v490_v55  ;;  %811 = vmatpush.msrb.mxu0 %v425_v56  ;;  %v1247_v54 = vld [vmem:[#allocation9 + $0x2d0] sm:$0xff] }
  0x75   : > { %876 = vmatpush.msrb.mxu1 %v489_v57  ;;  %942 = vmatpush.msrb.mxu2 %v422_v60  ;;  %v1279_v55 = vld [vmem:[#allocation9 + $0x3d0] sm:$0xff] }
  0x76   : > { %1007 = vmatpush.msrb.mxu3 %v486_v61  ;;  %812 = vmatpush.msrb.mxu0 %v421_v62  ;;  %v1183_v60 = vld [vmem:[#allocation9 + $0xd0] sm:$0xff]  ;;  %v2790_v62 = vld [vmem:[#allocation8] sm:$0xf] }
  0x77   : > { %569 = vmatmul.f32.gmra.mxu0 %v2667_v40  ;;  %634 = vmatmul.f32.gmra.mxu1 %v2670_v41  ;;  %v1215_v61 = vld [vmem:[#allocation9 + $0x1d0] sm:$0xff] }
  0x78   : > { %699 = vmatmul.f32.gmra.mxu2 %v2667_v40  ;;  %877 = vmatpush.msrb.mxu1 %v485_v1  ;;  %v2796_v1 = vperm.slane %v2790_v62, 1 }
  0x79   : > { %764 = vmatmul.f32.gmra.mxu3 %v2670_v41  ;;  %943 = vmatpush.msrb.mxu2 %v418_v4  ;;  %v1245_v4 = vld [vmem:[#allocation9 + $0x2c0] sm:$0xff] }
  0x7a   : > { %1008 = vmatpush.msrb.mxu3 %v482_v5  ;;  %813 = vmatpush.msrb.mxu0 %v417_v6  ;;  %v1277_v5 = vld [vmem:[#allocation9 + $0x3c0] sm:$0xff] }
  0x7b   : > { %878 = vmatpush.msrb.mxu1 %v481_v7  ;;  %944 = vmatpush.msrb.mxu2 %v414_v10 }
  0x7c   : > { %1009 = vmatpush.msrb.mxu3 %v478_v11  ;;  %814 = vmatpush.msrb.mxu0 %v413_v12  ;;  %v1181_v12 = vld [vmem:[#allocation9 + $0xc0] sm:$0xff] }
  0x7d   : > { %879 = vmatpush.msrb.mxu1 %v477_v15  ;;  %945 = vmatpush.msrb.mxu2 %v410_v18  ;;  %v1213_v15 = vld [vmem:[#allocation9 + $0x1c0] sm:$0xff] }
  0x7e   : > { %1010 = vmatpush.msrb.mxu3 %v474_v19  ;;  %815 = vmatpush.msrb.mxu0 %v409_v20  ;;  %v1275_v19 = vld [vmem:[#allocation9 + $0x3b0] sm:$0xff] }
  0x7f   : > { %572 = vmatmul.f32.gmra.mxu0 %v2677_v46  ;;  %637 = vmatmul.f32.gmra.mxu1 %v2680_v47 }
  0x80   : > { %702 = vmatmul.f32.gmra.mxu2 %v2677_v46  ;;  %880 = vmatpush.msrb.mxu1 %v473_v21 }
  0x81   : > { %767 = vmatmul.f32.gmra.mxu3 %v2680_v47  ;;  %946 = vmatpush.msrb.mxu2 %v406_v24 }
  0x82   : > { %1011 = vmatpush.msrb.mxu3 %v470_v25  ;;  %816 = vmatpush.msrb.mxu0 %v405_v26  ;;  %v1179_v26 = vld [vmem:[#allocation9 + $0xb0] sm:$0xff] }
  0x83   : > { %881 = vmatpush.msrb.mxu1 %v469_v31  ;;  %1415 = vmatpush.msra.mxu2 %v1251_v36  ;;  %v1211_v31 = vld [vmem:[#allocation9 + $0x1b0] sm:$0xff] }
  0x84   : > { %1480 = vmatpush.msra.mxu3 %v1283_v37  ;;  %1285 = vmatpush.msra.mxu0 %v1187_v42 }
  0x85   : > { %1350 = vmatpush.msra.mxu1 %v1219_v43  ;;  %1416 = vmatpush.msra.mxu2 %v1249_v44 }
  0x86   : > { %1481 = vmatpush.msra.mxu3 %v1281_v45  ;;  %1286 = vmatpush.msra.mxu0 %v1185_v50  ;;  %v1177_v50 = vld [vmem:[#allocation9 + $0xa0] sm:$0xff] }
  0x87   : > { %575 = vmatmul.f32.gmra.mxu0 %v2687_v52  ;;  %640 = vmatmul.f32.gmra.mxu1 %v2690_v53 }
  0x88   : > { %705 = vmatmul.f32.gmra.mxu2 %v2687_v52  ;;  %1351 = vmatpush.msra.mxu1 %v1217_v51  ;;  %v1209_v51 = vld [vmem:[#allocation9 + $0x1a0] sm:$0xff] }
  0x89   : > { %770 = vmatmul.f32.gmra.mxu3 %v2690_v53  ;;  %1417 = vmatpush.msra.mxu2 %v1247_v54 }
  0x8a   : > { %1482 = vmatpush.msra.mxu3 %v1279_v55  ;;  %1287 = vmatpush.msra.mxu0 %v1183_v60 }
  0x8b   : > { %1352 = vmatpush.msra.mxu1 %v1215_v61  ;;  %1418 = vmatpush.msra.mxu2 %v1245_v4 }
  0x8c   : > { %1483 = vmatpush.msra.mxu3 %v1277_v5  ;;  %1288 = vmatpush.msra.mxu0 %v1181_v12 }
  0x8d   : > { %1353 = vmatpush.msra.mxu1 %v1213_v15 }
  0x8e   : > { %1484 = vmatpush.msra.mxu3 %v1275_v19  ;;  %1289 = vmatpush.msra.mxu0 %v1179_v26  ;;  %v1205_v26 = vld [vmem:[#allocation9 + $0x180] sm:$0xff] }
  0x8f   : > { %578 = vmatmul.f32.gmra.mxu0 %v2697_v58  ;;  %643 = vmatmul.f32.gmra.mxu1 %v2700_v59 }
  0x90   : > { %708 = vmatmul.f32.gmra.mxu2 %v2697_v58  ;;  %1354 = vmatpush.msra.mxu1 %v1211_v31 }
  0x91   : > { %773 = vmatmul.f32.gmra.mxu3 %v2700_v59  ;;  %1290 = vmatpush.msra.mxu0 %v1177_v50  ;;  %v1171_v50 = vld [vmem:[#allocation9 + $0x70] sm:$0xff] }
  0x92   : > { %1355 = vmatpush.msra.mxu1 %v1209_v51  ;;  %v1203_v51 = vld [vmem:[#allocation9 + $0x170] sm:$0xff] }
  0x97   : > { %581 = vmatmul.f32.gmra.mxu0 %v2707_v2  ;;  %646 = vmatmul.f32.gmra.mxu1 %v2710_v3 }
  0x98   : > { %711 = vmatmul.f32.gmra.mxu2 %v2707_v2 }
  0x99   : > { %776 = vmatmul.f32.gmra.mxu3 %v2710_v3 }
  0x9f   : > { %584 = vmatmul.f32.gmra.mxu0 %v2717_v8  ;;  %649 = vmatmul.f32.gmra.mxu1 %v2720_v9 }
  0xa0   : > { %714 = vmatmul.f32.gmra.mxu2 %v2717_v8 }
  0xa1   : > { %779 = vmatmul.f32.gmra.mxu3 %v2720_v9 }
  0xa7   : > { %587 = vmatmul.f32.gmra.mxu0 %v2727_v16  ;;  %652 = vmatmul.f32.gmra.mxu1 %v2730_v17 }
  0xa8   : > { %717 = vmatmul.f32.gmra.mxu2 %v2727_v16 }
  0xa9   : > { %782 = vmatmul.f32.gmra.mxu3 %v2730_v17 }
  0xaf   : > { %590 = vmatmul.f32.gmra.mxu0 %v2737_v22  ;;  %655 = vmatmul.f32.gmra.mxu1 %v2740_v23 }
  0xb0   : > { %720 = vmatmul.f32.gmra.mxu2 %v2737_v22 }
  0xb1   : > { %785 = vmatmul.f32.gmra.mxu3 %v2740_v23 }
  0xb7   : > { %593 = vmatmul.f32.gmra.mxu0 %v2747_v29  ;;  %658 = vmatmul.f32.gmra.mxu1 %v2750_v30 }
  0xb8   : > { %723 = vmatmul.f32.gmra.mxu2 %v2747_v29 }
  0xb9   : > { %788 = vmatmul.f32.gmra.mxu3 %v2750_v30 }
  0xbf   : > { %596 = vmatmul.f32.gmra.mxu0 %v2757_v32  ;;  %661 = vmatmul.f32.gmra.mxu1 %v2760_v33 }
  0xc0   : > { %726 = vmatmul.f32.gmra.mxu2 %v2757_v32 }
  0xc1   : > { %791 = vmatmul.f32.gmra.mxu3 %v2760_v33 }
  0xc7   : > { %599 = vmatmul.f32.gmra.mxu0 %v2767_v38  ;;  %664 = vmatmul.f32.gmra.mxu1 %v2770_v39 }
  0xc8   : > { %729 = vmatmul.f32.gmra.mxu2 %v2767_v38 }
  0xc9   : > { %794 = vmatmul.f32.gmra.mxu3 %v2770_v39 }
  0xcf   : > { %602 = vmatmul.f32.gmra.mxu0 %v2777_v48  ;;  %667 = vmatmul.f32.gmra.mxu1 %v2780_v49 }
  0xd0   : > { %732 = vmatmul.f32.gmra.mxu2 %v2777_v48 }
  0xd1   : > { %797 = vmatmul.f32.gmra.mxu3 %v2780_v49 }
  0xd4   : > { %v2786_v56 = vpop.f32.mrf.mxu0  ;;  %v2788_v57 = vpop.f32.mrf.mxu1 }
  0xd7   : > { %817 = vmatmul.f32.vlgmr.msrb.gmra.mxu0 %v2627_v63  ;;  %882 = vmatmul.f32.vlgmr.msrb.gmra.mxu1 %v2630_v0 }
  0xd8   : > { %947 = vmatmul.f32.vlgmr.msrb.gmra.mxu2 %v2627_v63 }
  0xd9   : > { %1012 = vmatmul.f32.vlgmr.msrb.gmra.mxu3 %v2630_v0  ;;  %v1243_v0 = vld [vmem:[#allocation9 + $0x2b0] sm:$0xff] }
  0xda   : > { %1419 = vmatpush.msra.mxu2 %v1243_v0 }
  0xdb   : > { %v688_v6 = vpop.f32.mrf.mxu2 }
  0xdc   : > { %v689_v7 = vadd.f32 %v688_v6, %v2796_v1  ;;  %v2800_v10 = vpop.f32.mrf.mxu0  ;;  %v2802_v11 = vpop.f32.mrf.mxu1  ;;  %v1175_v6 = vld [vmem:[#allocation9 + $0x90] sm:$0xff] }
  0xdd   : > { %v753_v18 = vpop.f32.mrf.mxu3  ;;  %1291 = vmatpush.msra.mxu0 %v1175_v6 }
  0xde   : > { %v2804_v63 = vadd.f32 %v753_v18, %v689_v7  ;;  %v1207_v7 = vld [vmem:[#allocation9 + $0x190] sm:$0xff] }
  0xdf   : > { %820 = vmatmul.f32.gmra.mxu0 %v2637_v13  ;;  %885 = vmatmul.f32.gmra.mxu1 %v2640_v14 }
  0xe0   : > { %3739 = vst [vmem:[#allocation16_spill] sm:$0xff] %v2804_v63  ;;  %950 = vmatmul.f32.gmra.mxu2 %v2637_v13  ;;  %v1241_v13 = vld [vmem:[#allocation9 + $0x2a0] sm:$0xff]  ;;  %1356 = vmatpush.msra.mxu1 %v1207_v7 }
  0xe1   : > { %1015 = vmatmul.f32.gmra.mxu3 %v2640_v14  ;;  %v1273_v14 = vld [vmem:[#allocation9 + $0x3a0] sm:$0xff]  ;;  %1420 = vmatpush.msra.mxu2 %v1241_v13 }
  0xe2   : > { %1485 = vmatpush.msra.mxu3 %v1273_v14  ;;  %1357 = vmatpush.msra.mxu1 %v1205_v26  ;;  %v1169_v7 = vld [vmem:[#allocation9 + $0x60] sm:$0xff] }
  0xe3   : > { %v691_v20 = vpop.f32.mrf.mxu2 }
  0xe4   : > { %v692_v21 = vadd.f32 %v691_v20, %v2796_v1  ;;  %v2811_v24 = vpop.f32.mrf.mxu0  ;;  %v2813_v25 = vpop.f32.mrf.mxu1  ;;  %1358 = vmatpush.msra.mxu1 %v1203_v51 }
  0xe5   : > { %v756_v36 = vpop.f32.mrf.mxu3 }
  0xe6   : > { %v2815_v37 = vadd.f32 %v756_v36, %v692_v21  ;;  %v1173_v21 = vld [vmem:[#allocation9 + $0x80] sm:$0xff] }
  0xe7   : > { %823 = vmatmul.f32.gmra.mxu0 %v2647_v27  ;;  %888 = vmatmul.f32.gmra.mxu1 %v2650_v28 }
  0xe8   : > { %953 = vmatmul.f32.gmra.mxu2 %v2647_v27  ;;  %v1239_v27 = vld [vmem:[#allocation9 + $0x290] sm:$0xff]  ;;  %1292 = vmatpush.msra.mxu0 %v1173_v21 }
  0xe9   : > { %1018 = vmatmul.f32.gmra.mxu3 %v2650_v28  ;;  %v1271_v28 = vld [vmem:[#allocation9 + $0x390] sm:$0xff]  ;;  %1421 = vmatpush.msra.mxu2 %v1239_v27 }
  0xea   : > { %1486 = vmatpush.msra.mxu3 %v1271_v28  ;;  %1293 = vmatpush.msra.mxu0 %v1171_v50 }
  0xeb   : > { %v694_v42 = vpop.f32.mrf.mxu2 }
  0xec   : > { %v695_v43 = vadd.f32 %v694_v42, %v2796_v1  ;;  %v2822_v44 = vpop.f32.mrf.mxu0  ;;  %v2824_v45 = vpop.f32.mrf.mxu1  ;;  %1294 = vmatpush.msra.mxu0 %v1169_v7 }
  0xed   : > { %v759_v54 = vpop.f32.mrf.mxu3 }
  0xee   : > { %v2826_v55 = vadd.f32 %v759_v54, %v695_v43 }
  0xef   : > { %826 = vmatmul.f32.gmra.mxu0 %v2657_v34  ;;  %891 = vmatmul.f32.gmra.mxu1 %v2660_v35 }
  0xf0   : > { %956 = vmatmul.f32.gmra.mxu2 %v2657_v34  ;;  %v1237_v34 = vld [vmem:[#allocation9 + $0x280] sm:$0xff] }
  0xf1   : > { %1021 = vmatmul.f32.gmra.mxu3 %v2660_v35  ;;  %v1269_v35 = vld [vmem:[#allocation9 + $0x380] sm:$0xff]  ;;  %1422 = vmatpush.msra.mxu2 %v1237_v34 }
  0xf2   : > { %1487 = vmatpush.msra.mxu3 %v1269_v35 }
  0xf3   : > { %v697_v60 = vpop.f32.mrf.mxu2 }
  0xf4   : > { %v698_v61 = vadd.f32 %v697_v60, %v2796_v1  ;;  %v2833_v4 = vpop.f32.mrf.mxu0  ;;  %v2835_v5 = vpop.f32.mrf.mxu1 }
  0xf5   : > { %v762_v12 = vpop.f32.mrf.mxu3 }
  0xf6   : > { %v2837_v15 = vadd.f32 %v762_v12, %v698_v61  ;;  %v1201_v12 = vld [vmem:[#allocation9 + $0x160] sm:$0xff] }
  0xf7   : > { %829 = vmatmul.f32.gmra.mxu0 %v2667_v40  ;;  %894 = vmatmul.f32.gmra.mxu1 %v2670_v41 }
  0xf8   : > { %959 = vmatmul.f32.gmra.mxu2 %v2667_v40  ;;  %v1235_v40 = vld [vmem:[#allocation9 + $0x270] sm:$0xff]  ;;  %1359 = vmatpush.msra.mxu1 %v1201_v12 }
  0xf9   : > { %1024 = vmatmul.f32.gmra.mxu3 %v2670_v41  ;;  %v1267_v41 = vld [vmem:[#allocation9 + $0x370] sm:$0xff]  ;;  %1423 = vmatpush.msra.mxu2 %v1235_v40 }
  0xfa   : > { %1488 = vmatpush.msra.mxu3 %v1267_v41  ;;  %v1199_v40 = vld [vmem:[#allocation9 + $0x150] sm:$0xff] }
  0xfb   : > { %v700_v18 = vpop.f32.mrf.mxu2  ;;  %1360 = vmatpush.msra.mxu1 %v1199_v40  ;;  %v1163_v12 = vld [vmem:[#allocation9 + $0x30] sm:$0xff]  ;;  %v1193_v40 = vld [vmem:[#allocation9 + $0x120] sm:$0xff] }
  0xfc   : > { %v701_v0 = vadd.f32 %v700_v18, %v2796_v1  ;;  %v2844_v19 = vpop.f32.mrf.mxu0  ;;  %v2846_v20 = vpop.f32.mrf.mxu1 }
  0xfd   : > { %v765_v31 = vpop.f32.mrf.mxu3 }
  0xfe   : > { %v2848_v36 = vadd.f32 %v765_v31, %v701_v0  ;;  %v1167_v31 = vld [vmem:[#allocation9 + $0x50] sm:$0xff] }
  0xff   : > { %832 = vmatmul.f32.gmra.mxu0 %v2677_v46  ;;  %897 = vmatmul.f32.gmra.mxu1 %v2680_v47 }
 0x100   : > { %962 = vmatmul.f32.gmra.mxu2 %v2677_v46  ;;  %v1233_v46 = vld [vmem:[#allocation9 + $0x260] sm:$0xff]  ;;  %1295 = vmatpush.msra.mxu0 %v1167_v31 }
 0x101   : > { %1027 = vmatmul.f32.gmra.mxu3 %v2680_v47  ;;  %v1265_v47 = vld [vmem:[#allocation9 + $0x360] sm:$0xff]  ;;  %1424 = vmatpush.msra.mxu2 %v1233_v46 }
 0x102   : > { %1489 = vmatpush.msra.mxu3 %v1265_v47  ;;  %v1197_v46 = vld [vmem:[#allocation9 + $0x140] sm:$0xff] }
 0x103   : > { %v703_v13 = vpop.f32.mrf.mxu2  ;;  %1361 = vmatpush.msra.mxu1 %v1197_v46  ;;  %v1161_v31 = vld [vmem:[#allocation9 + $0x20] sm:$0xff]  ;;  %v1159_v46 = vld [vmem:[#allocation9 + $0x10] sm:$0xff] }
 0x104   : > { %v704_v14 = vadd.f32 %v703_v13, %v2796_v1  ;;  %v2855_v42 = vpop.f32.mrf.mxu0  ;;  %v2857_v43 = vpop.f32.mrf.mxu1 }
 0x105   : > { %v768_v54 = vpop.f32.mrf.mxu3 }
 0x106   : > { %v2859_v27 = vadd.f32 %v768_v54, %v704_v14  ;;  %v1165_v54 = vld [vmem:[#allocation9 + $0x40] sm:$0xff] }
 0x107   : > { %835 = vmatmul.f32.gmra.mxu0 %v2687_v52  ;;  %900 = vmatmul.f32.gmra.mxu1 %v2690_v53 }
 0x108   : > { %965 = vmatmul.f32.gmra.mxu2 %v2687_v52  ;;  %v1231_v52 = vld [vmem:[#allocation9 + $0x250] sm:$0xff]  ;;  %1296 = vmatpush.msra.mxu0 %v1165_v54 }
 0x109   : > { %1030 = vmatmul.f32.gmra.mxu3 %v2690_v53  ;;  %v1263_v53 = vld [vmem:[#allocation9 + $0x350] sm:$0xff]  ;;  %1425 = vmatpush.msra.mxu2 %v1231_v52 }
 0x10a   : > { %1490 = vmatpush.msra.mxu3 %v1263_v53  ;;  %1297 = vmatpush.msra.mxu0 %v1163_v12  ;;  %v1157_v12 = vld [vmem:[#allocation9] sm:$0xff] }
 0x10b   : > { %v706_v28 = vpop.f32.mrf.mxu2 }
 0x10c   : > { %v707_v60 = vadd.f32 %v706_v28, %v2796_v1  ;;  %v2866_v61 = vpop.f32.mrf.mxu0  ;;  %v2868_v6 = vpop.f32.mrf.mxu1  ;;  %1298 = vmatpush.msra.mxu0 %v1161_v31 }
 0x10d   : > { %v771_v34 = vpop.f32.mrf.mxu3 }
 0x10e   : > { %v2870_v35 = vadd.f32 %v771_v34, %v707_v60  ;;  %v1195_v34 = vld [vmem:[#allocation9 + $0x130] sm:$0xff]  ;;  %1299 = vmatpush.msra.mxu0 %v1159_v46 }
 0x10f   : > { %838 = vmatmul.f32.gmra.mxu0 %v2697_v58  ;;  %903 = vmatmul.f32.gmra.mxu1 %v2700_v59 }
 0x110   : > { %968 = vmatmul.f32.gmra.mxu2 %v2697_v58  ;;  %v1229_v58 = vld [vmem:[#allocation9 + $0x240] sm:$0xff]  ;;  %1362 = vmatpush.msra.mxu1 %v1195_v34 }
 0x111   : > { %1033 = vmatmul.f32.gmra.mxu3 %v2700_v59  ;;  %v1261_v59 = vld [vmem:[#allocation9 + $0x340] sm:$0xff]  ;;  %1426 = vmatpush.msra.mxu2 %v1229_v58 }
 0x112   : > { %1491 = vmatpush.msra.mxu3 %v1261_v59  ;;  %1363 = vmatpush.msra.mxu1 %v1193_v40  ;;  %v1253_v34 = vld [vmem:[#allocation9 + $0x300] sm:$0xff] }
 0x113   : > { %v709_v18 = vpop.f32.mrf.mxu2  ;;  %1300 = vmatpush.msra.mxu0 %v1157_v12  ;;  %v1220_v12 = vld [vmem:[#allocation9 + $0x1f8] sm:$0xff] }
 0x114   : > { %v710_v0 = vadd.f32 %v709_v18, %v2796_v1  ;;  %v2877_v21 = vpop.f32.mrf.mxu0  ;;  %v2879_v26 = vpop.f32.mrf.mxu1 }
 0x115   : > { %v774_v41 = vpop.f32.mrf.mxu3 }
 0x116   : > { %v2881_v13 = vadd.f32 %v774_v41, %v710_v0 }
 0x117   : > { %841 = vmatmul.f32.gmra.mxu0 %v2707_v2  ;;  %906 = vmatmul.f32.gmra.mxu1 %v2710_v3 }
 0x118   : > { %971 = vmatmul.f32.gmra.mxu2 %v2707_v2  ;;  %v1227_v2 = vld [vmem:[#allocation9 + $0x230] sm:$0xff] }
 0x119   : > { %1036 = vmatmul.f32.gmra.mxu3 %v2710_v3  ;;  %v1259_v3 = vld [vmem:[#allocation9 + $0x330] sm:$0xff]  ;;  %1427 = vmatpush.msra.mxu2 %v1227_v2 }
 0x11a   : > { %1492 = vmatpush.msra.mxu3 %v1259_v3  ;;  %v1191_v2 = vld [vmem:[#allocation9 + $0x110] sm:$0xff] }
 0x11b   : > { %v2887_v14 = vpop.f32.mrf.mxu2  ;;  %1364 = vmatpush.msra.mxu1 %v1191_v2  ;;  %v1188_v2 = vld [vmem:[#allocation9 + $0xf8] sm:$0xff] }
 0x11c   : > { %v2889_v50 = vpop.f32.mrf.mxu0  ;;  %v2891_v51 = vpop.f32.mrf.mxu1  ;;  %1545 = vmatpush.msrb.mxu0 %v1188_v2  ;;  %v1186_v2 = vld [vmem:[#allocation9 + $0xe8] sm:$0xff] }
 0x11d   : > { %v2893_v47 = vpop.f32.mrf.mxu3 }
 0x11e   : > { %1546 = vmatpush.msrb.mxu0 %v1186_v2 }
 0x11f   : > { %844 = vmatmul.f32.gmra.mxu0 %v2717_v8  ;;  %909 = vmatmul.f32.gmra.mxu1 %v2720_v9 }
 0x120   : > { %974 = vmatmul.f32.gmra.mxu2 %v2717_v8  ;;  %v1225_v8 = vld [vmem:[#allocation9 + $0x220] sm:$0xff] }
 0x121   : > { %1039 = vmatmul.f32.gmra.mxu3 %v2720_v9  ;;  %v1257_v9 = vld [vmem:[#allocation9 + $0x320] sm:$0xff]  ;;  %1428 = vmatpush.msra.mxu2 %v1225_v8 }
 0x122   : > { %1493 = vmatpush.msra.mxu3 %v1257_v9 }
 0x123   : > { %v2899_v28 = vpop.f32.mrf.mxu2 }
 0x124   : > { %v2901_v60 = vpop.f32.mrf.mxu0  ;;  %v2903_v7 = vpop.f32.mrf.mxu1 }
 0x125   : > { %v2905_v52 = vpop.f32.mrf.mxu3 }
 0x127   : > { %847 = vmatmul.f32.gmra.mxu0 %v2727_v16  ;;  %912 = vmatmul.f32.gmra.mxu1 %v2730_v17 }
 0x128   : > { %977 = vmatmul.f32.gmra.mxu2 %v2727_v16  ;;  %v1223_v16 = vld [vmem:[#allocation9 + $0x210] sm:$0xff] }
 0x129   : > { %1042 = vmatmul.f32.gmra.mxu3 %v2730_v17  ;;  %v1255_v17 = vld [vmem:[#allocation9 + $0x310] sm:$0xff]  ;;  %1429 = vmatpush.msra.mxu2 %v1223_v16 }
 0x12a   : > { %1494 = vmatpush.msra.mxu3 %v1255_v17 }
 0x12b   : > { %v2911_v53 = vpop.f32.mrf.mxu2 }
 0x12c   : > { %v2913_v18 = vpop.f32.mrf.mxu0  ;;  %v2915_v0 = vpop.f32.mrf.mxu1  ;;  %1495 = vmatpush.msra.mxu3 %v1253_v34 }
 0x12d   : > { %v2917_v41 = vpop.f32.mrf.mxu3 }
 0x12f   : > { %850 = vmatmul.f32.gmra.mxu0 %v2737_v22  ;;  %915 = vmatmul.f32.gmra.mxu1 %v2740_v23 }
 0x130   : > { %980 = vmatmul.f32.gmra.mxu2 %v2737_v22  ;;  %v1189_v22 = vld [vmem:[#allocation9 + $0x100] sm:$0xff] }
 0x131   : > { %1045 = vmatmul.f32.gmra.mxu3 %v2740_v23  ;;  %1365 = vmatpush.msra.mxu1 %v1189_v22  ;;  %v1221_v23 = vld [vmem:[#allocation9 + $0x200] sm:$0xff] }
 0x132   : > { %1430 = vmatpush.msra.mxu2 %v1221_v23  ;;  %v1282_v23 = vld [vmem:[#allocation9 + $0x3e8] sm:$0xff] }
 0x133   : > { %v2923_v58 = vpop.f32.mrf.mxu2  ;;  %1610 = vmatpush.msrb.mxu1 %v1220_v12  ;;  %v1218_v12 = vld [vmem:[#allocation9 + $0x1e8] sm:$0xff] }
 0x134   : > { %v2925_v59 = vpop.f32.mrf.mxu0  ;;  %v2927_v54 = vpop.f32.mrf.mxu1 }
 0x135   : > { %v2929_v3 = vpop.f32.mrf.mxu3  ;;  %1611 = vmatpush.msrb.mxu1 %v1218_v12 }
 0x137   : > { %853 = vmatmul.f32.gmra.mxu0 %v2747_v29  ;;  %918 = vmatmul.f32.gmra.mxu1 %v2750_v30 }
 0x138   : > { %983 = vmatmul.f32.gmra.mxu2 %v2747_v29  ;;  %v1252_v29 = vld [vmem:[#allocation9 + $0x2f8] sm:$0xff] }
 0x139   : > { %1048 = vmatmul.f32.gmra.mxu3 %v2750_v30  ;;  %1675 = vmatpush.msrb.mxu2 %v1252_v29  ;;  %v1284_v30 = vld [vmem:[#allocation9 + $0x3f8] sm:$0xff] }
 0x13a   : > { %1740 = vmatpush.msrb.mxu3 %v1284_v30 }
 0x13b   : > { %v2935_v8 = vpop.f32.mrf.mxu2 }
 0x13c   : > { %v2937_v9 = vpop.f32.mrf.mxu0  ;;  %v2939_v31 = vpop.f32.mrf.mxu1  ;;  %1741 = vmatpush.msrb.mxu3 %v1282_v23  ;;  %v1248_v23 = vld [vmem:[#allocation9 + $0x2d8] sm:$0xff] }
 0x13d   : > { %v2941_v40 = vpop.f32.mrf.mxu3 }
 0x13f   : > { %856 = vmatmul.f32.gmra.mxu0 %v2757_v32  ;;  %921 = vmatmul.f32.gmra.mxu1 %v2760_v33 }
 0x140   : > { %986 = vmatmul.f32.gmra.mxu2 %v2757_v32  ;;  %v2959_v32 = vperm.slane %v2790_v62, 0 }
 0x141   : > { %1051 = vmatmul.f32.gmra.mxu3 %v2760_v33  ;;  %v1250_v33 = vld [vmem:[#allocation9 + $0x2e8] sm:$0xff] }
 0x142   : > { %1676 = vmatpush.msrb.mxu2 %v1250_v33  ;;  %v2980_v33 = vperm.slane %v2790_v62, 2 }
 0x143   : > { %v2947_v16 = vpop.f32.mrf.mxu2 }
 0x144   : > { %v2949_v17 = vpop.f32.mrf.mxu0  ;;  %v2951_v46 = vpop.f32.mrf.mxu1  ;;  %1677 = vmatpush.msrb.mxu2 %v1248_v23 }
 0x145   : > { %3740 = vst [vmem:[#allocation17_spill] sm:$0xff] %v2951_v46  ;;  %v2953_v22 = vpop.f32.mrf.mxu3 }
 0x147   : > { %859 = vmatmul.f32.gmra.mxu0 %v2767_v38  ;;  %924 = vmatmul.f32.gmra.mxu1 %v2770_v39 }
 0x148   : > { %989 = vmatmul.f32.gmra.mxu2 %v2767_v38  ;;  %v559_v38 = vadd.f32 %v2786_v56, %v2959_v32  ;;  %v1280_v56 = vld [vmem:[#allocation9 + $0x3d8] sm:$0xff] }
 0x149   : > { %1054 = vmatmul.f32.gmra.mxu3 %v2770_v39 }
 0x14a   : > { %v2976_v39 = vadd.f32 %v2788_v57, %v559_v38  ;;  %1742 = vmatpush.msrb.mxu3 %v1280_v56  ;;  %v562_v57 = vadd.f32 %v2800_v10, %v2959_v32  ;;  %v2998_v56 = vperm.slane %v2790_v62, 3  ;;  %v1214_v62 = vld [vmem:[#allocation9 + $0x1c8] sm:$0xff] }
 0x14b   : > { %v2962_v34 = vpop.f32.mrf.mxu2 }
 0x14c   : > { %3741 = vst [vmem:[#allocation18_spill] sm:$0xff] %v2962_v34  ;;  %v2964_v29 = vpop.f32.mrf.mxu0  ;;  %v2966_v30 = vpop.f32.mrf.mxu1  ;;  %v3001_v10 = vadd.f32 %v2802_v11, %v562_v57  ;;  %v565_v11 = vadd.f32 %v2811_v24, %v2959_v32  ;;  %v3650_v57 = vmax.f32 %v2815_v37, 0.0 }
 0x14d   : > { %3742 = vst [vmem:[#allocation19_spill] sm:$0xff] %v2964_v29  ;;  %v2970_v46 = vpop.f32.mrf.mxu3  ;;  %v1184_v29 = vld [vmem:[#allocation9 + $0xd8] sm:$0xff] }
 0x14e   : > { %3743 = vst [vmem:[#allocation20_spill] sm:$0xff] %v2966_v30  ;;  %1547 = vmatpush.msrb.mxu0 %v1184_v29  ;;  %v1278_v29 = vld [vmem:[#allocation9 + $0x3c8] sm:$0xff]  ;;  %v3022_v24 = vadd.f32 %v2813_v25, %v565_v11  ;;  %v1212_v25 = vld [vmem:[#allocation9 + $0x1b8] sm:$0xff] }
 0x14f   : > { %3744 = vst [vmem:[#allocation21_spill] sm:$0xff] %v2970_v46  ;;  %862 = vmatmul.f32.gmra.mxu0 %v2777_v48  ;;  %927 = vmatmul.f32.gmra.mxu1 %v2780_v49  ;;  %v1216_v46 = vld [vmem:[#allocation9 + $0x1d8] sm:$0xff] }
 0x150   : > { %992 = vmatmul.f32.gmra.mxu2 %v2777_v48  ;;  %v3646_v48 = vmax.f32 %v2976_v39, 0.0  ;;  %1612 = vmatpush.msrb.mxu1 %v1216_v46  ;;  %v3657_v11 = vmax.f32 %v3022_v24, 0.0 }
 0x151   : > { %1057 = vmatmul.f32.gmra.mxu3 %v2780_v49  ;;  %v3645_v49 = vmax.f32 %v2804_v63, 0.0 }
 0x152   : > { %1743 = vmatpush.msrb.mxu3 %v1278_v29  ;;  %1613 = vmatpush.msrb.mxu1 %v1214_v62 }
 0x153   : > { %v2982_v30 = vpop.f32.mrf.mxu2 }
 0x154   : > { %3745 = vst [vmem:[#allocation22_spill] sm:$0xff] %v2982_v30  ;;  %v818_v2 = vpop.f32.mrf.mxu0  ;;  %v883_v12 = vpop.f32.mrf.mxu1  ;;  %v1246_v30 = vld [vmem:[#allocation9 + $0x2c8] sm:$0xff]  ;;  %1614 = vmatpush.msrb.mxu1 %v1212_v25 }
 0x155   : > { %v2988_v38 = vpop.f32.mrf.mxu3  ;;  %v819_v34 = vadd.f32 %v818_v2, %v2980_v33  ;;  %1678 = vmatpush.msrb.mxu2 %v1246_v30 }
 0x156   : > { %3746 = vst [vmem:[#allocation23_spill] sm:$0xff] %v2988_v38 }
 0x157   : > { %v2991_v23 = vadd.f32 %v883_v12, %v819_v34  ;;  %1301 = vmatmul.f32.vlgmr.msra.gmra.mxu0 %v3646_v48  ;;  %1366 = vmatmul.f32.vlgmr.msra.gmra.mxu1 %v3645_v49  ;;  %v1182_v49 = vld [vmem:[#allocation9 + $0xc8] sm:$0xff]  ;;  %v3652_v48 = vmax.f32 %v3001_v10, 0.0 }
 0x158   : > { %1548 = vmatpush.msrb.mxu0 %v1182_v49 }
 0x159   : > { %3747 = vst [vmem:[#allocation24_spill] sm:$0xff] %v2991_v23  ;;  %v3648_v38 = vmax.f32 %v2991_v23, 0.0  ;;  %v1244_v23 = vld [vmem:[#allocation9 + $0x2b8] sm:$0xff] }
 0x15a   : > { %1679 = vmatpush.msrb.mxu2 %v1244_v23 }
 0x15b   : > { %v948_v46 = vpop.f32.mrf.mxu2  ;;  %1431 = vmatmul.f32.vlgmr.msra.gmra.mxu2 %v3648_v38 }
 0x15c   : > { %v949_v34 = vadd.f32 %v948_v46, %v2998_v56  ;;  %v821_v2 = vpop.f32.mrf.mxu0  ;;  %v886_v12 = vpop.f32.mrf.mxu1 }
 0x15d   : > { %v822_v30 = vadd.f32 %v821_v2, %v2980_v33  ;;  %v1013_v63 = vpop.f32.mrf.mxu3 }
 0x15e   : > { %v3012_v38 = vadd.f32 %v1013_v63, %v949_v34  ;;  %v1276_v63 = vld [vmem:[#allocation9 + $0x3b8] sm:$0xff] }
 0x15f   : > { %v3014_v29 = vadd.f32 %v886_v12, %v822_v30  ;;  %1304 = vmatmul.f32.gmra.mxu0 %v3652_v48  ;;  %1369 = vmatmul.f32.gmra.mxu1 %v3650_v57  ;;  %v1180_v30 = vld [vmem:[#allocation9 + $0xb8] sm:$0xff]  ;;  %v568_v57 = vadd.f32 %v2822_v44, %v2959_v32 }
 0x160   : > { %v3651_v46 = vmax.f32 %v3012_v38, 0.0  ;;  %1744 = vmatpush.msrb.mxu3 %v1276_v63  ;;  %1549 = vmatpush.msrb.mxu0 %v1180_v30 }
 0x161   : > { %3748 = vst [vmem:[#allocation25_spill] sm:$0xff] %v3014_v29  ;;  %v3653_v2 = vmax.f32 %v3014_v29, 0.0  ;;  %v3045_v44 = vadd.f32 %v2824_v45, %v568_v57  ;;  %v1242_v29 = vld [vmem:[#allocation9 + $0x2a8] sm:$0xff] }
 0x162   : > { %1496 = vmatmul.f32.vlgmr.msra.gmra.mxu3 %v3651_v46  ;;  %v3655_v46 = vmax.f32 %v2826_v55, 0.0  ;;  %1680 = vmatpush.msrb.mxu2 %v1242_v29  ;;  %v1210_v45 = vld [vmem:[#allocation9 + $0x1a8] sm:$0xff] }
 0x163   : > { %v951_v49 = vpop.f32.mrf.mxu2  ;;  %1434 = vmatmul.f32.gmra.mxu2 %v3653_v2  ;;  %v3662_v57 = vmax.f32 %v3045_v44, 0.0  ;;  %1615 = vmatpush.msrb.mxu1 %v1210_v45 }
 0x164   : > { %v952_v34 = vadd.f32 %v951_v49, %v2998_v56  ;;  %v824_v12 = vpop.f32.mrf.mxu0  ;;  %v889_v62 = vpop.f32.mrf.mxu1 }
 0x165   : > { %v825_v23 = vadd.f32 %v824_v12, %v2980_v33  ;;  %v1016_v48 = vpop.f32.mrf.mxu3 }
 0x166   : > { %v3035_v2 = vadd.f32 %v1016_v48, %v952_v34  ;;  %v1274_v48 = vld [vmem:[#allocation9 + $0x3a8] sm:$0xff] }
 0x167   : > { %v3037_v63 = vadd.f32 %v889_v62, %v825_v23  ;;  %1307 = vmatmul.f32.gmra.mxu0 %v3657_v11  ;;  %1372 = vmatmul.f32.gmra.mxu1 %v3655_v46  ;;  %v1178_v23 = vld [vmem:[#allocation9 + $0xa8] sm:$0xff]  ;;  %v571_v46 = vadd.f32 %v2833_v4, %v2959_v32 }
 0x168   : > { %v3656_v49 = vmax.f32 %v3035_v2, 0.0  ;;  %1745 = vmatpush.msrb.mxu3 %v1274_v48  ;;  %1550 = vmatpush.msrb.mxu0 %v1178_v23 }
 0x169   : > { %3749 = vst [vmem:[#allocation26_spill] sm:$0xff] %v3037_v63  ;;  %v3658_v12 = vmax.f32 %v3037_v63, 0.0  ;;  %v3068_v4 = vadd.f32 %v2835_v5, %v571_v46  ;;  %v1240_v63 = vld [vmem:[#allocation9 + $0x298] sm:$0xff] }
 0x16a   : > { %1499 = vmatmul.f32.gmra.mxu3 %v3656_v49  ;;  %v3660_v49 = vmax.f32 %v2837_v15, 0.0  ;;  %1681 = vmatpush.msrb.mxu2 %v1240_v63  ;;  %v1208_v5 = vld [vmem:[#allocation9 + $0x198] sm:$0xff] }
 0x16b   : > { %v954_v34 = vpop.f32.mrf.mxu2  ;;  %1437 = vmatmul.f32.gmra.mxu2 %v3658_v12  ;;  %v3667_v46 = vmax.f32 %v3068_v4, 0.0  ;;  %1616 = vmatpush.msrb.mxu1 %v1208_v5 }
 0x16c   : > { %v955_v62 = vadd.f32 %v954_v34, %v2998_v56  ;;  %v827_v30 = vpop.f32.mrf.mxu0  ;;  %v892_v25 = vpop.f32.mrf.mxu1 }
 0x16d   : > { %v828_v29 = vadd.f32 %v827_v30, %v2980_v33  ;;  %v1019_v11 = vpop.f32.mrf.mxu3 }
 0x16e   : > { %v3058_v12 = vadd.f32 %v1019_v11, %v955_v62  ;;  %v1272_v11 = vld [vmem:[#allocation9 + $0x398] sm:$0xff] }
 0x16f   : > { %v3060_v48 = vadd.f32 %v892_v25, %v828_v29  ;;  %1310 = vmatmul.f32.gmra.mxu0 %v3662_v57  ;;  %1375 = vmatmul.f32.gmra.mxu1 %v3660_v49  ;;  %v1176_v29 = vld [vmem:[#allocation9 + $0x98] sm:$0xff]  ;;  %v574_v49 = vadd.f32 %v2844_v19, %v2959_v32 }
 0x170   : > { %v3661_v34 = vmax.f32 %v3058_v12, 0.0  ;;  %1746 = vmatpush.msrb.mxu3 %v1272_v11  ;;  %1551 = vmatpush.msrb.mxu0 %v1176_v29 }
 0x171   : > { %3750 = vst [vmem:[#allocation27_spill] sm:$0xff] %v3060_v48  ;;  %v3663_v30 = vmax.f32 %v3060_v48, 0.0  ;;  %v3091_v19 = vadd.f32 %v2846_v20, %v574_v49  ;;  %v1238_v48 = vld [vmem:[#allocation9 + $0x288] sm:$0xff] }
 0x172   : > { %1502 = vmatmul.f32.gmra.mxu3 %v3661_v34  ;;  %v3665_v34 = vmax.f32 %v2848_v36, 0.0  ;;  %1682 = vmatpush.msrb.mxu2 %v1238_v48  ;;  %v1206_v20 = vld [vmem:[#allocation9 + $0x188] sm:$0xff] }
 0x173   : > { %v957_v62 = vpop.f32.mrf.mxu2  ;;  %1440 = vmatmul.f32.gmra.mxu2 %v3663_v30  ;;  %v3672_v49 = vmax.f32 %v3091_v19, 0.0  ;;  %1617 = vmatpush.msrb.mxu1 %v1206_v20 }
 0x174   : > { %v958_v25 = vadd.f32 %v957_v62, %v2998_v56  ;;  %v830_v23 = vpop.f32.mrf.mxu0  ;;  %v895_v45 = vpop.f32.mrf.mxu1 }
 0x175   : > { %v831_v63 = vadd.f32 %v830_v23, %v2980_v33  ;;  %v1022_v57 = vpop.f32.mrf.mxu3 }
 0x176   : > { %v3081_v30 = vadd.f32 %v1022_v57, %v958_v25  ;;  %v1270_v57 = vld [vmem:[#allocation9 + $0x388] sm:$0xff] }
 0x177   : > { %v3083_v11 = vadd.f32 %v895_v45, %v831_v63  ;;  %1313 = vmatmul.f32.gmra.mxu0 %v3667_v46  ;;  %1378 = vmatmul.f32.gmra.mxu1 %v3665_v34  ;;  %v1174_v63 = vld [vmem:[#allocation9 + $0x88] sm:$0xff]  ;;  %v577_v34 = vadd.f32 %v2855_v42, %v2959_v32 }
 0x178   : > { %v3666_v62 = vmax.f32 %v3081_v30, 0.0  ;;  %1747 = vmatpush.msrb.mxu3 %v1270_v57  ;;  %1552 = vmatpush.msrb.mxu0 %v1174_v63 }
 0x179   : > { %3751 = vst [vmem:[#allocation28_spill] sm:$0xff] %v3083_v11  ;;  %v3668_v23 = vmax.f32 %v3083_v11, 0.0  ;;  %v3114_v42 = vadd.f32 %v2857_v43, %v577_v34  ;;  %v1236_v11 = vld [vmem:[#allocation9 + $0x278] sm:$0xff] }
 0x17a   : > { %1505 = vmatmul.f32.gmra.mxu3 %v3666_v62  ;;  %v3670_v62 = vmax.f32 %v2859_v27, 0.0  ;;  %1683 = vmatpush.msrb.mxu2 %v1236_v11  ;;  %v1204_v43 = vld [vmem:[#allocation9 + $0x178] sm:$0xff] }
 0x17b   : > { %v960_v25 = vpop.f32.mrf.mxu2  ;;  %1443 = vmatmul.f32.gmra.mxu2 %v3668_v23  ;;  %v3677_v34 = vmax.f32 %v3114_v42, 0.0  ;;  %1618 = vmatpush.msrb.mxu1 %v1204_v43  ;;  %v1170_v43 = vld [vmem:[#allocation9 + $0x68] sm:$0xff] }
 0x17c   : > { %v961_v45 = vadd.f32 %v960_v25, %v2998_v56  ;;  %v833_v29 = vpop.f32.mrf.mxu0  ;;  %v898_v5 = vpop.f32.mrf.mxu1 }
 0x17d   : > { %v834_v48 = vadd.f32 %v833_v29, %v2980_v33  ;;  %v1025_v46 = vpop.f32.mrf.mxu3 }
 0x17e   : > { %v3104_v23 = vadd.f32 %v1025_v46, %v961_v45  ;;  %v1268_v46 = vld [vmem:[#allocation9 + $0x378] sm:$0xff] }
 0x17f   : > { %v3106_v57 = vadd.f32 %v898_v5, %v834_v48  ;;  %1316 = vmatmul.f32.gmra.mxu0 %v3672_v49  ;;  %1381 = vmatmul.f32.gmra.mxu1 %v3670_v62  ;;  %v1172_v48 = vld [vmem:[#allocation9 + $0x78] sm:$0xff]  ;;  %v580_v62 = vadd.f32 %v2866_v61, %v2959_v32 }
 0x180   : > { %v3671_v25 = vmax.f32 %v3104_v23, 0.0  ;;  %1748 = vmatpush.msrb.mxu3 %v1268_v46  ;;  %1553 = vmatpush.msrb.mxu0 %v1172_v48 }
 0x181   : > { %3752 = vst [vmem:[#allocation29_spill] sm:$0xff] %v3106_v57  ;;  %v3673_v29 = vmax.f32 %v3106_v57, 0.0  ;;  %v3137_v61 = vadd.f32 %v2868_v6, %v580_v62  ;;  %v1234_v57 = vld [vmem:[#allocation9 + $0x268] sm:$0xff] }
 0x182   : > { %1508 = vmatmul.f32.gmra.mxu3 %v3671_v25  ;;  %v3675_v25 = vmax.f32 %v2870_v35, 0.0  ;;  %1684 = vmatpush.msrb.mxu2 %v1234_v57  ;;  %v713_v57 = vadd.f32 %v2887_v14, %v2796_v1 }
 0x183   : > { %v963_v45 = vpop.f32.mrf.mxu2  ;;  %1446 = vmatmul.f32.gmra.mxu2 %v3673_v29  ;;  %1554 = vmatpush.msrb.mxu0 %v1170_v43 }
 0x184   : > { %v964_v5 = vadd.f32 %v963_v45, %v2998_v56  ;;  %v836_v63 = vpop.f32.mrf.mxu0  ;;  %v901_v20 = vpop.f32.mrf.mxu1 }
 0x185   : > { %v837_v11 = vadd.f32 %v836_v63, %v2980_v33  ;;  %v1028_v49 = vpop.f32.mrf.mxu3 }
 0x186   : > { %v3127_v29 = vadd.f32 %v1028_v49, %v964_v5  ;;  %v1266_v49 = vld [vmem:[#allocation9 + $0x368] sm:$0xff] }
 0x187   : > { %v3129_v46 = vadd.f32 %v901_v20, %v837_v11  ;;  %1319 = vmatmul.f32.gmra.mxu0 %v3677_v34  ;;  %1384 = vmatmul.f32.gmra.mxu1 %v3675_v25  ;;  %v583_v20 = vadd.f32 %v2877_v21, %v2959_v32  ;;  %v1202_v11 = vld [vmem:[#allocation9 + $0x168] sm:$0xff]  ;;  %v3681_v25 = vmax.f32 %v3137_v61, 0.0 }
 0x188   : > { %v3676_v45 = vmax.f32 %v3127_v29, 0.0  ;;  %1749 = vmatpush.msrb.mxu3 %v1266_v49  ;;  %1619 = vmatpush.msrb.mxu1 %v1202_v11  ;;  %v1168_v11 = vld [vmem:[#allocation9 + $0x58] sm:$0xff] }
 0x189   : > { %v3678_v63 = vmax.f32 %v3129_v46, 0.0  ;;  %1555 = vmatpush.msrb.mxu0 %v1168_v11  ;;  %v1166_v11 = vld [vmem:[#allocation9 + $0x48] sm:$0xff] }
 0x18a   : > { %1511 = vmatmul.f32.gmra.mxu3 %v3676_v45  ;;  %v3679_v45 = vmax.f32 %v2881_v13, 0.0 }
 0x18b   : > { %v966_v5 = vpop.f32.mrf.mxu2  ;;  %1449 = vmatmul.f32.gmra.mxu2 %v3678_v63  ;;  %1556 = vmatpush.msrb.mxu0 %v1166_v11 }
 0x18c   : > { %v967_v48 = vadd.f32 %v966_v5, %v2998_v56  ;;  %v839_v6 = vpop.f32.mrf.mxu0  ;;  %v904_v62 = vpop.f32.mrf.mxu1  ;;  %v3161_v5 = vadd.f32 %v2879_v26, %v583_v20 }
 0x18d   : > { %v840_v34 = vadd.f32 %v839_v6, %v2980_v33  ;;  %v1031_v63 = vpop.f32.mrf.mxu3  ;;  %v3165_v6 = vadd.f32 %v2893_v47, %v713_v57  ;;  %v1200_v57 = vld [vmem:[#allocation9 + $0x158] sm:$0xff] }
 0x18e   : > { %v3152_v49 = vadd.f32 %v1031_v63, %v967_v48  ;;  %v1232_v63 = vld [vmem:[#allocation9 + $0x258] sm:$0xff]  ;;  %v3691_v26 = vmax.f32 %v3161_v5, 0.0  ;;  %1620 = vmatpush.msrb.mxu1 %v1200_v57  ;;  %v1198_v57 = vld [vmem:[#allocation9 + $0x148] sm:$0xff] }
 0x18f   : > { %v3154_v21 = vadd.f32 %v904_v62, %v840_v34  ;;  %1322 = vmatmul.f32.gmra.mxu0 %v3681_v25  ;;  %1387 = vmatmul.f32.gmra.mxu1 %v3679_v45  ;;  %v1264_v34 = vld [vmem:[#allocation9 + $0x358] sm:$0xff]  ;;  %v586_v45 = vadd.f32 %v2889_v50, %v2959_v32 }
 0x190   : > { %v3680_v14 = vmax.f32 %v3152_v49, 0.0  ;;  %1685 = vmatpush.msrb.mxu2 %v1232_v63  ;;  %1750 = vmatpush.msrb.mxu3 %v1264_v34  ;;  %v716_v63 = vadd.f32 %v2899_v28, %v2796_v1 }
 0x191   : > { %3753 = vst [vmem:[#allocation30_spill] sm:$0xff] %v3154_v21  ;;  %v3682_v43 = vmax.f32 %v3154_v21, 0.0  ;;  %v3190_v21 = vadd.f32 %v2891_v51, %v586_v45  ;;  %v589_v51 = vadd.f32 %v2901_v60, %v2959_v32  ;;  %1621 = vmatpush.msrb.mxu1 %v1198_v57  ;;  %v1164_v57 = vld [vmem:[#allocation9 + $0x38] sm:$0xff] }
 0x192   : > { %1514 = vmatmul.f32.gmra.mxu3 %v3680_v14  ;;  %v3685_v14 = vmax.f32 %v3165_v6, 0.0  ;;  %v3193_v28 = vadd.f32 %v2905_v52, %v716_v63  ;;  %1557 = vmatpush.msrb.mxu0 %v1164_v57  ;;  %v1162_v57 = vld [vmem:[#allocation9 + $0x28] sm:$0xff] }
 0x193   : > { %v969_v48 = vpop.f32.mrf.mxu2  ;;  %1452 = vmatmul.f32.gmra.mxu2 %v3682_v43  ;;  %v3689_v63 = vmax.f32 %v3190_v21, 0.0 }
 0x194   : > { %v970_v20 = vadd.f32 %v969_v48, %v2998_v56  ;;  %v842_v62 = vpop.f32.mrf.mxu0  ;;  %v907_v47 = vpop.f32.mrf.mxu1  ;;  %1558 = vmatpush.msrb.mxu0 %v1162_v57 }
 0x195   : > { %v843_v25 = vadd.f32 %v842_v62, %v2980_v33  ;;  %v1034_v43 = vpop.f32.mrf.mxu3 }
 0x196   : > { %v3180_v34 = vadd.f32 %v1034_v43, %v970_v20  ;;  %v1230_v43 = vld [vmem:[#allocation9 + $0x248] sm:$0xff] }
 0x197   : > { %v3182_v48 = vadd.f32 %v907_v47, %v843_v25  ;;  %1325 = vmatmul.f32.gmra.mxu0 %v3691_v26  ;;  %1390 = vmatmul.f32.gmra.mxu1 %v3685_v14  ;;  %v1262_v25 = vld [vmem:[#allocation9 + $0x348] sm:$0xff] }
 0x198   : > { %v3684_v50 = vmax.f32 %v3180_v34, 0.0  ;;  %1686 = vmatpush.msrb.mxu2 %v1230_v43  ;;  %1751 = vmatpush.msrb.mxu3 %v1262_v25  ;;  %v719_v43 = vadd.f32 %v2911_v53, %v2796_v1 }
 0x199   : > { %v3686_v62 = vmax.f32 %v3182_v48, 0.0 }
 0x19a   : > { %1517 = vmatmul.f32.gmra.mxu3 %v3684_v50  ;;  %v3687_v50 = vmax.f32 %v3193_v28, 0.0 }
 0x19b   : > { %v972_v20 = vpop.f32.mrf.mxu2  ;;  %1455 = vmatmul.f32.gmra.mxu2 %v3686_v62 }
 0x19c   : > { %v973_v45 = vadd.f32 %v972_v20, %v2998_v56  ;;  %v845_v52 = vpop.f32.mrf.mxu0  ;;  %v910_v47 = vpop.f32.mrf.mxu1  ;;  %v3217_v20 = vadd.f32 %v2903_v7, %v589_v51 }
 0x19d   : > { %v846_v14 = vadd.f32 %v845_v52, %v2980_v33  ;;  %v1037_v62 = vpop.f32.mrf.mxu3  ;;  %v3221_v52 = vadd.f32 %v2917_v41, %v719_v43  ;;  %v1196_v43 = vld [vmem:[#allocation9 + $0x138] sm:$0xff] }
 0x19e   : > { %v3208_v25 = vadd.f32 %v1037_v62, %v973_v45  ;;  %v1228_v62 = vld [vmem:[#allocation9 + $0x238] sm:$0xff]  ;;  %v3699_v7 = vmax.f32 %v3217_v20, 0.0  ;;  %1622 = vmatpush.msrb.mxu1 %v1196_v43  ;;  %v1194_v43 = vld [vmem:[#allocation9 + $0x128] sm:$0xff] }
 0x19f   : > { %v3210_v60 = vadd.f32 %v910_v47, %v846_v14  ;;  %1328 = vmatmul.f32.gmra.mxu0 %v3689_v63  ;;  %1393 = vmatmul.f32.gmra.mxu1 %v3687_v50  ;;  %v1260_v14 = vld [vmem:[#allocation9 + $0x338] sm:$0xff]  ;;  %v592_v50 = vadd.f32 %v2913_v18, %v2959_v32 }
 0x1a0   : > { %v3688_v53 = vmax.f32 %v3208_v25, 0.0  ;;  %1687 = vmatpush.msrb.mxu2 %v1228_v62  ;;  %1752 = vmatpush.msrb.mxu3 %v1260_v14  ;;  %v722_v62 = vadd.f32 %v2923_v58, %v2796_v1 }
 0x1a1   : > { %v3690_v11 = vmax.f32 %v3210_v60, 0.0  ;;  %v3246_v26 = vadd.f32 %v2915_v0, %v592_v50  ;;  %v595_v0 = vadd.f32 %v2925_v59, %v2959_v32  ;;  %1623 = vmatpush.msrb.mxu1 %v1194_v43  ;;  %v1160_v43 = vld [vmem:[#allocation9 + $0x18] sm:$0xff] }
 0x1a2   : > { %1520 = vmatmul.f32.gmra.mxu3 %v3688_v53  ;;  %v3693_v53 = vmax.f32 %v3221_v52, 0.0  ;;  %v3249_v58 = vadd.f32 %v2929_v3, %v722_v62  ;;  %1559 = vmatpush.msrb.mxu0 %v1160_v43 }
 0x1a3   : > { %v975_v45 = vpop.f32.mrf.mxu2  ;;  %1458 = vmatmul.f32.gmra.mxu2 %v3690_v11  ;;  %v3697_v62 = vmax.f32 %v3246_v26, 0.0 }
 0x1a4   : > { %v976_v51 = vadd.f32 %v975_v45, %v2998_v56  ;;  %v848_v47 = vpop.f32.mrf.mxu0  ;;  %v913_v41 = vpop.f32.mrf.mxu1 }
 0x1a5   : > { %v849_v63 = vadd.f32 %v848_v47, %v2980_v33  ;;  %v1040_v11 = vpop.f32.mrf.mxu3 }
 0x1a6   : > { %v3236_v14 = vadd.f32 %v1040_v11, %v976_v51  ;;  %v1226_v11 = vld [vmem:[#allocation9 + $0x228] sm:$0xff] }
 0x1a7   : > { %v3238_v45 = vadd.f32 %v913_v41, %v849_v63  ;;  %1331 = vmatmul.f32.gmra.mxu0 %v3699_v7  ;;  %1396 = vmatmul.f32.gmra.mxu1 %v3693_v53  ;;  %v1258_v63 = vld [vmem:[#allocation9 + $0x328] sm:$0xff] }
 0x1a8   : > { %v3692_v18 = vmax.f32 %v3236_v14, 0.0  ;;  %1688 = vmatpush.msrb.mxu2 %v1226_v11  ;;  %1753 = vmatpush.msrb.mxu3 %v1258_v63  ;;  %v725_v11 = vadd.f32 %v2935_v8, %v2796_v1  ;;  %v1190_v7 = vld [vmem:[#allocation9 + $0x108] sm:$0xff] }
 0x1a9   : > { %v3694_v47 = vmax.f32 %v3238_v45, 0.0 }
 0x1aa   : > { %1523 = vmatmul.f32.gmra.mxu3 %v3692_v18  ;;  %v3695_v18 = vmax.f32 %v3249_v58, 0.0 }
 0x1ab   : > { %v978_v51 = vpop.f32.mrf.mxu2  ;;  %1461 = vmatmul.f32.gmra.mxu2 %v3694_v47 }
 0x1ac   : > { %v979_v50 = vadd.f32 %v978_v51, %v2998_v56  ;;  %v851_v3 = vpop.f32.mrf.mxu0  ;;  %v916_v41 = vpop.f32.mrf.mxu1  ;;  %v3273_v51 = vadd.f32 %v2927_v54, %v595_v0 }
 0x1ad   : > { %v852_v53 = vadd.f32 %v851_v3, %v2980_v33  ;;  %v1043_v47 = vpop.f32.mrf.mxu3  ;;  %v3277_v3 = vadd.f32 %v2941_v40, %v725_v11  ;;  %v1192_v11 = vld [vmem:[#allocation9 + $0x118] sm:$0xff] }
 0x1ae   : > { %v3264_v63 = vadd.f32 %v1043_v47, %v979_v50  ;;  %v1224_v47 = vld [vmem:[#allocation9 + $0x218] sm:$0xff]  ;;  %1624 = vmatpush.msrb.mxu1 %v1192_v11  ;;  %v3757_v11 = vld [vmem:[#allocation18_spill] sm:$0xff] }
 0x1af   : > { %v3266_v59 = vadd.f32 %v916_v41, %v852_v53  ;;  %1334 = vmatmul.f32.gmra.mxu0 %v3697_v62  ;;  %1399 = vmatmul.f32.gmra.mxu1 %v3695_v18  ;;  %v1256_v53 = vld [vmem:[#allocation9 + $0x318] sm:$0xff]  ;;  %v598_v18 = vadd.f32 %v2937_v9, %v2959_v32 }
 0x1b0   : > { %v3696_v8 = vmax.f32 %v3264_v63, 0.0  ;;  %1689 = vmatpush.msrb.mxu2 %v1224_v47  ;;  %1754 = vmatpush.msrb.mxu3 %v1256_v53  ;;  %v728_v47 = vadd.f32 %v2947_v16, %v2796_v1  ;;  %v1222_v16 = vld [vmem:[#allocation9 + $0x208] sm:$0xff] }
 0x1b1   : > { %3754 = vst [vmem:[#allocation31_spill] sm:$0xff] %v3266_v59  ;;  %v3698_v57 = vmax.f32 %v3266_v59, 0.0  ;;  %v3755_v59 = vmax.f32 %v3273_v51, 0.0  ;;  %1625 = vmatpush.msrb.mxu1 %v1190_v7  ;;  %v601_v7 = vadd.f32 %v2949_v17, %v2959_v32  ;;  %v3760_v17 = vld [vmem:[#allocation17_spill] sm:$0xff] }
 0x1b2   : > { %1526 = vmatmul.f32.gmra.mxu3 %v3696_v8  ;;  %v3703_v8 = vmax.f32 %v3277_v3, 0.0  ;;  %1690 = vmatpush.msrb.mxu2 %v1222_v16 }
 0x1b3   : > { %v981_v50 = vpop.f32.mrf.mxu2  ;;  %1464 = vmatmul.f32.gmra.mxu2 %v3698_v57 }
 0x1b4   : > { %v982_v0 = vadd.f32 %v981_v50, %v2998_v56  ;;  %v854_v41 = vpop.f32.mrf.mxu0  ;;  %v919_v40 = vpop.f32.mrf.mxu1  ;;  %v1158_v50 = vld [vmem:[#allocation9 + $0x8] sm:$0xff] }
 0x1b5   : > { %v855_v62 = vadd.f32 %v854_v41, %v2980_v33  ;;  %v1046_v57 = vpop.f32.mrf.mxu3  ;;  %1560 = vmatpush.msrb.mxu0 %v1158_v50  ;;  %v3302_v41 = vadd.f32 %v2939_v31, %v598_v18 }
 0x1b6   : > { %v3292_v53 = vadd.f32 %v1046_v57, %v982_v0  ;;  %v3305_v57 = vadd.f32 %v2953_v22, %v728_v47  ;;  %v731_v47 = vadd.f32 %v3757_v11, %v2796_v1 }
 0x1b7   : > { %v3294_v54 = vadd.f32 %v919_v40, %v855_v62  ;;  %1337 = vmatmul.f32.gmra.mxu0 %v3755_v59  ;;  %1402 = vmatmul.f32.gmra.mxu1 %v3703_v8  ;;  %v1254_v59 = vld [vmem:[#allocation9 + $0x308] sm:$0xff]  ;;  %v3705_v40 = vmax.f32 %v3302_v41, 0.0 }
 0x1b8   : > { %v3701_v9 = vmax.f32 %v3292_v53, 0.0  ;;  %3756 = vst [vmem:[#allocation32_spill] sm:$0xff] %v3305_v57  ;;  %1755 = vmatpush.msrb.mxu3 %v1254_v59  ;;  %v3704_v43 = vmax.f32 %v3305_v57, 0.0  ;;  %v3761_v8 = vld [vmem:[#allocation21_spill] sm:$0xff] }
 0x1b9   : > { %v3702_v62 = vmax.f32 %v3294_v54, 0.0  ;;  %v3333_v11 = vadd.f32 %v3761_v8, %v731_v47  ;;  %v3763_v47 = vld [vmem:[#allocation22_spill] sm:$0xff] }
 0x1ba   : > { %1529 = vmatmul.f32.gmra.mxu3 %v3701_v9 }
 0x1bb   : > { %v984_v0 = vpop.f32.mrf.mxu2  ;;  %1467 = vmatmul.f32.gmra.mxu2 %v3702_v62  ;;  %v3711_v8 = vmax.f32 %v3333_v11, 0.0 }
 0x1bc   : > { %v985_v31 = vadd.f32 %v984_v0, %v2998_v56  ;;  %v857_v18 = vpop.f32.mrf.mxu0  ;;  %v922_v22 = vpop.f32.mrf.mxu1  ;;  %v3329_v0 = vadd.f32 %v3760_v17, %v601_v7  ;;  %v3762_v17 = vld [vmem:[#allocation19_spill] sm:$0xff] }
 0x1bd   : > { %v858_v50 = vadd.f32 %v857_v18, %v2980_v33  ;;  %v1049_v16 = vpop.f32.mrf.mxu3 }
 0x1be   : > { %v3320_v9 = vadd.f32 %v1049_v16, %v985_v31 }
 0x1bf   : > { %v3322_v59 = vadd.f32 %v922_v22, %v858_v50  ;;  %1340 = vmatmul.f32.gmra.mxu0 %v3705_v40  ;;  %1405 = vmatmul.f32.gmra.mxu1 %v3704_v43  ;;  %v3716_v22 = vmax.f32 %v3329_v0, 0.0  ;;  %v604_v43 = vadd.f32 %v3762_v17, %v2959_v32  ;;  %v734_v40 = vadd.f32 %v3763_v47, %v2796_v1 }
 0x1c0   : > { %3758 = vst [vmem:[#allocation18_spill] sm:$0xff] %v3320_v9  ;;  %v3706_v62 = vmax.f32 %v3320_v9, 0.0 }
 0x1c1   : > { %3759 = vst [vmem:[#allocation33_spill] sm:$0xff] %v3322_v59  ;;  %v3709_v18 = vmax.f32 %v3322_v59, 0.0  ;;  %v3765_v59 = vld [vmem:[#allocation23_spill] sm:$0xff] }
 0x1c2   : > { %1532 = vmatmul.f32.gmra.mxu3 %v3706_v62  ;;  %v3361_v1 = vadd.f32 %v3765_v59, %v734_v40 }
 0x1c3   : > { %v987_v31 = vpop.f32.mrf.mxu2  ;;  %1470 = vmatmul.f32.gmra.mxu2 %v3709_v18 }
 0x1c4   : > { %v988_v50 = vadd.f32 %v987_v31, %v2998_v56  ;;  %v860_v7 = vpop.f32.mrf.mxu0  ;;  %v925_v16 = vpop.f32.mrf.mxu1  ;;  %v3764_v31 = vld [vmem:[#allocation20_spill] sm:$0xff] }
 0x1c5   : > { %v861_v62 = vadd.f32 %v860_v7, %v2980_v33  ;;  %v1052_v9 = vpop.f32.mrf.mxu3  ;;  %v3358_v17 = vadd.f32 %v3764_v31, %v604_v43  ;;  %v3714_v43 = vmax.f32 %v3361_v1, 0.0 }
 0x1c6   : > { %v3348_v57 = vadd.f32 %v1052_v9, %v988_v50 }
 0x1c7   : > { %v3350_v18 = vadd.f32 %v925_v16, %v861_v62  ;;  %1343 = vmatmul.f32.gmra.mxu0 %v3716_v22  ;;  %1408 = vmatmul.f32.gmra.mxu1 %v3711_v8  ;;  %v3715_v47 = vmax.f32 %v3358_v17, 0.0 }
 0x1c8   : > { %v3713_v32 = vmax.f32 %v3348_v57, 0.0 }
 0x1c9   : > { %v3712_v7 = vmax.f32 %v3350_v18, 0.0 }
 0x1ca   : > { %1535 = vmatmul.f32.gmra.mxu3 %v3713_v32 }
 0x1cb   : > { %v990_v9 = vpop.f32.mrf.mxu2  ;;  %1473 = vmatmul.f32.gmra.mxu2 %v3712_v7 }
 0x1cc   : > { %v991_v62 = vadd.f32 %v990_v9, %v2998_v56  ;;  %v863_v50 = vpop.f32.mrf.mxu0  ;;  %v928_v16 = vpop.f32.mrf.mxu1 }
 0x1cd   : > { %v864_v40 = vadd.f32 %v863_v50, %v2980_v33  ;;  %v1055_v59 = vpop.f32.mrf.mxu3 }
 0x1ce   : > { %v3372_v31 = vadd.f32 %v1055_v59, %v991_v62  ;;  %v3769_v59 = vmax.f32 %v2976_v39, 0.0  ;;  %v3775_v39 = vmax.f32 %v2815_v37, 0.0 }
 0x1cf   : > { %v3374_v8 = vadd.f32 %v928_v16, %v864_v40  ;;  %1346 = vmatmul.f32.gmra.mxu0 %v3715_v47  ;;  %1411 = vmatmul.f32.gmra.mxu1 %v3714_v43  ;;  %v3770_v43 = vld [vmem:[#allocation16_spill] sm:$0xff] }
 0x1d0   : > { %3766 = vst [vmem:[#allocation17_spill] sm:$0xff] %v3372_v31  ;;  %v3717_v9 = vmax.f32 %v3372_v31, 0.0  ;;  %v3771_v47 = vmax.f32 %v3770_v43, 0.0  ;;  %v3779_v31 = vmax.f32 %v3022_v24, 0.0 }
 0x1d1   : > { %3767 = vst [vmem:[#allocation21_spill] sm:$0xff] %v3374_v8  ;;  %v3718_v7 = vmax.f32 %v3374_v8, 0.0 }
 0x1d2   : > { %1538 = vmatmul.f32.gmra.mxu3 %v3717_v9  ;;  %v3772_v9 = vld [vmem:[#allocation24_spill] sm:$0xff] }
 0x1d3   : > { %v993_v32 = vpop.f32.mrf.mxu2  ;;  %1476 = vmatmul.f32.gmra.mxu2 %v3718_v7  ;;  %v3773_v7 = vmax.f32 %v3772_v9, 0.0 }
 0x1d4   : > { %v994_v33 = vadd.f32 %v993_v32, %v2998_v56  ;;  %v1302_v62 = vpop.f32.mrf.mxu0  ;;  %v1367_v50 = vpop.f32.mrf.mxu1 }
 0x1d5   : > { %v1058_v16 = vpop.f32.mrf.mxu3  ;;  %v1368_v43 = vadd.f32 %v1367_v50, %v1302_v62  ;;  %v3780_v62 = vmax.f32 %v2826_v55, 0.0 }
 0x1d6   : > { %v3387_v40 = vadd.f32 %v1058_v16, %v994_v33  ;;  %v3774_v33 = vmax.f32 %v3001_v10, 0.0  ;;  %v3776_v16 = vmax.f32 %v3012_v38, 0.0 }
 0x1d7   : > { %1561 = vmatmul.f32.vlgmr.msrb.gmra.mxu0 %v3769_v59  ;;  %1626 = vmatmul.f32.vlgmr.msrb.gmra.mxu1 %v3771_v47  ;;  %v3405_v47 = vld [vmem:[%s3641_s4] sm:$0x3] }
 0x1d8   : > { %3768 = vst [vmem:[#allocation19_spill] sm:$0xff] %v3387_v40  ;;  %v3720_v22 = vmax.f32 %v3387_v40, 0.0 }
 0x1da   : > { %1541 = vmatmul.f32.gmra.mxu3 %v3720_v22 }
 0x1db   : > { %1691 = vmatmul.f32.vlgmr.msrb.gmra.mxu2 %v3773_v7  ;;  %v3777_v7 = vld [vmem:[#allocation25_spill] sm:$0xff] }
 0x1dc   : > { %v1305_v56 = vpop.f32.mrf.mxu0  ;;  %v1370_v32 = vpop.f32.mrf.mxu1  ;;  %v3778_v9 = vmax.f32 %v3777_v7, 0.0 }
 0x1dd   : > { %v1371_v50 = vadd.f32 %v1370_v32, %v1305_v56  ;;  %v3784_v56 = vmax.f32 %v3045_v44, 0.0  ;;  %v3785_v32 = vmax.f32 %v2837_v15, 0.0  ;;  %v3789_v15 = vmax.f32 %v3068_v4, 0.0 }
 0x1de   : > { %v1432_v8 = vpop.f32.mrf.mxu2 }
 0x1df   : > { %1564 = vmatmul.f32.gmra.mxu0 %v3774_v33  ;;  %1629 = vmatmul.f32.gmra.mxu1 %v3775_v39  ;;  %v1433_v59 = vadd.f32 %v1432_v8, %v1368_v43  ;;  %v3412_v33 = vperm.slane %v3405_v47, 0  ;;  %v3781_v8 = vmax.f32 %v3035_v2, 0.0  ;;  %v3782_v43 = vld [vmem:[#allocation26_spill] sm:$0xff] }
 0x1e2   : > { %1756 = vmatmul.f32.vlgmr.msrb.gmra.mxu3 %v3776_v16  ;;  %v3783_v16 = vmax.f32 %v3782_v43, 0.0 }
 0x1e3   : > { %1694 = vmatmul.f32.gmra.mxu2 %v3778_v9 }
 0x1e4   : > { %v1308_v22 = vpop.f32.mrf.mxu0  ;;  %v1373_v10 = vpop.f32.mrf.mxu1 }
 0x1e5   : > { %v1497_v37 = vpop.f32.mrf.mxu3  ;;  %v1374_v2 = vadd.f32 %v1373_v10, %v1308_v22  ;;  %v3791_v10 = vmax.f32 %v3081_v30, 0.0 }
 0x1e6   : > { %v1498_v39 = vadd.f32 %v1497_v37, %v1433_v59  ;;  %v1435_v40 = vpop.f32.mrf.mxu2 }
 0x1e7   : > { %1567 = vmatmul.f32.gmra.mxu0 %v3779_v31  ;;  %1632 = vmatmul.f32.gmra.mxu1 %v3780_v62  ;;  %v1436_v24 = vadd.f32 %v1435_v40, %v1371_v50  ;;  %v3787_v40 = vld [vmem:[#allocation27_spill] sm:$0xff] }
 0x1e8   : > { %v1910_v38 = vadd.f32 %v3412_v33, %v1498_v39  ;;  %v3786_v39 = vmax.f32 %v3058_v12, 0.0  ;;  %v3788_v62 = vmax.f32 %v3787_v40, 0.0  ;;  %v3797_v40 = vld [vmem:[#allocation29_spill] sm:$0xff] }
 0x1ea   : > { %1942 = vst [vmem:[%s3421_s3] sm:$0xff] %v1910_v38  ;;  %1759 = vmatmul.f32.gmra.mxu3 %v3781_v8 }
 0x1eb   : > { %1697 = vmatmul.f32.gmra.mxu2 %v3783_v16 }
 0x1ec   : > { %v1311_v31 = vpop.f32.mrf.mxu0  ;;  %v1376_v7 = vpop.f32.mrf.mxu1 }
 0x1ed   : > { %v1500_v55 = vpop.f32.mrf.mxu3  ;;  %v1377_v12 = vadd.f32 %v1376_v7, %v1311_v31  ;;  %v3796_v7 = vmax.f32 %v3104_v23, 0.0 }
 0x1ee   : > { %v1501_v9 = vadd.f32 %v1500_v55, %v1436_v24  ;;  %v1438_v59 = vpop.f32.mrf.mxu2  ;;  %v3790_v24 = vmax.f32 %v2848_v36, 0.0  ;;  %v3792_v55 = vld [vmem:[#allocation28_spill] sm:$0xff]  ;;  %v3794_v36 = vmax.f32 %v3091_v19, 0.0 }
 0x1ef   : > { %1570 = vmatmul.f32.gmra.mxu0 %v3784_v56  ;;  %1635 = vmatmul.f32.gmra.mxu1 %v3785_v32  ;;  %v1439_v38 = vadd.f32 %v1438_v59, %v1374_v2 }
 0x1f0   : > { %v1912_v37 = vadd.f32 %v3412_v33, %v1501_v9  ;;  %v3793_v9 = vmax.f32 %v3792_v55, 0.0 }
 0x1f2   : > { %1944 = vst [vmem:[%s3421_s3 + $0x10] sm:$0xff] %v1912_v37  ;;  %1762 = vmatmul.f32.gmra.mxu3 %v3786_v39  ;;  %v3795_v39 = vmax.f32 %v2859_v27, 0.0  ;;  %v3799_v27 = vmax.f32 %v3114_v42, 0.0 }
 0x1f3   : > { %1700 = vmatmul.f32.gmra.mxu2 %v3788_v62  ;;  %v3798_v62 = vmax.f32 %v3797_v40, 0.0 }
 0x1f4   : > { %v1314_v50 = vpop.f32.mrf.mxu0  ;;  %v1379_v8 = vpop.f32.mrf.mxu1 }
 0x1f5   : > { %v1503_v43 = vpop.f32.mrf.mxu3  ;;  %v1380_v30 = vadd.f32 %v1379_v8, %v1314_v50  ;;  %v3801_v8 = vmax.f32 %v3127_v29, 0.0 }
 0x1f6   : > { %v1504_v44 = vadd.f32 %v1503_v43, %v1439_v38  ;;  %v1441_v16 = vpop.f32.mrf.mxu2 }
 0x1f7   : > { %1573 = vmatmul.f32.gmra.mxu0 %v3789_v15  ;;  %1638 = vmatmul.f32.gmra.mxu1 %v3790_v24  ;;  %v1442_v59 = vadd.f32 %v1441_v16, %v1377_v12  ;;  %v3800_v24 = vmax.f32 %v2870_v35, 0.0  ;;  %v3803_v35 = vmax.f32 %v3137_v61, 0.0 }
 0x1f8   : > { %v1914_v22 = vadd.f32 %v3412_v33, %v1504_v44 }
 0x1fa   : > { %1946 = vst [vmem:[%s3421_s3 + $0x20] sm:$0xff] %v1914_v22  ;;  %1765 = vmatmul.f32.gmra.mxu3 %v3791_v10  ;;  %v3802_v22 = vmax.f32 %v3129_v46, 0.0  ;;  %v3805_v46 = vmax.f32 %v3152_v49, 0.0 }
 0x1fb   : > { %1703 = vmatmul.f32.gmra.mxu2 %v3793_v9 }
 0x1fc   : > { %v1317_v56 = vpop.f32.mrf.mxu0  ;;  %v1382_v32 = vpop.f32.mrf.mxu1 }
 0x1fd   : > { %v1506_v37 = vpop.f32.mrf.mxu3  ;;  %v1383_v23 = vadd.f32 %v1382_v32, %v1317_v56  ;;  %v3806_v32 = vld [vmem:[#allocation30_spill] sm:$0xff] }
 0x1fe   : > { %v1507_v4 = vadd.f32 %v1506_v37, %v1442_v59  ;;  %v1444_v2 = vpop.f32.mrf.mxu2  ;;  %v3804_v37 = vmax.f32 %v2881_v13, 0.0  ;;  %v3808_v13 = vmax.f32 %v3161_v5, 0.0 }
 0x1ff   : > { %1576 = vmatmul.f32.gmra.mxu0 %v3794_v36  ;;  %1641 = vmatmul.f32.gmra.mxu1 %v3795_v39  ;;  %v1445_v38 = vadd.f32 %v1444_v2, %v1380_v30 }
 0x200   : > { %v1916_v31 = vadd.f32 %v3412_v33, %v1507_v4  ;;  %v3807_v4 = vmax.f32 %v3806_v32, 0.0 }
 0x202   : > { %1948 = vst [vmem:[%s3421_s3 + $0x30] sm:$0xff] %v1916_v31  ;;  %1768 = vmatmul.f32.gmra.mxu3 %v3796_v7  ;;  %v3809_v7 = vmax.f32 %v3165_v6, 0.0  ;;  %v3812_v6 = vmax.f32 %v3190_v21, 0.0 }
 0x203   : > { %1706 = vmatmul.f32.gmra.mxu2 %v3798_v62  ;;  %v3810_v62 = vmax.f32 %v3180_v34, 0.0 }
 0x204   : > { %v1320_v43 = vpop.f32.mrf.mxu0  ;;  %v1385_v44 = vpop.f32.mrf.mxu1 }
 0x205   : > { %v1509_v16 = vpop.f32.mrf.mxu3  ;;  %v1386_v29 = vadd.f32 %v1385_v44, %v1320_v43 }
 0x206   : > { %v1510_v19 = vadd.f32 %v1509_v16, %v1445_v38  ;;  %v1447_v15 = vpop.f32.mrf.mxu2  ;;  %v3811_v38 = vmax.f32 %v3182_v48, 0.0  ;;  %v3814_v48 = vmax.f32 %v3208_v25, 0.0 }
 0x207   : > { %1579 = vmatmul.f32.gmra.mxu0 %v3799_v27  ;;  %1644 = vmatmul.f32.gmra.mxu1 %v3800_v24  ;;  %v1448_v12 = vadd.f32 %v1447_v15, %v1383_v23  ;;  %v3813_v27 = vmax.f32 %v3193_v28, 0.0  ;;  %v3816_v28 = vmax.f32 %v3217_v20, 0.0 }
 0x208   : > { %v1918_v50 = vadd.f32 %v3412_v33, %v1510_v19 }
 0x20a   : > { %1950 = vst [vmem:[%s3421_s3 + $0x40] sm:$0xff] %v1918_v50  ;;  %1771 = vmatmul.f32.gmra.mxu3 %v3801_v8  ;;  %v3815_v50 = vmax.f32 %v3210_v60, 0.0  ;;  %v3818_v60 = vmax.f32 %v3236_v14, 0.0 }
 0x20b   : > { %1709 = vmatmul.f32.gmra.mxu2 %v3802_v22 }
 0x20c   : > { %v1323_v10 = vpop.f32.mrf.mxu0  ;;  %v1388_v55 = vpop.f32.mrf.mxu1 }
 0x20d   : > { %v1512_v9 = vpop.f32.mrf.mxu3  ;;  %v1389_v49 = vadd.f32 %v1388_v55, %v1323_v10  ;;  %v3817_v55 = vmax.f32 %v3221_v52, 0.0  ;;  %v3820_v52 = vmax.f32 %v3246_v26, 0.0 }
 0x20e   : > { %v1513_v42 = vadd.f32 %v1512_v9, %v1448_v12  ;;  %v1450_v59 = vpop.f32.mrf.mxu2 }
 0x20f   : > { %1582 = vmatmul.f32.gmra.mxu0 %v3803_v35  ;;  %1647 = vmatmul.f32.gmra.mxu1 %v3804_v37  ;;  %v1451_v2 = vadd.f32 %v1450_v59, %v1386_v29 }
 0x210   : > { %v1920_v56 = vadd.f32 %v3412_v33, %v1513_v42  ;;  %v3819_v42 = vmax.f32 %v3238_v45, 0.0  ;;  %v3822_v45 = vmax.f32 %v3264_v63, 0.0 }
 0x212   : > { %1952 = vst [vmem:[%s3421_s3 + $0x50] sm:$0xff] %v1920_v56  ;;  %1774 = vmatmul.f32.gmra.mxu3 %v3805_v46  ;;  %v3821_v46 = vmax.f32 %v3249_v58, 0.0  ;;  %v3825_v58 = vmax.f32 %v3273_v51, 0.0 }
 0x213   : > { %1712 = vmatmul.f32.gmra.mxu2 %v3807_v4  ;;  %v3823_v4 = vld [vmem:[#allocation31_spill] sm:$0xff] }
 0x214   : > { %v1326_v36 = vpop.f32.mrf.mxu0  ;;  %v1391_v39 = vpop.f32.mrf.mxu1 }
 0x215   : > { %v1515_v31 = vpop.f32.mrf.mxu3  ;;  %v1392_v34 = vadd.f32 %v1391_v39, %v1326_v36 }
 0x216   : > { %v1516_v61 = vadd.f32 %v1515_v31, %v1451_v2  ;;  %v1453_v30 = vpop.f32.mrf.mxu2  ;;  %v3824_v2 = vmax.f32 %v3823_v4, 0.0 }
 0x217   : > { %1585 = vmatmul.f32.gmra.mxu0 %v3808_v13  ;;  %1650 = vmatmul.f32.gmra.mxu1 %v3809_v7  ;;  %v1454_v43 = vadd.f32 %v1453_v30, %v1389_v49  ;;  %v3826_v13 = vmax.f32 %v3277_v3, 0.0  ;;  %v3828_v49 = vmax.f32 %v3294_v54, 0.0  ;;  %v3829_v3 = vmax.f32 %v3302_v41, 0.0 }
 0x218   : > { %v1922_v40 = vadd.f32 %v3412_v33, %v1516_v61 }
 0x21a   : > { %1954 = vst [vmem:[%s3421_s3 + $0x60] sm:$0xff] %v1922_v40  ;;  %1777 = vmatmul.f32.gmra.mxu3 %v3810_v62  ;;  %v3827_v40 = vmax.f32 %v3292_v53, 0.0 }
 0x21b   : > { %1715 = vmatmul.f32.gmra.mxu2 %v3811_v38 }
 0x21c   : > { %v1329_v44 = vpop.f32.mrf.mxu0  ;;  %v1394_v16 = vpop.f32.mrf.mxu1 }
 0x21d   : > { %v1518_v19 = vpop.f32.mrf.mxu3  ;;  %v1395_v25 = vadd.f32 %v1394_v16, %v1329_v44 }
 0x21e   : > { %v1519_v5 = vadd.f32 %v1518_v19, %v1454_v43  ;;  %v1456_v15 = vpop.f32.mrf.mxu2  ;;  %v3830_v19 = vld [vmem:[#allocation32_spill] sm:$0xff] }
 0x21f   : > { %1588 = vmatmul.f32.gmra.mxu0 %v3812_v6  ;;  %1653 = vmatmul.f32.gmra.mxu1 %v3813_v27  ;;  %v1457_v23 = vadd.f32 %v1456_v15, %v1392_v34  ;;  %v3832_v6 = vld [vmem:[#allocation18_spill] sm:$0xff]  ;;  %v3834_v27 = vld [vmem:[#allocation33_spill] sm:$0xff] }
 0x220   : > { %v1924_v24 = vadd.f32 %v3412_v33, %v1519_v5  ;;  %v3831_v5 = vmax.f32 %v3830_v19, 0.0  ;;  %v3833_v54 = vmax.f32 %v3832_v6, 0.0 }
 0x222   : > { %1956 = vst [vmem:[%s3421_s3 + $0x70] sm:$0xff] %v1924_v24  ;;  %1780 = vmatmul.f32.gmra.mxu3 %v3814_v48  ;;  %v3835_v24 = vmax.f32 %v3834_v27, 0.0 }
 0x223   : > { %1718 = vmatmul.f32.gmra.mxu2 %v3815_v50 }
 0x224   : > { %v1332_v8 = vpop.f32.mrf.mxu0  ;;  %v1397_v22 = vpop.f32.mrf.mxu1 }
 0x225   : > { %v1521_v12 = vpop.f32.mrf.mxu3  ;;  %v1398_v14 = vadd.f32 %v1397_v22, %v1332_v8  ;;  %v3836_v22 = vmax.f32 %v3329_v0, 0.0 }
 0x226   : > { %v1522_v21 = vadd.f32 %v1521_v12, %v1457_v23  ;;  %v1459_v10 = vpop.f32.mrf.mxu2  ;;  %v3837_v12 = vmax.f32 %v3333_v11, 0.0  ;;  %v3840_v11 = vmax.f32 %v3358_v17, 0.0 }
 0x227   : > { %1591 = vmatmul.f32.gmra.mxu0 %v3816_v28  ;;  %1656 = vmatmul.f32.gmra.mxu1 %v3817_v55  ;;  %v1460_v59 = vadd.f32 %v1459_v10, %v1395_v25  ;;  %v3838_v28 = vmax.f32 %v3348_v57, 0.0  ;;  %v3839_v55 = vmax.f32 %v3350_v18, 0.0 }
 0x228   : > { %v1926_v9 = vadd.f32 %v3412_v33, %v1522_v21 }
 0x22a   : > { %1958 = vst [vmem:[%s3421_s3 + $0x80] sm:$0xff] %v1926_v9  ;;  %1783 = vmatmul.f32.gmra.mxu3 %v3818_v60 }
 0x22b   : > { %1721 = vmatmul.f32.gmra.mxu2 %v3819_v42 }
 0x22c   : > { %v1335_v35 = vpop.f32.mrf.mxu0  ;;  %v1400_v37 = vpop.f32.mrf.mxu1 }
 0x22d   : > { %v1524_v56 = vpop.f32.mrf.mxu3  ;;  %v1401_v63 = vadd.f32 %v1400_v37, %v1335_v35  ;;  %v3841_v35 = vmax.f32 %v3361_v1, 0.0 }
 0x22e   : > { %v1525_v20 = vadd.f32 %v1524_v56, %v1460_v59  ;;  %v1462_v29 = vpop.f32.mrf.mxu2  ;;  %v3842_v56 = vld [vmem:[#allocation17_spill] sm:$0xff] }
 0x22f   : > { %1594 = vmatmul.f32.gmra.mxu0 %v3820_v52  ;;  %1659 = vmatmul.f32.gmra.mxu1 %v3821_v46  ;;  %v1463_v36 = vadd.f32 %v1462_v29, %v1398_v14  ;;  %v3843_v18 = vmax.f32 %v3842_v56, 0.0 }
 0x230   : > { %v1928_v32 = vadd.f32 %v3412_v33, %v1525_v20  ;;  %v3844_v20 = vld [vmem:[#allocation21_spill] sm:$0xff] }
 0x231   : > { %v3845_v29 = vmax.f32 %v3844_v20, 0.0 }
 0x232   : > { %1960 = vst [vmem:[%s3421_s3 + $0x90] sm:$0xff] %v1928_v32  ;;  %1786 = vmatmul.f32.gmra.mxu3 %v3822_v45 }
 0x233   : > { %1724 = vmatmul.f32.gmra.mxu2 %v3824_v2  ;;  %v3846_v2 = vld [vmem:[#allocation19_spill] sm:$0xff] }
 0x234   : > { %v1338_v39 = vpop.f32.mrf.mxu0  ;;  %v1403_v31 = vpop.f32.mrf.mxu1 }
 0x235   : > { %v1527_v61 = vpop.f32.mrf.mxu3  ;;  %v1404_v53 = vadd.f32 %v1403_v31, %v1338_v39 }
 0x236   : > { %v1528_v26 = vadd.f32 %v1527_v61, %v1463_v36  ;;  %v1465_v30 = vpop.f32.mrf.mxu2  ;;  %v3847_v36 = vmax.f32 %v3846_v2, 0.0 }
 0x237   : > { %1597 = vmatmul.f32.gmra.mxu0 %v3825_v58  ;;  %1662 = vmatmul.f32.gmra.mxu1 %v3826_v13  ;;  %v1466_v62 = vadd.f32 %v1465_v30, %v1401_v63 }
 0x238   : > { %v1930_v7 = vadd.f32 %v3412_v33, %v1528_v26 }
 0x23a   : > { %1962 = vst [vmem:[%s3421_s3 + $0xa0] sm:$0xff] %v1930_v7  ;;  %1789 = vmatmul.f32.gmra.mxu3 %v3827_v40 }
 0x23b   : > { %1727 = vmatmul.f32.gmra.mxu2 %v3828_v49 }
 0x23c   : > { %v1341_v38 = vpop.f32.mrf.mxu0  ;;  %v1406_v43 = vpop.f32.mrf.mxu1 }
 0x23d   : > { %v1530_v44 = vpop.f32.mrf.mxu3  ;;  %v1407_v10 = vadd.f32 %v1406_v43, %v1341_v38 }
 0x23e   : > { %v1531_v51 = vadd.f32 %v1530_v44, %v1466_v62  ;;  %v1468_v16 = vpop.f32.mrf.mxu2  ;;  %v3565_v62 = vperm.slane %v3405_v47, 1 }
 0x23f   : > { %1600 = vmatmul.f32.gmra.mxu0 %v3829_v3  ;;  %1665 = vmatmul.f32.gmra.mxu1 %v3831_v5  ;;  %v1469_v34 = vadd.f32 %v1468_v16, %v1404_v53 }
 0x240   : > { %v1932_v15 = vadd.f32 %v3412_v33, %v1531_v51 }
 0x242   : > { %1964 = vst [vmem:[%s3421_s3 + $0xb0] sm:$0xff] %v1932_v15  ;;  %1792 = vmatmul.f32.gmra.mxu3 %v3833_v54 }
 0x243   : > { %1730 = vmatmul.f32.gmra.mxu2 %v3835_v24 }
 0x244   : > { %v1344_v48 = vpop.f32.mrf.mxu0  ;;  %v1409_v50 = vpop.f32.mrf.mxu1 }
 0x245   : > { %v1533_v23 = vpop.f32.mrf.mxu3  ;;  %v1410_v57 = vadd.f32 %v1409_v50, %v1344_v48 }
 0x246   : > { %v1534_v41 = vadd.f32 %v1533_v23, %v1469_v34  ;;  %v1471_v8 = vpop.f32.mrf.mxu2 }
 0x247   : > { %1603 = vmatmul.f32.gmra.mxu0 %v3836_v22  ;;  %1668 = vmatmul.f32.gmra.mxu1 %v3837_v12  ;;  %v1472_v9 = vadd.f32 %v1471_v8, %v1407_v10 }
 0x248   : > { %v1934_v21 = vadd.f32 %v3412_v33, %v1534_v41 }
 0x24a   : > { %1966 = vst [vmem:[%s3421_s3 + $0xc0] sm:$0xff] %v1934_v21  ;;  %1795 = vmatmul.f32.gmra.mxu3 %v3838_v28 }
 0x24b   : > { %1733 = vmatmul.f32.gmra.mxu2 %v3839_v55 }
 0x24c   : > { %v1347_v25 = vpop.f32.mrf.mxu0  ;;  %v1412_v60 = vpop.f32.mrf.mxu1 }
 0x24d   : > { %v1536_v42 = vpop.f32.mrf.mxu3  ;;  %v1413_v4 = vadd.f32 %v1412_v60, %v1347_v25 }
 0x24e   : > { %v1537_v0 = vadd.f32 %v1536_v42, %v1472_v9  ;;  %v1474_v59 = vpop.f32.mrf.mxu2 }
 0x24f   : > { %1606 = vmatmul.f32.gmra.mxu0 %v3840_v11  ;;  %1671 = vmatmul.f32.gmra.mxu1 %v3841_v35  ;;  %v1475_v52 = vadd.f32 %v1474_v59, %v1410_v57 }
 0x250   : > { %v1936_v37 = vadd.f32 %v3412_v33, %v1537_v0 }
 0x252   : > { %1968 = vst [vmem:[%s3421_s3 + $0xd0] sm:$0xff] %v1936_v37  ;;  %1798 = vmatmul.f32.gmra.mxu3 %v3843_v18 }
 0x253   : > { %1736 = vmatmul.f32.gmra.mxu2 %v3845_v29 }
 0x254   : > { %v1562_v46 = vpop.f32.mrf.mxu0  ;;  %v1627_v32 = vpop.f32.mrf.mxu1 }
 0x255   : > { %v1539_v17 = vpop.f32.mrf.mxu3  ;;  %v1628_v7 = vadd.f32 %v1627_v32, %v1562_v46 }
 0x256   : > { %v1540_v14 = vadd.f32 %v1539_v17, %v1475_v52  ;;  %v1477_v45 = vpop.f32.mrf.mxu2 }
 0x257   : > { %v1478_v39 = vadd.f32 %v1477_v45, %v1413_v4 }
 0x258   : > { %v1938_v1 = vadd.f32 %v3412_v33, %v1540_v14 }
 0x25a   : > { %1970 = vst [vmem:[%s3421_s3 + $0xe0] sm:$0xff] %v1938_v1  ;;  %1801 = vmatmul.f32.gmra.mxu3 %v3847_v36 }
 0x25c   : > { %v1565_v31 = vpop.f32.mrf.mxu0  ;;  %v1630_v61 = vpop.f32.mrf.mxu1 }
 0x25d   : > { %v1542_v26 = vpop.f32.mrf.mxu3  ;;  %v1631_v16 = vadd.f32 %v1630_v61, %v1565_v31 }
 0x25e   : > { %v1543_v30 = vadd.f32 %v1542_v26, %v1478_v39  ;;  %v1692_v58 = vpop.f32.mrf.mxu2 }
 0x25f   : > { %v1693_v63 = vadd.f32 %v1692_v58, %v1628_v7 }
 0x260   : > { %v1940_v13 = vadd.f32 %v3412_v33, %v1543_v30 }
 0x262   : > { %1972 = vst [vmem:[%s3421_s3 + $0xf0] sm:$0xff] %v1940_v13 }
 0x264   : > { %v1568_v40 = vpop.f32.mrf.mxu0  ;;  %v1633_v49 = vpop.f32.mrf.mxu1 }
 0x265   : > { %v1757_v38 = vpop.f32.mrf.mxu3  ;;  %v1634_v54 = vadd.f32 %v1633_v49, %v1568_v40 }
 0x266   : > { %v1758_v43 = vadd.f32 %v1757_v38, %v1693_v63  ;;  %v1695_v44 = vpop.f32.mrf.mxu2 }
 0x267   : > { %v1696_v3 = vadd.f32 %v1695_v44, %v1631_v16 }
 0x268   : > { %v1911_v51 = vadd.f32 %v3565_v62, %v1758_v43 }
 0x26a   : > { %1943 = vst [vmem:[%s3421_s3 + $0x8] sm:$0xff] %v1911_v51 }
 0x26c   : > { %v1571_v19 = vpop.f32.mrf.mxu0  ;;  %v1636_v33 = vpop.f32.mrf.mxu1 }
 0x26d   : > { %v1760_v5 = vpop.f32.mrf.mxu3  ;;  %v1637_v41 = vadd.f32 %v1636_v33, %v1571_v19 }
 0x26e   : > { %v1761_v15 = vadd.f32 %v1760_v5, %v1696_v3  ;;  %v1698_v53 = vpop.f32.mrf.mxu2 }
 0x26f   : > { %v1699_v47 = vadd.f32 %v1698_v53, %v1634_v54 }
 0x270   : > { %v1913_v6 = vadd.f32 %v3565_v62, %v1761_v15 }
 0x272   : > { %1945 = vst [vmem:[%s3421_s3 + $0x18] sm:$0xff] %v1913_v6 }
 0x274   : > { %v1574_v27 = vpop.f32.mrf.mxu0  ;;  %v1639_v24 = vpop.f32.mrf.mxu1 }
 0x275   : > { %v1763_v34 = vpop.f32.mrf.mxu3  ;;  %v1640_v9 = vadd.f32 %v1639_v24, %v1574_v27 }
 0x276   : > { %v1764_v48 = vadd.f32 %v1763_v34, %v1699_v47  ;;  %v1701_v50 = vpop.f32.mrf.mxu2 }
 0x277   : > { %v1702_v8 = vadd.f32 %v1701_v50, %v1637_v41 }
 0x278   : > { %v1915_v23 = vadd.f32 %v3565_v62, %v1764_v48 }
 0x27a   : > { %1947 = vst [vmem:[%s3421_s3 + $0x28] sm:$0xff] %v1915_v23 }
 0x27c   : > { %v1577_v22 = vpop.f32.mrf.mxu0  ;;  %v1642_v12 = vpop.f32.mrf.mxu1 }
 0x27d   : > { %v1766_v21 = vpop.f32.mrf.mxu3  ;;  %v1643_v37 = vadd.f32 %v1642_v12, %v1577_v22 }
 0x27e   : > { %v1767_v10 = vadd.f32 %v1766_v21, %v1702_v8  ;;  %v1704_v28 = vpop.f32.mrf.mxu2 }
 0x27f   : > { %v1705_v25 = vadd.f32 %v1704_v28, %v1640_v9 }
 0x280   : > { %v1917_v55 = vadd.f32 %v3565_v62, %v1767_v10 }
 0x282   : > { %1949 = vst [vmem:[%s3421_s3 + $0x38] sm:$0xff] %v1917_v55 }
 0x284   : > { %v1580_v60 = vpop.f32.mrf.mxu0  ;;  %v1645_v42 = vpop.f32.mrf.mxu1 }
 0x285   : > { %v1769_v0 = vpop.f32.mrf.mxu3  ;;  %v1646_v32 = vadd.f32 %v1645_v42, %v1580_v60 }
 0x286   : > { %v1770_v59 = vadd.f32 %v1769_v0, %v1705_v25  ;;  %v1707_v11 = vpop.f32.mrf.mxu2 }
 0x287   : > { %v1708_v57 = vadd.f32 %v1707_v11, %v1643_v37 }
 0x288   : > { %v1919_v35 = vadd.f32 %v3565_v62, %v1770_v59 }
 0x28a   : > { %1951 = vst [vmem:[%s3421_s3 + $0x48] sm:$0xff] %v1919_v35 }
 0x28c   : > { %v1583_v56 = vpop.f32.mrf.mxu0  ;;  %v1648_v18 = vpop.f32.mrf.mxu1 }
 0x28d   : > { %v1772_v20 = vpop.f32.mrf.mxu3  ;;  %v1649_v39 = vadd.f32 %v1648_v18, %v1583_v56 }
 0x28e   : > { %v1773_v29 = vadd.f32 %v1772_v20, %v1708_v57  ;;  %v1710_v52 = vpop.f32.mrf.mxu2 }
 0x28f   : > { %v1711_v17 = vadd.f32 %v1710_v52, %v1646_v32 }
 0x290   : > { %v1921_v46 = vadd.f32 %v3565_v62, %v1773_v29 }
 0x292   : > { %1953 = vst [vmem:[%s3421_s3 + $0x58] sm:$0xff] %v1921_v46 }
 0x294   : > { %v1586_v14 = vpop.f32.mrf.mxu0  ;;  %v1651_v45 = vpop.f32.mrf.mxu1 }
 0x295   : > { %v1775_v1 = vpop.f32.mrf.mxu3  ;;  %v1652_v63 = vadd.f32 %v1651_v45, %v1586_v14 }
 0x296   : > { %v1776_v4 = vadd.f32 %v1775_v1, %v1711_v17  ;;  %v1713_v2 = vpop.f32.mrf.mxu2 }
 0x297   : > { %v1714_v31 = vadd.f32 %v1713_v2, %v1649_v39 }
 0x298   : > { %v1923_v36 = vadd.f32 %v3565_v62, %v1776_v4 }
 0x29a   : > { %1955 = vst [vmem:[%s3421_s3 + $0x68] sm:$0xff] %v1923_v36 }
 0x29c   : > { %v1589_v61 = vpop.f32.mrf.mxu0  ;;  %v1654_v26 = vpop.f32.mrf.mxu1 }
 0x29d   : > { %v1778_v30 = vpop.f32.mrf.mxu3  ;;  %v1655_v3 = vadd.f32 %v1654_v26, %v1589_v61 }
 0x29e   : > { %v1779_v58 = vadd.f32 %v1778_v30, %v1714_v31  ;;  %v1716_v13 = vpop.f32.mrf.mxu2 }
 0x29f   : > { %v1717_v40 = vadd.f32 %v1716_v13, %v1652_v63 }
 0x2a0   : > { %v1925_v7 = vadd.f32 %v3565_v62, %v1779_v58 }
 0x2a2   : > { %1957 = vst [vmem:[%s3421_s3 + $0x78] sm:$0xff] %v1925_v7 }
 0x2a4   : > { %v1592_v49 = vpop.f32.mrf.mxu0  ;;  %v1657_v38 = vpop.f32.mrf.mxu1 }
 0x2a5   : > { %v1781_v43 = vpop.f32.mrf.mxu3  ;;  %v1658_v47 = vadd.f32 %v1657_v38, %v1592_v49 }
 0x2a6   : > { %v1782_v44 = vadd.f32 %v1781_v43, %v1717_v40  ;;  %v1719_v51 = vpop.f32.mrf.mxu2 }
 0x2a7   : > { %v1720_v19 = vadd.f32 %v1719_v51, %v1655_v3 }
 0x2a8   : > { %v1927_v16 = vadd.f32 %v3565_v62, %v1782_v44 }
 0x2aa   : > { %1959 = vst [vmem:[%s3421_s3 + $0x88] sm:$0xff] %v1927_v16 }
 0x2ac   : > { %v1595_v5 = vpop.f32.mrf.mxu0  ;;  %v1660_v6 = vpop.f32.mrf.mxu1 }
 0x2ad   : > { %v1784_v33 = vpop.f32.mrf.mxu3  ;;  %v1661_v8 = vadd.f32 %v1660_v6, %v1595_v5 }
 0x2ae   : > { %v1785_v15 = vadd.f32 %v1784_v33, %v1720_v19  ;;  %v1722_v53 = vpop.f32.mrf.mxu2 }
 0x2af   : > { %v1723_v27 = vadd.f32 %v1722_v53, %v1658_v47 }
 0x2b0   : > { %v1929_v54 = vadd.f32 %v3565_v62, %v1785_v15 }
 0x2b2   : > { %1961 = vst [vmem:[%s3421_s3 + $0x98] sm:$0xff] %v1929_v54 }
 0x2b4   : > { %v1598_v50 = vpop.f32.mrf.mxu0  ;;  %v1663_v41 = vpop.f32.mrf.mxu1 }
 0x2b5   : > { %v1787_v24 = vpop.f32.mrf.mxu3  ;;  %v1664_v55 = vadd.f32 %v1663_v41, %v1598_v50 }
 0x2b6   : > { %v1788_v34 = vadd.f32 %v1787_v24, %v1723_v27  ;;  %v1725_v48 = vpop.f32.mrf.mxu2 }
 0x2b7   : > { %v1726_v22 = vadd.f32 %v1725_v48, %v1661_v8 }
 0x2b8   : > { %v1931_v23 = vadd.f32 %v3565_v62, %v1788_v34 }
 0x2ba   : > { %1963 = vst [vmem:[%s3421_s3 + $0xa8] sm:$0xff] %v1931_v23 }
 0x2bc   : > { %v1601_v9 = vpop.f32.mrf.mxu0  ;;  %v1666_v25 = vpop.f32.mrf.mxu1 }
 0x2bd   : > { %v1790_v12 = vpop.f32.mrf.mxu3  ;;  %v1667_v35 = vadd.f32 %v1666_v25, %v1601_v9 }
 0x2be   : > { %v1791_v21 = vadd.f32 %v1790_v12, %v1726_v22  ;;  %v1728_v10 = vpop.f32.mrf.mxu2 }
 0x2bf   : > { %v1729_v60 = vadd.f32 %v1728_v10, %v1664_v55 }
 0x2c0   : > { %v1933_v28 = vadd.f32 %v3565_v62, %v1791_v21 }
 0x2c2   : > { %1965 = vst [vmem:[%s3421_s3 + $0xb8] sm:$0xff] %v1933_v28 }
 0x2c4   : > { %v1604_v37 = vpop.f32.mrf.mxu0  ;;  %v1669_v56 = vpop.f32.mrf.mxu1 }
 0x2c5   : > { %v1793_v42 = vpop.f32.mrf.mxu3  ;;  %v1670_v46 = vadd.f32 %v1669_v56, %v1604_v37 }
 0x2c6   : > { %v1794_v0 = vadd.f32 %v1793_v42, %v1729_v60  ;;  %v1731_v59 = vpop.f32.mrf.mxu2 }
 0x2c7   : > { %v1732_v57 = vadd.f32 %v1731_v59, %v1667_v35 }
 0x2c8   : > { %v1935_v11 = vadd.f32 %v3565_v62, %v1794_v0 }
 0x2ca   : > { %1967 = vst [vmem:[%s3421_s3 + $0xc8] sm:$0xff] %v1935_v11 }
 0x2cc   : > { %v1607_v45 = vpop.f32.mrf.mxu0  ;;  %v1672_v1 = vpop.f32.mrf.mxu1 }
 0x2cd   : > { %v1796_v18 = vpop.f32.mrf.mxu3  ;;  %v1673_v36 = vadd.f32 %v1672_v1, %v1607_v45 }
 0x2ce   : > { %v1797_v20 = vadd.f32 %v1796_v18, %v1732_v57  ;;  %v1734_v29 = vpop.f32.mrf.mxu2 }
 0x2cf   : > { %v1735_v32 = vadd.f32 %v1734_v29, %v1670_v46 }
 0x2d0   : > { %v1937_v52 = vadd.f32 %v3565_v62, %v1797_v20 }
 0x2d2   : > { %1969 = vst [vmem:[%s3421_s3 + $0xd8] sm:$0xff] %v1937_v52 }
 0x2d5   : > { %v1799_v17 = vpop.f32.mrf.mxu3 }
 0x2d6   : > { %v1800_v14 = vadd.f32 %v1799_v17, %v1735_v32  ;;  %v1737_v2 = vpop.f32.mrf.mxu2 }
 0x2d7   : > { %v1738_v39 = vadd.f32 %v1737_v2, %v1673_v36 }
 0x2d8   : > { %v1939_v4 = vadd.f32 %v3565_v62, %v1800_v14 }
 0x2da   : > { %1971 = vst [vmem:[%s3421_s3 + $0xe8] sm:$0xff] %v1939_v4 }
 0x2dd   : > { %v1802_v31 = vpop.f32.mrf.mxu3 }
 0x2de   : > { %v1803_v61 = vadd.f32 %v1802_v31, %v1738_v39 }
 0x2e0   : > { %v1941_v26 = vadd.f32 %v3565_v62, %v1803_v61 }
 0x2e2   : > { %1973 = vst [vmem:[%s3421_s3 + $0xf8] sm:$0xff] %v1941_v26 }
 0x2e3   : > { %2380 = shalt.err (!%p2377_p12)
}
 0x2e4   : > { %s2452_s10 = smov 256   ;;  %s2453_s11 = smov 16  }
 0x2e5   : > { %2148 = dma.vmem_to_hbm [thread:$0]  (%p2575_p0), %s1989_s7, 4096, %s1991_s16, %s1975_s21, %s2452_s10, %s2452_s10, %s2453_s11  }
 0x2e6 PF: > { %p2175_p13 = scmp.ge.s32.totalorder %s2443_s23, 2  ;;  %s2005_s1 = sand.u32 1, %s2423_s18  }
 0x2e7   : > { %s2006_s2 = scalar_lea.sflag [#allocation5], %s2005_s1 }
 0x2e8   : > { %p2165_p3 = pnand %p2175_p13, %p2533_p6 }
 0x2ea   : > { %p2166_p5 = pneg %p2165_p3 }
 0x2ec   : > { %2418 = dma.done.wait (%p2166_p5), %s2006_s2, 4096  }
 0x2ed   : > { %2420 = vsyncadd (%p2166_p5), %s2006_s2, 4294963200  ;;  %s23_s23 = sadd.s32 1, %s2443_s23   ;;  %s3848_s18 = smov %s2427_s19 }
 0x2ee   : > { %p20_p7 = scmp.ge.s32.totalorder %s23_s23, 10   ;;  %s3849_s19 = smov %s2431_s20 }
 0x2ef   : > { %s3850_s20 = smov %s2591_s27  ;;  %s3851_s21 = smov %s2439_s22 }
 0x2f0   : > { %s3852_s22 = smov %s3854_s15  ;;  %22 = sbr.rel (!%p20_p7) target bundleno = 12 (0xc), region = 108 }
 0x2f5   :  { %2012 = vsyncpa [#allocation4], 1 }
 0x2f6   :  { %2014 = vsyncpa [#allocation4 + $0x1], 1 }
 0x2f7   :  { %2015 = vsyncpa [#allocation7], 1 }
 0x2f8   :  { %2016 = vsyncpa [#allocation10], 1 }
 0x2f9   :  { %2017 = vsyncpa [#allocation5], 1 }
 0x2fa   :  { %2019 = vsyncpa [#allocation5 + $0x1], 1 }

// kernel: tpu_custom_call.1
= control target key start
LH: loop header
LB: loop body
LE: loop exit
PB: predicated region body
PF: predicated region fallthrough
CT: control target
= control target key end

     0   :  { %s3637_s0 = inlined_call_operand.hbm [shape: f32[1024,256], index: 0, kind: input, shape index: {}]   ;;  %s3638_s1 = inlined_call_operand.hbm [shape: f32[256,512], index: 1, kind: input, shape index: {}]   ;;  %s3639_s2 = inlined_call_operand.hbm [shape: f32[1,512], index: 2, kind: input, shape index: {}]   ;;  %s3640_s3 = inlined_call_operand.hbm [shape: f32[512,256], index: 3, kind: input, shape index: {}]   ;;  %s3641_s4 = inlined_call_operand.vmem [shape: f32[1,256], index: 4, kind: input, shape index: {}]   ;;  %s3642_s5 = inlined_call_operand.hbm [shape: f32[1024,256], index: 5, kind: output, shape index: {}]  }
   0x1   :  { %3723 = sst [smem:[#allocation34_spill]] %s3638_s1 }
   0x2   :  { %3724 = sst [smem:[#allocation35_spill]] %s3639_s2 }
   0x3   :  { %3725 = sst [smem:[#allocation36_spill]] %s3640_s3 }
   0x4   :  { %10 = vsyncpa [#allocation4], 0 }
   0x5   :  { %12 = vsyncpa [#allocation4 + $0x1], 0 }
   0x6   :  { %13 = vsyncpa [#allocation7], 0 }
   0x7   :  { %14 = vsyncpa [#allocation10], 0 }
   0x8   :  { %15 = vsyncpa [#allocation5], 0 }
   0x9   :  { %17 = vsyncpa [#allocation5 + $0x1], 0  ;;  %s2484_s18 = smov 0   ;;  %s2486_s19 = smov 0  }
   0xa   :  { %s2488_s20 = smov 0   ;;  %s2490_s21 = smov 0  }
   0xb   :  { %s2492_s22 = smov 0   ;;  %s2494_s23 = smov 0  }
   0xc LB: > { %s2107_s24 = sadd.s32 4294967295, %s2443_s23   ;;  %s2108_s25 = sadd.s32 4294967294, %s2443_s23   ;;  %s2443_s23 = sphi %s2494_s23, %s23_s23   ;;  %s2439_s22 = sphi %s2492_s22, %s3852_s22   ;;  %s2435_s21 = sphi %s2490_s21, %s3851_s21   ;;  %s2431_s20 = sphi %s2488_s20, %s3850_s20   ;;  %s2427_s19 = sphi %s2486_s19, %s3849_s19   ;;  %s2423_s18 = sphi %s2484_s18, %s3848_s18  }
   0xd   : > { %p55_p0 = scmp.ne.s32.totalorder %s2427_s19, %s2423_s18  ;;  %p2518_p1 = scmp.eq.s32.totalorder %s2107_s24, 0 }
   0xe   : > { %p2522_p2 = scmp.eq.s32.totalorder %s2107_s24, 7  ;;  %p184_p3 = scmp.eq.s32.totalorder %s2108_s25, 7 }
   0xf   : > { %p2528_p4 = por %p2518_p1, %p55_p0  ;;  %p2109_p5 = scmp.ge.s32.totalorder %s2443_s23, 1 }
  0x10   : > { %p2533_p6 = por %p184_p3, %p55_p0  ;;  %p191_p7 = scmp.lt.s32.totalorder %s2443_s23, 9 }
  0x11   : > { %s3730_s1 = sld [smem:[#allocation34_spill]]  ;;  %s2445_s9 = smov [#allocation6]  }
  0x12   : > { %p2541_p8 = pnand %p2109_p5, %p191_p7  ;;  %s207_s10 = sshll.u32 %s2445_s9, 4  ;;  %s208_s10 = int_to_ptr.vmem [resolvable:$true] %s207_s10 }
  0x13   : > { %s3733_s2 = sld [smem:[#allocation35_spill]]  ;;  %s2446_s15 = smov 512  }
  0x14   : > { %p2150_p9 = pneg %p2541_p8  ;;  %s2447_s16 = smov 32  }
  0x15   : > { %s2448_s17 = smov [#allocation8]   ;;  %s3734_s3 = sld [smem:[#allocation36_spill]] }
  0x16   : > { %p2549_p10 = pnand %p2150_p9, %p2518_p1  ;;  %s224_s24 = sshll.u32 %s2448_s17, 4  ;;  %s225_s24 = int_to_ptr.vmem [resolvable:$true] %s224_s24 }
  0x17   : > { %s205_s7 = sshll.u32 %s3730_s1, 4  ;;  %s2449_s9 = smov [#allocation9]   ;;  %s206_s7 = int_to_ptr.hbm [resolvable:$true] %s205_s7 }
  0x18   : > { %2153 = dma.hbm_to_vmem [thread:$0]  (!%p2549_p10), %s206_s7, 16384, %s208_s10, [#allocation7], %s2446_s15, %s2446_s15, %s2447_s16  }
  0x19   : > { %s222_s14 = sshll.u32 %s3733_s2, 4  ;;  %s239_s12 = sshll.u32 %s2449_s9, 4  ;;  %s223_s14 = int_to_ptr.hbm [resolvable:$true] %s222_s14  ;;  %s240_s12 = int_to_ptr.vmem [resolvable:$true] %s239_s12 }
  0x1a   : > { %2156 = dma.hbm_to_vmem [thread:$0]  (!%p2549_p10), %s223_s14, 64, %s225_s24, [#allocation7]  }
  0x1b   : > { %s237_s6 = sshll.u32 %s3734_s3, 4  ;;  %s3643_s13 = smov 256   ;;  %s238_s6 = int_to_ptr.hbm [resolvable:$true] %s237_s6 }
  0x1c   : > { %s3644_s7 = smov 16   ;;  %s42_s10 = sadd.s32 1, %s2431_s20 }
  0x1d   : > { %2159 = dma.hbm_to_vmem [thread:$0]  (!%p2549_p10), %s238_s6, 16384, %s240_s12, [#allocation10], %s3643_s13, %s3643_s13, %s3644_s7  }
  0x1e   : > { %s35_s15 = sadd.s32 1, %s2439_s22  ;;  %p49_p11 = scmp.ne.s32.totalorder %s2431_s20, %s2427_s19 }
  0x1f   : > { %p37_p12 = scmp.ge.s32.totalorder %s35_s15, 8  ;;  %p50_p13 = scmp.eq.s32.totalorder %s2443_s23, 0 }
  0x20   : > { %p2575_p0 = por %p2522_p2, %p49_p11  ;;  %p2171_p3 = scmp.lt.s32.totalorder %s2443_s23, 8 }
  0x21   : > { %s3854_s15 = smov (%p37_p12, %s35_s15), 0  ;;  %p2582_p5 = por %p50_p13, %p49_p11 }
  0x22   : > { %s256_s16 = sand.u32 1, %s2431_s20   ;;  %s39_s17 = ssub.s32 %s2439_s22, %s3854_s15 }
  0x23   : > { %p40_p7 = scmp.eq.s32.totalorder %s39_s17, 0  ;;  %s2114_s24 = sshll.u32 %s256_s16, 8 }
  0x24   : > { %s2131_s25 = sshll.u32 %s2439_s22, 8  ;;  %s260_s12 = scalar_lea.vmem [#allocation3], %s2114_s24 }
  0x25   : > { %s2591_s27 = scalar_select %p40_p7, %s2431_s20, %s42_s10  }
  0x26   : > { %s266_s9 = scalar_lea.hbm %s3637_s0, %s2131_s25  ;;  %s269_s13 = sshll.u32 %s260_s12, 4  ;;  %s270_s13 = int_to_ptr.vmem [resolvable:$true] %s269_s13 }
  0x27   : > { %s267_s7 = sshll.u32 %s266_s9, 4  ;;  %p2161_p2 = pnand %p2171_p3, %p2582_p5  ;;  %s268_s7 = int_to_ptr.hbm [resolvable:$true] %s267_s7 }
  0x28   : > { %s257_s1 = scalar_lea.sflag [#allocation4], %s256_s16  ;;  %s3737_s2 = smov 16  }
  0x29   : > { %s3738_s3 = smov 256   ;;  %281 = sbr.rel (%p2541_p8) target bundleno = 742 (0x2e6), region = 40 }
  0x2a   : > { %2163 = dma.hbm_to_vmem [thread:$0]  (!%p2161_p2), %s268_s7, 4096, %s270_s13, %s257_s1, %s3738_s3, %s3738_s3, %s3737_s2  }
  0x2e   : > { %s2606_s10 = sand.u32 1, %s2427_s19  }
  0x2f   : > { %s2119_s17 = sshll.u32 %s2606_s10, 8  ;;  %s284_s24 = scalar_lea.sflag [#allocation4], %s2606_s10 }
  0x30   : > { %s2612_s11 = scalar_lea.vmem [#allocation3], %s2119_s17 }
  0x31   : > { %2406 = dma.done.wait (%p2528_p4), %s284_s24, 4096  }
  0x32   : > { %2408 = vsyncadd (%p2528_p4), %s284_s24, 4294963200 }
  0x33   : > { %2410 = dma.done.wait (%p2518_p1), [#allocation7], 16448  }
  0x34   : > { %2412 = vsyncadd (%p2518_p1), [#allocation7], 4294950848 }
  0x35   : > { %2414 = dma.done.wait (%p2518_p1), [#allocation10], 16384  }
  0x36   : > { %2416 = vsyncadd (%p2518_p1), [#allocation10], 4294950912  ;;  %v463_v0 = vld [vmem:[#allocation6 + $0x1e0] sm:$0xff]  ;;  %v464_v2 = vld [vmem:[#allocation6 + $0x1e8] sm:$0xff]  ;;  %s3421_s3 = scalar_lea.vmem [#allocation11], %s2119_s17  ;;  %s2133_s26 = sshll.u32 %s2435_s21, 8 }
  0x37   : > { %v527_v1 = vld [vmem:[#allocation6 + $0x3e0] sm:$0xff]  ;;  %541 = vmatpush.msra.mxu0 %v463_v0  ;;  %v460_v5 = vld [vmem:[#allocation6 + $0x1c8] sm:$0xff]  ;;  %671 = vmatpush.msra.mxu2 %v464_v2  ;;  %v466_v2 = vld [vmem:[#allocation6 + $0x1f8] sm:$0xff]  ;;  %s1987_s13 = scalar_lea.hbm %s3642_s5, %s2133_s26  ;;  %s1988_s7 = sshll.u32 %s3421_s3, 4  ;;  %s1989_s7 = int_to_ptr.vmem [resolvable:$true] %s1988_s7 }
  0x38   : > { %606 = vmatpush.msra.mxu1 %v527_v1  ;;  %v459_v3 = vld [vmem:[#allocation6 + $0x1c0] sm:$0xff]  ;;  %v528_v6 = vld [vmem:[#allocation6 + $0x3e8] sm:$0xff]  ;;  %s1990_s16 = sshll.u32 %s1987_s13, 4  ;;  %s1975_s21 = scalar_lea.sflag [#allocation5], %s2606_s10  ;;  %s1991_s16 = int_to_ptr.hbm [resolvable:$true] %s1990_s16 }
  0x39   : > { %v523_v4 = vld [vmem:[#allocation6 + $0x3c0] sm:$0xff]  ;;  %542 = vmatpush.msra.mxu0 %v459_v3  ;;  %v456_v9 = vld [vmem:[#allocation6 + $0x1a8] sm:$0xff]  ;;  %672 = vmatpush.msra.mxu2 %v460_v5  ;;  %v530_v3 = vld [vmem:[#allocation6 + $0x3f8] sm:$0xff]  ;;  %s2367_s25 = sshra.s32 %s1991_s16, 4  ;;  %s2373_s12 = scalar_lea.hbm %s3642_s5, 2048  ;;  %s2368_s25 = int_to_ptr.hbm [resolvable:$true] %s2367_s25 }
  0x3a   : > { %v455_v7 = vld [vmem:[#allocation6 + $0x1a0] sm:$0xff]  ;;  %607 = vmatpush.msra.mxu1 %v523_v4  ;;  %v524_v10 = vld [vmem:[#allocation6 + $0x3c8] sm:$0xff]  ;;  %736 = vmatpush.msra.mxu3 %v528_v6  ;;  %v465_v4 = vld [vmem:[#allocation6 + $0x1f0] sm:$0xff]  ;;  %s2369_s30 = scalar_lea.hbm %s2368_s25, 256  ;;  %p2374_p9 = scmp.lt.s32.totalorder %s2368_s25, %s3642_s5 }
  0x3b   : > { %v519_v8 = vld [vmem:[#allocation6 + $0x3a0] sm:$0xff]  ;;  %543 = vmatpush.msra.mxu0 %v455_v7  ;;  %v452_v13 = vld [vmem:[#allocation6 + $0x188] sm:$0xff]  ;;  %673 = vmatpush.msra.mxu2 %v456_v9  ;;  %v529_v5 = vld [vmem:[#allocation6 + $0x3f0] sm:$0xff]  ;;  %p2370_p1 = scmp.ne.s32.totalorder %s2368_s25, %s2369_s30  ;;  %p2375_p10 = scmp.lt.s32.totalorder %s2373_s12, %s2369_s30 }
  0x3c   : > { %v451_v11 = vld [vmem:[#allocation6 + $0x180] sm:$0xff]  ;;  %608 = vmatpush.msra.mxu1 %v519_v8  ;;  %v520_v14 = vld [vmem:[#allocation6 + $0x3a8] sm:$0xff]  ;;  %737 = vmatpush.msra.mxu3 %v524_v10  ;;  %v462_v6 = vld [vmem:[#allocation6 + $0x1d8] sm:$0xff] }
  0x3d   : > { %v515_v12 = vld [vmem:[#allocation6 + $0x380] sm:$0xff]  ;;  %544 = vmatpush.msra.mxu0 %v451_v11  ;;  %v448_v17 = vld [vmem:[#allocation6 + $0x168] sm:$0xff]  ;;  %674 = vmatpush.msra.mxu2 %v452_v13  ;;  %v526_v7 = vld [vmem:[#allocation6 + $0x3d8] sm:$0xff]  ;;  %p2371_p4 = pnand %p2370_p1, %p2575_p0  ;;  %p2376_p11 = por %p2375_p10, %p2374_p9 }
  0x3e   : > { %v447_v15 = vld [vmem:[#allocation6 + $0x160] sm:$0xff]  ;;  %609 = vmatpush.msra.mxu1 %v515_v12  ;;  %v516_v18 = vld [vmem:[#allocation6 + $0x388] sm:$0xff]  ;;  %738 = vmatpush.msra.mxu3 %v520_v14  ;;  %v461_v8 = vld [vmem:[#allocation6 + $0x1d0] sm:$0xff] }
  0x3f   : > { %v511_v16 = vld [vmem:[#allocation6 + $0x360] sm:$0xff]  ;;  %545 = vmatpush.msra.mxu0 %v447_v15  ;;  %v444_v21 = vld [vmem:[#allocation6 + $0x148] sm:$0xff]  ;;  %675 = vmatpush.msra.mxu2 %v448_v17  ;;  %v525_v9 = vld [vmem:[#allocation6 + $0x3d0] sm:$0xff]  ;;  %p2372_p8 = pneg %p2371_p4 }
  0x40   : > { %v443_v19 = vld [vmem:[#allocation6 + $0x140] sm:$0xff]  ;;  %610 = vmatpush.msra.mxu1 %v511_v16  ;;  %v512_v22 = vld [vmem:[#allocation6 + $0x368] sm:$0xff]  ;;  %739 = vmatpush.msra.mxu3 %v516_v18  ;;  %v458_v10 = vld [vmem:[#allocation6 + $0x1b8] sm:$0xff] }
  0x41   : > { %v507_v20 = vld [vmem:[#allocation6 + $0x340] sm:$0xff]  ;;  %546 = vmatpush.msra.mxu0 %v443_v19  ;;  %v440_v25 = vld [vmem:[#allocation6 + $0x128] sm:$0xff]  ;;  %676 = vmatpush.msra.mxu2 %v444_v21  ;;  %v522_v11 = vld [vmem:[#allocation6 + $0x3b8] sm:$0xff]  ;;  %p2377_p12 = pnand %p2376_p11, %p2372_p8 }
  0x42   : > { %v439_v23 = vld [vmem:[#allocation6 + $0x120] sm:$0xff]  ;;  %611 = vmatpush.msra.mxu1 %v507_v20  ;;  %v508_v26 = vld [vmem:[#allocation6 + $0x348] sm:$0xff]  ;;  %740 = vmatpush.msra.mxu3 %v512_v22  ;;  %v457_v12 = vld [vmem:[#allocation6 + $0x1b0] sm:$0xff] }
  0x43   : > { %v503_v24 = vld [vmem:[#allocation6 + $0x320] sm:$0xff]  ;;  %547 = vmatpush.msra.mxu0 %v439_v23  ;;  %v436_v29 = vld [vmem:[#allocation6 + $0x108] sm:$0xff]  ;;  %677 = vmatpush.msra.mxu2 %v440_v25  ;;  %v2637_v13 = vld [vmem:[%s2612_s11 + $0x10] sm:$0xff] }
  0x44   : > { %v435_v27 = vld [vmem:[#allocation6 + $0x100] sm:$0xff]  ;;  %612 = vmatpush.msra.mxu1 %v503_v24  ;;  %v504_v30 = vld [vmem:[#allocation6 + $0x328] sm:$0xff]  ;;  %741 = vmatpush.msra.mxu3 %v508_v26  ;;  %v2640_v14 = vld [vmem:[%s2612_s11 + $0x18] sm:$0xff] }
  0x45   : > { %v499_v28 = vld [vmem:[#allocation6 + $0x300] sm:$0xff]  ;;  %548 = vmatpush.msra.mxu0 %v435_v27  ;;  %v432_v33 = vld [vmem:[#allocation6 + $0xe8] sm:$0xff]  ;;  %678 = vmatpush.msra.mxu2 %v436_v29  ;;  %v521_v15 = vld [vmem:[#allocation6 + $0x3b0] sm:$0xff] }
  0x46   : > { %v431_v31 = vld [vmem:[#allocation6 + $0xe0] sm:$0xff]  ;;  %613 = vmatpush.msra.mxu1 %v499_v28  ;;  %v500_v34 = vld [vmem:[#allocation6 + $0x308] sm:$0xff]  ;;  %742 = vmatpush.msra.mxu3 %v504_v30  ;;  %v454_v16 = vld [vmem:[#allocation6 + $0x198] sm:$0xff] }
  0x47   : > { %v495_v32 = vld [vmem:[#allocation6 + $0x2e0] sm:$0xff]  ;;  %549 = vmatpush.msra.mxu0 %v431_v31  ;;  %v428_v37 = vld [vmem:[#allocation6 + $0xc8] sm:$0xff]  ;;  %679 = vmatpush.msra.mxu2 %v432_v33  ;;  %v518_v17 = vld [vmem:[#allocation6 + $0x398] sm:$0xff] }
  0x48   : > { %v427_v35 = vld [vmem:[#allocation6 + $0xc0] sm:$0xff]  ;;  %614 = vmatpush.msra.mxu1 %v495_v32  ;;  %v496_v38 = vld [vmem:[#allocation6 + $0x2e8] sm:$0xff]  ;;  %743 = vmatpush.msra.mxu3 %v500_v34  ;;  %v453_v18 = vld [vmem:[#allocation6 + $0x190] sm:$0xff] }
  0x49   : > { %v491_v36 = vld [vmem:[#allocation6 + $0x2c0] sm:$0xff]  ;;  %550 = vmatpush.msra.mxu0 %v427_v35  ;;  %v424_v41 = vld [vmem:[#allocation6 + $0xa8] sm:$0xff]  ;;  %680 = vmatpush.msra.mxu2 %v428_v37  ;;  %v517_v19 = vld [vmem:[#allocation6 + $0x390] sm:$0xff] }
  0x4a   : > { %v423_v39 = vld [vmem:[#allocation6 + $0xa0] sm:$0xff]  ;;  %615 = vmatpush.msra.mxu1 %v491_v36  ;;  %v492_v42 = vld [vmem:[#allocation6 + $0x2c8] sm:$0xff]  ;;  %744 = vmatpush.msra.mxu3 %v496_v38  ;;  %v450_v20 = vld [vmem:[#allocation6 + $0x178] sm:$0xff] }
  0x4b   : > { %v487_v40 = vld [vmem:[#allocation6 + $0x2a0] sm:$0xff]  ;;  %551 = vmatpush.msra.mxu0 %v423_v39  ;;  %v420_v45 = vld [vmem:[#allocation6 + $0x88] sm:$0xff]  ;;  %681 = vmatpush.msra.mxu2 %v424_v41  ;;  %v514_v21 = vld [vmem:[#allocation6 + $0x378] sm:$0xff] }
  0x4c   : > { %v419_v43 = vld [vmem:[#allocation6 + $0x80] sm:$0xff]  ;;  %616 = vmatpush.msra.mxu1 %v487_v40  ;;  %v488_v46 = vld [vmem:[#allocation6 + $0x2a8] sm:$0xff]  ;;  %745 = vmatpush.msra.mxu3 %v492_v42  ;;  %v449_v22 = vld [vmem:[#allocation6 + $0x170] sm:$0xff] }
  0x4d   : > { %v483_v44 = vld [vmem:[#allocation6 + $0x280] sm:$0xff]  ;;  %552 = vmatpush.msra.mxu0 %v419_v43  ;;  %v416_v49 = vld [vmem:[#allocation6 + $0x68] sm:$0xff]  ;;  %682 = vmatpush.msra.mxu2 %v420_v45  ;;  %v513_v23 = vld [vmem:[#allocation6 + $0x370] sm:$0xff] }
  0x4e   : > { %v415_v47 = vld [vmem:[#allocation6 + $0x60] sm:$0xff]  ;;  %617 = vmatpush.msra.mxu1 %v483_v44  ;;  %v484_v50 = vld [vmem:[#allocation6 + $0x288] sm:$0xff]  ;;  %746 = vmatpush.msra.mxu3 %v488_v46  ;;  %v446_v24 = vld [vmem:[#allocation6 + $0x158] sm:$0xff] }
  0x4f   : > { %v479_v48 = vld [vmem:[#allocation6 + $0x260] sm:$0xff]  ;;  %553 = vmatpush.msra.mxu0 %v415_v47  ;;  %v412_v53 = vld [vmem:[#allocation6 + $0x48] sm:$0xff]  ;;  %683 = vmatpush.msra.mxu2 %v416_v49  ;;  %v510_v25 = vld [vmem:[#allocation6 + $0x358] sm:$0xff] }
  0x50   : > { %v411_v51 = vld [vmem:[#allocation6 + $0x40] sm:$0xff]  ;;  %618 = vmatpush.msra.mxu1 %v479_v48  ;;  %v480_v54 = vld [vmem:[#allocation6 + $0x268] sm:$0xff]  ;;  %747 = vmatpush.msra.mxu3 %v484_v50  ;;  %v445_v26 = vld [vmem:[#allocation6 + $0x150] sm:$0xff] }
  0x51   : > { %v475_v52 = vld [vmem:[#allocation6 + $0x240] sm:$0xff]  ;;  %554 = vmatpush.msra.mxu0 %v411_v51  ;;  %v408_v57 = vld [vmem:[#allocation6 + $0x28] sm:$0xff]  ;;  %684 = vmatpush.msra.mxu2 %v412_v53  ;;  %v509_v29 = vld [vmem:[#allocation6 + $0x350] sm:$0xff] }
  0x52   : > { %v407_v55 = vld [vmem:[#allocation6 + $0x20] sm:$0xff]  ;;  %619 = vmatpush.msra.mxu1 %v475_v52  ;;  %v476_v58 = vld [vmem:[#allocation6 + $0x248] sm:$0xff]  ;;  %748 = vmatpush.msra.mxu3 %v480_v54  ;;  %v442_v30 = vld [vmem:[#allocation6 + $0x138] sm:$0xff] }
  0x53   : > { %v471_v56 = vld [vmem:[#allocation6 + $0x220] sm:$0xff]  ;;  %555 = vmatpush.msra.mxu0 %v407_v55  ;;  %v404_v61 = vld [vmem:[#allocation6 + $0x8] sm:$0xff]  ;;  %685 = vmatpush.msra.mxu2 %v408_v57  ;;  %v506_v31 = vld [vmem:[#allocation6 + $0x338] sm:$0xff] }
  0x54   : > { %v403_v59 = vld [vmem:[#allocation6] sm:$0xff]  ;;  %620 = vmatpush.msra.mxu1 %v471_v56  ;;  %v472_v62 = vld [vmem:[#allocation6 + $0x228] sm:$0xff]  ;;  %749 = vmatpush.msra.mxu3 %v476_v58  ;;  %v441_v32 = vld [vmem:[#allocation6 + $0x130] sm:$0xff] }
  0x55   : > { %v467_v60 = vld [vmem:[#allocation6 + $0x200] sm:$0xff]  ;;  %v2630_v0 = vld [vmem:[%s2612_s11 + $0x8] sm:$0xff]  ;;  %556 = vmatpush.msra.mxu0 %v403_v59  ;;  %686 = vmatpush.msra.mxu2 %v404_v61  ;;  %v505_v33 = vld [vmem:[#allocation6 + $0x330] sm:$0xff] }
  0x56   : > { %v2627_v63 = vld [vmem:[%s2612_s11] sm:$0xff]  ;;  %621 = vmatpush.msra.mxu1 %v467_v60  ;;  %v468_v1 = vld [vmem:[#allocation6 + $0x208] sm:$0xff]  ;;  %750 = vmatpush.msra.mxu3 %v472_v62  ;;  %v2657_v34 = vld [vmem:[%s2612_s11 + $0x30] sm:$0xff] }
  0x57   : > { %557 = vmatmul.f32.vlgmr.msra.gmra.mxu0 %v2627_v63  ;;  %622 = vmatmul.f32.vlgmr.msra.gmra.mxu1 %v2630_v0  ;;  %v2647_v27 = vld [vmem:[%s2612_s11 + $0x20] sm:$0xff]  ;;  %v2650_v28 = vld [vmem:[%s2612_s11 + $0x28] sm:$0xff]  ;;  %v2660_v35 = vld [vmem:[%s2612_s11 + $0x38] sm:$0xff] }
  0x58   : > { %687 = vmatmul.f32.vlgmr.msra.gmra.mxu2 %v2627_v63  ;;  %751 = vmatpush.msra.mxu3 %v468_v1  ;;  %v438_v36 = vld [vmem:[#allocation6 + $0x118] sm:$0xff]  ;;  %v437_v38 = vld [vmem:[#allocation6 + $0x110] sm:$0xff]  ;;  %v2667_v40 = vld [vmem:[%s2612_s11 + $0x40] sm:$0xff] }
  0x59   : > { %931 = vmatpush.msrb.mxu2 %v466_v2  ;;  %752 = vmatmul.f32.vlgmr.msra.gmra.mxu3 %v2630_v0  ;;  %v502_v37 = vld [vmem:[#allocation6 + $0x318] sm:$0xff]  ;;  %v501_v39 = vld [vmem:[#allocation6 + $0x310] sm:$0xff]  ;;  %v2670_v41 = vld [vmem:[%s2612_s11 + $0x48] sm:$0xff] }
  0x5a   : > { %996 = vmatpush.msrb.mxu3 %v530_v3  ;;  %801 = vmatpush.msrb.mxu0 %v465_v4  ;;  %v434_v42 = vld [vmem:[#allocation6 + $0xf8] sm:$0xff]  ;;  %v433_v44 = vld [vmem:[#allocation6 + $0xf0] sm:$0xff]  ;;  %v2687_v52 = vld [vmem:[%s2612_s11 + $0x60] sm:$0xff] }
  0x5b   : > { %866 = vmatpush.msrb.mxu1 %v529_v5  ;;  %932 = vmatpush.msrb.mxu2 %v462_v6  ;;  %v498_v43 = vld [vmem:[#allocation6 + $0x2f8] sm:$0xff]  ;;  %v497_v45 = vld [vmem:[#allocation6 + $0x2f0] sm:$0xff]  ;;  %v2690_v53 = vld [vmem:[%s2612_s11 + $0x68] sm:$0xff] }
  0x5c   : > { %997 = vmatpush.msrb.mxu3 %v526_v7  ;;  %802 = vmatpush.msrb.mxu0 %v461_v8  ;;  %v2677_v46 = vld [vmem:[%s2612_s11 + $0x50] sm:$0xff]  ;;  %v2680_v47 = vld [vmem:[%s2612_s11 + $0x58] sm:$0xff]  ;;  %v2707_v2 = vld [vmem:[%s2612_s11 + $0x80] sm:$0xff] }
  0x5d   : > { %867 = vmatpush.msrb.mxu1 %v525_v9  ;;  %933 = vmatpush.msrb.mxu2 %v458_v10  ;;  %v430_v48 = vld [vmem:[#allocation6 + $0xd8] sm:$0xff]  ;;  %v429_v50 = vld [vmem:[#allocation6 + $0xd0] sm:$0xff]  ;;  %v2710_v3 = vld [vmem:[%s2612_s11 + $0x88] sm:$0xff] }
  0x5e   : > { %998 = vmatpush.msrb.mxu3 %v522_v11  ;;  %803 = vmatpush.msrb.mxu0 %v457_v12  ;;  %v494_v49 = vld [vmem:[#allocation6 + $0x2d8] sm:$0xff]  ;;  %v493_v51 = vld [vmem:[#allocation6 + $0x2d0] sm:$0xff] }
  0x5f   : > { %560 = vmatmul.f32.gmra.mxu0 %v2637_v13  ;;  %625 = vmatmul.f32.gmra.mxu1 %v2640_v14  ;;  %v426_v54 = vld [vmem:[#allocation6 + $0xb8] sm:$0xff]  ;;  %v425_v56 = vld [vmem:[#allocation6 + $0xb0] sm:$0xff] }
  0x60   : > { %690 = vmatmul.f32.gmra.mxu2 %v2637_v13  ;;  %868 = vmatpush.msrb.mxu1 %v521_v15  ;;  %v490_v55 = vld [vmem:[#allocation6 + $0x2b8] sm:$0xff]  ;;  %v489_v57 = vld [vmem:[#allocation6 + $0x2b0] sm:$0xff] }
  0x61   : > { %755 = vmatmul.f32.gmra.mxu3 %v2640_v14  ;;  %934 = vmatpush.msrb.mxu2 %v454_v16  ;;  %v2697_v58 = vld [vmem:[%s2612_s11 + $0x70] sm:$0xff]  ;;  %v2700_v59 = vld [vmem:[%s2612_s11 + $0x78] sm:$0xff]  ;;  %v2727_v16 = vld [vmem:[%s2612_s11 + $0xa0] sm:$0xff] }
  0x62   : > { %999 = vmatpush.msrb.mxu3 %v518_v17  ;;  %804 = vmatpush.msrb.mxu0 %v453_v18  ;;  %v422_v60 = vld [vmem:[#allocation6 + $0x98] sm:$0xff]  ;;  %v421_v62 = vld [vmem:[#allocation6 + $0x90] sm:$0xff]  ;;  %v2730_v17 = vld [vmem:[%s2612_s11 + $0xa8] sm:$0xff] }
  0x63   : > { %869 = vmatpush.msrb.mxu1 %v517_v19  ;;  %935 = vmatpush.msrb.mxu2 %v450_v20  ;;  %v486_v61 = vld [vmem:[#allocation6 + $0x298] sm:$0xff]  ;;  %v485_v1 = vld [vmem:[#allocation6 + $0x290] sm:$0xff] }
  0x64   : > { %1000 = vmatpush.msrb.mxu3 %v514_v21  ;;  %805 = vmatpush.msrb.mxu0 %v449_v22  ;;  %v418_v4 = vld [vmem:[#allocation6 + $0x78] sm:$0xff]  ;;  %v417_v6 = vld [vmem:[#allocation6 + $0x70] sm:$0xff] }
  0x65   : > { %870 = vmatpush.msrb.mxu1 %v513_v23  ;;  %936 = vmatpush.msrb.mxu2 %v446_v24  ;;  %v482_v5 = vld [vmem:[#allocation6 + $0x278] sm:$0xff]  ;;  %v481_v7 = vld [vmem:[#allocation6 + $0x270] sm:$0xff] }
  0x66   : > { %1001 = vmatpush.msrb.mxu3 %v510_v25  ;;  %806 = vmatpush.msrb.mxu0 %v445_v26  ;;  %v2717_v8 = vld [vmem:[%s2612_s11 + $0x90] sm:$0xff]  ;;  %v2720_v9 = vld [vmem:[%s2612_s11 + $0x98] sm:$0xff] }
  0x67   : > { %563 = vmatmul.f32.gmra.mxu0 %v2647_v27  ;;  %628 = vmatmul.f32.gmra.mxu1 %v2650_v28  ;;  %v414_v10 = vld [vmem:[#allocation6 + $0x58] sm:$0xff]  ;;  %v413_v12 = vld [vmem:[#allocation6 + $0x50] sm:$0xff] }
  0x68   : > { %693 = vmatmul.f32.gmra.mxu2 %v2647_v27  ;;  %871 = vmatpush.msrb.mxu1 %v509_v29  ;;  %v478_v11 = vld [vmem:[#allocation6 + $0x258] sm:$0xff]  ;;  %v477_v15 = vld [vmem:[#allocation6 + $0x250] sm:$0xff]  ;;  %v2747_v29 = vld [vmem:[%s2612_s11 + $0xc0] sm:$0xff] }
  0x69   : > { %758 = vmatmul.f32.gmra.mxu3 %v2650_v28  ;;  %937 = vmatpush.msrb.mxu2 %v442_v30  ;;  %v410_v18 = vld [vmem:[#allocation6 + $0x38] sm:$0xff]  ;;  %v409_v20 = vld [vmem:[#allocation6 + $0x30] sm:$0xff]  ;;  %v2750_v30 = vld [vmem:[%s2612_s11 + $0xc8] sm:$0xff] }
  0x6a   : > { %1002 = vmatpush.msrb.mxu3 %v506_v31  ;;  %807 = vmatpush.msrb.mxu0 %v441_v32  ;;  %v474_v19 = vld [vmem:[#allocation6 + $0x238] sm:$0xff]  ;;  %v473_v21 = vld [vmem:[#allocation6 + $0x230] sm:$0xff] }
  0x6b   : > { %872 = vmatpush.msrb.mxu1 %v505_v33  ;;  %938 = vmatpush.msrb.mxu2 %v438_v36  ;;  %v2737_v22 = vld [vmem:[%s2612_s11 + $0xb0] sm:$0xff]  ;;  %v2740_v23 = vld [vmem:[%s2612_s11 + $0xb8] sm:$0xff] }
  0x6c   : > { %1003 = vmatpush.msrb.mxu3 %v502_v37  ;;  %808 = vmatpush.msrb.mxu0 %v437_v38  ;;  %v406_v24 = vld [vmem:[#allocation6 + $0x18] sm:$0xff]  ;;  %v405_v26 = vld [vmem:[#allocation6 + $0x10] sm:$0xff]  ;;  %v2767_v38 = vld [vmem:[%s2612_s11 + $0xe0] sm:$0xff] }
  0x6d   : > { %873 = vmatpush.msrb.mxu1 %v501_v39  ;;  %939 = vmatpush.msrb.mxu2 %v434_v42  ;;  %v470_v25 = vld [vmem:[#allocation6 + $0x218] sm:$0xff]  ;;  %v469_v31 = vld [vmem:[#allocation6 + $0x210] sm:$0xff]  ;;  %v2770_v39 = vld [vmem:[%s2612_s11 + $0xe8] sm:$0xff] }
  0x6e   : > { %1004 = vmatpush.msrb.mxu3 %v498_v43  ;;  %809 = vmatpush.msrb.mxu0 %v433_v44  ;;  %v2757_v32 = vld [vmem:[%s2612_s11 + $0xd0] sm:$0xff]  ;;  %v2760_v33 = vld [vmem:[%s2612_s11 + $0xd8] sm:$0xff]  ;;  %v1249_v44 = vld [vmem:[#allocation9 + $0x2e0] sm:$0xff] }
  0x6f   : > { %566 = vmatmul.f32.gmra.mxu0 %v2657_v34  ;;  %631 = vmatmul.f32.gmra.mxu1 %v2660_v35  ;;  %v1251_v36 = vld [vmem:[#allocation9 + $0x2f0] sm:$0xff] }
  0x70   : > { %696 = vmatmul.f32.gmra.mxu2 %v2657_v34  ;;  %874 = vmatpush.msrb.mxu1 %v497_v45  ;;  %v1283_v37 = vld [vmem:[#allocation9 + $0x3f0] sm:$0xff]  ;;  %v1281_v45 = vld [vmem:[#allocation9 + $0x3e0] sm:$0xff] }
  0x71   : > { %761 = vmatmul.f32.gmra.mxu3 %v2660_v35  ;;  %940 = vmatpush.msrb.mxu2 %v430_v48  ;;  %v1187_v42 = vld [vmem:[#allocation9 + $0xf0] sm:$0xff] }
  0x72   : > { %1005 = vmatpush.msrb.mxu3 %v494_v49  ;;  %810 = vmatpush.msrb.mxu0 %v429_v50  ;;  %v1219_v43 = vld [vmem:[#allocation9 + $0x1f0] sm:$0xff]  ;;  %v1185_v50 = vld [vmem:[#allocation9 + $0xe0] sm:$0xff] }
  0x73   : > { %875 = vmatpush.msrb.mxu1 %v493_v51  ;;  %941 = vmatpush.msrb.mxu2 %v426_v54  ;;  %v2777_v48 = vld [vmem:[%s2612_s11 + $0xf0] sm:$0xff]  ;;  %v2780_v49 = vld [vmem:[%s2612_s11 + $0xf8] sm:$0xff]  ;;  %v1217_v51 = vld [vmem:[#allocation9 + $0x1e0] sm:$0xff] }
  0x74   : > { %1006 = vmatpush.msrb.mxu3 %v490_v55  ;;  %811 = vmatpush.msrb.mxu0 %v425_v56  ;;  %v1247_v54 = vld [vmem:[#allocation9 + $0x2d0] sm:$0xff] }
  0x75   : > { %876 = vmatpush.msrb.mxu1 %v489_v57  ;;  %942 = vmatpush.msrb.mxu2 %v422_v60  ;;  %v1279_v55 = vld [vmem:[#allocation9 + $0x3d0] sm:$0xff] }
  0x76   : > { %1007 = vmatpush.msrb.mxu3 %v486_v61  ;;  %812 = vmatpush.msrb.mxu0 %v421_v62  ;;  %v1183_v60 = vld [vmem:[#allocation9 + $0xd0] sm:$0xff]  ;;  %v2790_v62 = vld [vmem:[#allocation8] sm:$0xf] }
  0x77   : > { %569 = vmatmul.f32.gmra.mxu0 %v2667_v40  ;;  %634 = vmatmul.f32.gmra.mxu1 %v2670_v41  ;;  %v1215_v61 = vld [vmem:[#allocation9 + $0x1d0] sm:$0xff] }
  0x78   : > { %699 = vmatmul.f32.gmra.mxu2 %v2667_v40  ;;  %877 = vmatpush.msrb.mxu1 %v485_v1  ;;  %v2796_v1 = vperm.slane %v2790_v62, 1 }
  0x79   : > { %764 = vmatmul.f32.gmra.mxu3 %v2670_v41  ;;  %943 = vmatpush.msrb.mxu2 %v418_v4  ;;  %v1245_v4 = vld [vmem:[#allocation9 + $0x2c0] sm:$0xff] }
  0x7a   : > { %1008 = vmatpush.msrb.mxu3 %v482_v5  ;;  %813 = vmatpush.msrb.mxu0 %v417_v6  ;;  %v1277_v5 = vld [vmem:[#allocation9 + $0x3c0] sm:$0xff] }
  0x7b   : > { %878 = vmatpush.msrb.mxu1 %v481_v7  ;;  %944 = vmatpush.msrb.mxu2 %v414_v10 }
  0x7c   : > { %1009 = vmatpush.msrb.mxu3 %v478_v11  ;;  %814 = vmatpush.msrb.mxu0 %v413_v12  ;;  %v1181_v12 = vld [vmem:[#allocation9 + $0xc0] sm:$0xff] }
  0x7d   : > { %879 = vmatpush.msrb.mxu1 %v477_v15  ;;  %945 = vmatpush.msrb.mxu2 %v410_v18  ;;  %v1213_v15 = vld [vmem:[#allocation9 + $0x1c0] sm:$0xff] }
  0x7e   : > { %1010 = vmatpush.msrb.mxu3 %v474_v19  ;;  %815 = vmatpush.msrb.mxu0 %v409_v20  ;;  %v1275_v19 = vld [vmem:[#allocation9 + $0x3b0] sm:$0xff] }
  0x7f   : > { %572 = vmatmul.f32.gmra.mxu0 %v2677_v46  ;;  %637 = vmatmul.f32.gmra.mxu1 %v2680_v47 }
  0x80   : > { %702 = vmatmul.f32.gmra.mxu2 %v2677_v46  ;;  %880 = vmatpush.msrb.mxu1 %v473_v21 }
  0x81   : > { %767 = vmatmul.f32.gmra.mxu3 %v2680_v47  ;;  %946 = vmatpush.msrb.mxu2 %v406_v24 }
  0x82   : > { %1011 = vmatpush.msrb.mxu3 %v470_v25  ;;  %816 = vmatpush.msrb.mxu0 %v405_v26  ;;  %v1179_v26 = vld [vmem:[#allocation9 + $0xb0] sm:$0xff] }
  0x83   : > { %881 = vmatpush.msrb.mxu1 %v469_v31  ;;  %1415 = vmatpush.msra.mxu2 %v1251_v36  ;;  %v1211_v31 = vld [vmem:[#allocation9 + $0x1b0] sm:$0xff] }
  0x84   : > { %1480 = vmatpush.msra.mxu3 %v1283_v37  ;;  %1285 = vmatpush.msra.mxu0 %v1187_v42 }
  0x85   : > { %1350 = vmatpush.msra.mxu1 %v1219_v43  ;;  %1416 = vmatpush.msra.mxu2 %v1249_v44 }
  0x86   : > { %1481 = vmatpush.msra.mxu3 %v1281_v45  ;;  %1286 = vmatpush.msra.mxu0 %v1185_v50  ;;  %v1177_v50 = vld [vmem:[#allocation9 + $0xa0] sm:$0xff] }
  0x87   : > { %575 = vmatmul.f32.gmra.mxu0 %v2687_v52  ;;  %640 = vmatmul.f32.gmra.mxu1 %v2690_v53 }
  0x88   : > { %705 = vmatmul.f32.gmra.mxu2 %v2687_v52  ;;  %1351 = vmatpush.msra.mxu1 %v1217_v51  ;;  %v1209_v51 = vld [vmem:[#allocation9 + $0x1a0] sm:$0xff] }
  0x89   : > { %770 = vmatmul.f32.gmra.mxu3 %v2690_v53  ;;  %1417 = vmatpush.msra.mxu2 %v1247_v54 }
  0x8a   : > { %1482 = vmatpush.msra.mxu3 %v1279_v55  ;;  %1287 = vmatpush.msra.mxu0 %v1183_v60 }
  0x8b   : > { %1352 = vmatpush.msra.mxu1 %v1215_v61  ;;  %1418 = vmatpush.msra.mxu2 %v1245_v4 }
  0x8c   : > { %1483 = vmatpush.msra.mxu3 %v1277_v5  ;;  %1288 = vmatpush.msra.mxu0 %v1181_v12 }
  0x8d   : > { %1353 = vmatpush.msra.mxu1 %v1213_v15 }
  0x8e   : > { %1484 = vmatpush.msra.mxu3 %v1275_v19  ;;  %1289 = vmatpush.msra.mxu0 %v1179_v26  ;;  %v1205_v26 = vld [vmem:[#allocation9 + $0x180] sm:$0xff] }
  0x8f   : > { %578 = vmatmul.f32.gmra.mxu0 %v2697_v58  ;;  %643 = vmatmul.f32.gmra.mxu1 %v2700_v59 }
  0x90   : > { %708 = vmatmul.f32.gmra.mxu2 %v2697_v58  ;;  %1354 = vmatpush.msra.mxu1 %v1211_v31 }
  0x91   : > { %773 = vmatmul.f32.gmra.mxu3 %v2700_v59  ;;  %1290 = vmatpush.msra.mxu0 %v1177_v50  ;;  %v1171_v50 = vld [vmem:[#allocation9 + $0x70] sm:$0xff] }
  0x92   : > { %1355 = vmatpush.msra.mxu1 %v1209_v51  ;;  %v1203_v51 = vld [vmem:[#allocation9 + $0x170] sm:$0xff] }
  0x97   : > { %581 = vmatmul.f32.gmra.mxu0 %v2707_v2  ;;  %646 = vmatmul.f32.gmra.mxu1 %v2710_v3 }
  0x98   : > { %711 = vmatmul.f32.gmra.mxu2 %v2707_v2 }
  0x99   : > { %776 = vmatmul.f32.gmra.mxu3 %v2710_v3 }
  0x9f   : > { %584 = vmatmul.f32.gmra.mxu0 %v2717_v8  ;;  %649 = vmatmul.f32.gmra.mxu1 %v2720_v9 }
  0xa0   : > { %714 = vmatmul.f32.gmra.mxu2 %v2717_v8 }
  0xa1   : > { %779 = vmatmul.f32.gmra.mxu3 %v2720_v9 }
  0xa7   : > { %587 = vmatmul.f32.gmra.mxu0 %v2727_v16  ;;  %652 = vmatmul.f32.gmra.mxu1 %v2730_v17 }
  0xa8   : > { %717 = vmatmul.f32.gmra.mxu2 %v2727_v16 }
  0xa9   : > { %782 = vmatmul.f32.gmra.mxu3 %v2730_v17 }
  0xaf   : > { %590 = vmatmul.f32.gmra.mxu0 %v2737_v22  ;;  %655 = vmatmul.f32.gmra.mxu1 %v2740_v23 }
  0xb0   : > { %720 = vmatmul.f32.gmra.mxu2 %v2737_v22 }
  0xb1   : > { %785 = vmatmul.f32.gmra.mxu3 %v2740_v23 }
  0xb7   : > { %593 = vmatmul.f32.gmra.mxu0 %v2747_v29  ;;  %658 = vmatmul.f32.gmra.mxu1 %v2750_v30 }
  0xb8   : > { %723 = vmatmul.f32.gmra.mxu2 %v2747_v29 }
  0xb9   : > { %788 = vmatmul.f32.gmra.mxu3 %v2750_v30 }
  0xbf   : > { %596 = vmatmul.f32.gmra.mxu0 %v2757_v32  ;;  %661 = vmatmul.f32.gmra.mxu1 %v2760_v33 }
  0xc0   : > { %726 = vmatmul.f32.gmra.mxu2 %v2757_v32 }
  0xc1   : > { %791 = vmatmul.f32.gmra.mxu3 %v2760_v33 }
  0xc7   : > { %599 = vmatmul.f32.gmra.mxu0 %v2767_v38  ;;  %664 = vmatmul.f32.gmra.mxu1 %v2770_v39 }
  0xc8   : > { %729 = vmatmul.f32.gmra.mxu2 %v2767_v38 }
  0xc9   : > { %794 = vmatmul.f32.gmra.mxu3 %v2770_v39 }
  0xcf   : > { %602 = vmatmul.f32.gmra.mxu0 %v2777_v48  ;;  %667 = vmatmul.f32.gmra.mxu1 %v2780_v49 }
  0xd0   : > { %732 = vmatmul.f32.gmra.mxu2 %v2777_v48 }
  0xd1   : > { %797 = vmatmul.f32.gmra.mxu3 %v2780_v49 }
  0xd4   : > { %v2786_v56 = vpop.f32.mrf.mxu0  ;;  %v2788_v57 = vpop.f32.mrf.mxu1 }
  0xd7   : > { %817 = vmatmul.f32.vlgmr.msrb.gmra.mxu0 %v2627_v63  ;;  %882 = vmatmul.f32.vlgmr.msrb.gmra.mxu1 %v2630_v0 }
  0xd8   : > { %947 = vmatmul.f32.vlgmr.msrb.gmra.mxu2 %v2627_v63 }
  0xd9   : > { %1012 = vmatmul.f32.vlgmr.msrb.gmra.mxu3 %v2630_v0  ;;  %v1243_v0 = vld [vmem:[#allocation9 + $0x2b0] sm:$0xff] }
  0xda   : > { %1419 = vmatpush.msra.mxu2 %v1243_v0 }
  0xdb   : > { %v688_v6 = vpop.f32.mrf.mxu2 }
  0xdc   : > { %v689_v7 = vadd.f32 %v688_v6, %v2796_v1  ;;  %v2800_v10 = vpop.f32.mrf.mxu0  ;;  %v2802_v11 = vpop.f32.mrf.mxu1  ;;  %v1175_v6 = vld [vmem:[#allocation9 + $0x90] sm:$0xff] }
  0xdd   : > { %v753_v18 = vpop.f32.mrf.mxu3  ;;  %1291 = vmatpush.msra.mxu0 %v1175_v6 }
  0xde   : > { %v2804_v63 = vadd.f32 %v753_v18, %v689_v7  ;;  %v1207_v7 = vld [vmem:[#allocation9 + $0x190] sm:$0xff] }
  0xdf   : > { %820 = vmatmul.f32.gmra.mxu0 %v2637_v13  ;;  %885 = vmatmul.f32.gmra.mxu1 %v2640_v14 }
  0xe0   : > { %3739 = vst [vmem:[#allocation16_spill] sm:$0xff] %v2804_v63  ;;  %950 = vmatmul.f32.gmra.mxu2 %v2637_v13  ;;  %v1241_v13 = vld [vmem:[#allocation9 + $0x2a0] sm:$0xff]  ;;  %1356 = vmatpush.msra.mxu1 %v1207_v7 }
  0xe1   : > { %1015 = vmatmul.f32.gmra.mxu3 %v2640_v14  ;;  %v1273_v14 = vld [vmem:[#allocation9 + $0x3a0] sm:$0xff]  ;;  %1420 = vmatpush.msra.mxu2 %v1241_v13 }
  0xe2   : > { %1485 = vmatpush.msra.mxu3 %v1273_v14  ;;  %1357 = vmatpush.msra.mxu1 %v1205_v26  ;;  %v1169_v7 = vld [vmem:[#allocation9 + $0x60] sm:$0xff] }
  0xe3   : > { %v691_v20 = vpop.f32.mrf.mxu2 }
  0xe4   : > { %v692_v21 = vadd.f32 %v691_v20, %v2796_v1  ;;  %v2811_v24 = vpop.f32.mrf.mxu0  ;;  %v2813_v25 = vpop.f32.mrf.mxu1  ;;  %1358 = vmatpush.msra.mxu1 %v1203_v51 }
  0xe5   : > { %v756_v36 = vpop.f32.mrf.mxu3 }
  0xe6   : > { %v2815_v37 = vadd.f32 %v756_v36, %v692_v21  ;;  %v1173_v21 = vld [vmem:[#allocation9 + $0x80] sm:$0xff] }
  0xe7   : > { %823 = vmatmul.f32.gmra.mxu0 %v2647_v27  ;;  %888 = vmatmul.f32.gmra.mxu1 %v2650_v28 }
  0xe8   : > { %953 = vmatmul.f32.gmra.mxu2 %v2647_v27  ;;  %v1239_v27 = vld [vmem:[#allocation9 + $0x290] sm:$0xff]  ;;  %1292 = vmatpush.msra.mxu0 %v1173_v21 }
  0xe9   : > { %1018 = vmatmul.f32.gmra.mxu3 %v2650_v28  ;;  %v1271_v28 = vld [vmem:[#allocation9 + $0x390] sm:$0xff]  ;;  %1421 = vmatpush.msra.mxu2 %v1239_v27 }
  0xea   : > { %1486 = vmatpush.msra.mxu3 %v1271_v28  ;;  %1293 = vmatpush.msra.mxu0 %v1171_v50 }
  0xeb   : > { %v694_v42 = vpop.f32.mrf.mxu2 }
  0xec   : > { %v695_v43 = vadd.f32 %v694_v42, %v2796_v1  ;;  %v2822_v44 = vpop.f32.mrf.mxu0  ;;  %v2824_v45 = vpop.f32.mrf.mxu1  ;;  %1294 = vmatpush.msra.mxu0 %v1169_v7 }
  0xed   : > { %v759_v54 = vpop.f32.mrf.mxu3 }
  0xee   : > { %v2826_v55 = vadd.f32 %v759_v54, %v695_v43 }
  0xef   : > { %826 = vmatmul.f32.gmra.mxu0 %v2657_v34  ;;  %891 = vmatmul.f32.gmra.mxu1 %v2660_v35 }
  0xf0   : > { %956 = vmatmul.f32.gmra.mxu2 %v2657_v34  ;;  %v1237_v34 = vld [vmem:[#allocation9 + $0x280] sm:$0xff] }
  0xf1   : > { %1021 = vmatmul.f32.gmra.mxu3 %v2660_v35  ;;  %v1269_v35 = vld [vmem:[#allocation9 + $0x380] sm:$0xff]  ;;  %1422 = vmatpush.msra.mxu2 %v1237_v34 }
  0xf2   : > { %1487 = vmatpush.msra.mxu3 %v1269_v35 }
  0xf3   : > { %v697_v60 = vpop.f32.mrf.mxu2 }
  0xf4   : > { %v698_v61 = vadd.f32 %v697_v60, %v2796_v1  ;;  %v2833_v4 = vpop.f32.mrf.mxu0  ;;  %v2835_v5 = vpop.f32.mrf.mxu1 }
  0xf5   : > { %v762_v12 = vpop.f32.mrf.mxu3 }
  0xf6   : > { %v2837_v15 = vadd.f32 %v762_v12, %v698_v61  ;;  %v1201_v12 = vld [vmem:[#allocation9 + $0x160] sm:$0xff] }
  0xf7   : > { %829 = vmatmul.f32.gmra.mxu0 %v2667_v40  ;;  %894 = vmatmul.f32.gmra.mxu1 %v2670_v41 }
  0xf8   : > { %959 = vmatmul.f32.gmra.mxu2 %v2667_v40  ;;  %v1235_v40 = vld [vmem:[#allocation9 + $0x270] sm:$0xff]  ;;  %1359 = vmatpush.msra.mxu1 %v1201_v12 }
  0xf9   : > { %1024 = vmatmul.f32.gmra.mxu3 %v2670_v41  ;;  %v1267_v41 = vld [vmem:[#allocation9 + $0x370] sm:$0xff]  ;;  %1423 = vmatpush.msra.mxu2 %v1235_v40 }
  0xfa   : > { %1488 = vmatpush.msra.mxu3 %v1267_v41  ;;  %v1199_v40 = vld [vmem:[#allocation9 + $0x150] sm:$0xff] }
  0xfb   : > { %v700_v18 = vpop.f32.mrf.mxu2  ;;  %1360 = vmatpush.msra.mxu1 %v1199_v40  ;;  %v1163_v12 = vld [vmem:[#allocation9 + $0x30] sm:$0xff]  ;;  %v1193_v40 = vld [vmem:[#allocation9 + $0x120] sm:$0xff] }
  0xfc   : > { %v701_v0 = vadd.f32 %v700_v18, %v2796_v1  ;;  %v2844_v19 = vpop.f32.mrf.mxu0  ;;  %v2846_v20 = vpop.f32.mrf.mxu1 }
  0xfd   : > { %v765_v31 = vpop.f32.mrf.mxu3 }
  0xfe   : > { %v2848_v36 = vadd.f32 %v765_v31, %v701_v0  ;;  %v1167_v31 = vld [vmem:[#allocation9 + $0x50] sm:$0xff] }
  0xff   : > { %832 = vmatmul.f32.gmra.mxu0 %v2677_v46  ;;  %897 = vmatmul.f32.gmra.mxu1 %v2680_v47 }
 0x100   : > { %962 = vmatmul.f32.gmra.mxu2 %v2677_v46  ;;  %v1233_v46 = vld [vmem:[#allocation9 + $0x260] sm:$0xff]  ;;  %1295 = vmatpush.msra.mxu0 %v1167_v31 }
 0x101   : > { %1027 = vmatmul.f32.gmra.mxu3 %v2680_v47  ;;  %v1265_v47 = vld [vmem:[#allocation9 + $0x360] sm:$0xff]  ;;  %1424 = vmatpush.msra.mxu2 %v1233_v46 }
 0x102   : > { %1489 = vmatpush.msra.mxu3 %v1265_v47  ;;  %v1197_v46 = vld [vmem:[#allocation9 + $0x140] sm:$0xff] }
 0x103   : > { %v703_v13 = vpop.f32.mrf.mxu2  ;;  %1361 = vmatpush.msra.mxu1 %v1197_v46  ;;  %v1161_v31 = vld [vmem:[#allocation9 + $0x20] sm:$0xff]  ;;  %v1159_v46 = vld [vmem:[#allocation9 + $0x10] sm:$0xff] }
 0x104   : > { %v704_v14 = vadd.f32 %v703_v13, %v2796_v1  ;;  %v2855_v42 = vpop.f32.mrf.mxu0  ;;  %v2857_v43 = vpop.f32.mrf.mxu1 }
 0x105   : > { %v768_v54 = vpop.f32.mrf.mxu3 }
 0x106   : > { %v2859_v27 = vadd.f32 %v768_v54, %v704_v14  ;;  %v1165_v54 = vld [vmem:[#allocation9 + $0x40] sm:$0xff] }
 0x107   : > { %835 = vmatmul.f32.gmra.mxu0 %v2687_v52  ;;  %900 = vmatmul.f32.gmra.mxu1 %v2690_v53 }
 0x108   : > { %965 = vmatmul.f32.gmra.mxu2 %v2687_v52  ;;  %v1231_v52 = vld [vmem:[#allocation9 + $0x250] sm:$0xff]  ;;  %1296 = vmatpush.msra.mxu0 %v1165_v54 }
 0x109   : > { %1030 = vmatmul.f32.gmra.mxu3 %v2690_v53  ;;  %v1263_v53 = vld [vmem:[#allocation9 + $0x350] sm:$0xff]  ;;  %1425 = vmatpush.msra.mxu2 %v1231_v52 }
 0x10a   : > { %1490 = vmatpush.msra.mxu3 %v1263_v53  ;;  %1297 = vmatpush.msra.mxu0 %v1163_v12  ;;  %v1157_v12 = vld [vmem:[#allocation9] sm:$0xff] }
 0x10b   : > { %v706_v28 = vpop.f32.mrf.mxu2 }
 0x10c   : > { %v707_v60 = vadd.f32 %v706_v28, %v2796_v1  ;;  %v2866_v61 = vpop.f32.mrf.mxu0  ;;  %v2868_v6 = vpop.f32.mrf.mxu1  ;;  %1298 = vmatpush.msra.mxu0 %v1161_v31 }
 0x10d   : > { %v771_v34 = vpop.f32.mrf.mxu3 }
 0x10e   : > { %v2870_v35 = vadd.f32 %v771_v34, %v707_v60  ;;  %v1195_v34 = vld [vmem:[#allocation9 + $0x130] sm:$0xff]  ;;  %1299 = vmatpush.msra.mxu0 %v1159_v46 }
 0x10f   : > { %838 = vmatmul.f32.gmra.mxu0 %v2697_v58  ;;  %903 = vmatmul.f32.gmra.mxu1 %v2700_v59 }
 0x110   : > { %968 = vmatmul.f32.gmra.mxu2 %v2697_v58  ;;  %v1229_v58 = vld [vmem:[#allocation9 + $0x240] sm:$0xff]  ;;  %1362 = vmatpush.msra.mxu1 %v1195_v34 }
 0x111   : > { %1033 = vmatmul.f32.gmra.mxu3 %v2700_v59  ;;  %v1261_v59 = vld [vmem:[#allocation9 + $0x340] sm:$0xff]  ;;  %1426 = vmatpush.msra.mxu2 %v1229_v58 }
 0x112   : > { %1491 = vmatpush.msra.mxu3 %v1261_v59  ;;  %1363 = vmatpush.msra.mxu1 %v1193_v40  ;;  %v1253_v34 = vld [vmem:[#allocation9 + $0x300] sm:$0xff] }
 0x113   : > { %v709_v18 = vpop.f32.mrf.mxu2  ;;  %1300 = vmatpush.msra.mxu0 %v1157_v12  ;;  %v1220_v12 = vld [vmem:[#allocation9 + $0x1f8] sm:$0xff] }
 0x114   : > { %v710_v0 = vadd.f32 %v709_v18, %v2796_v1  ;;  %v2877_v21 = vpop.f32.mrf.mxu0  ;;  %v2879_v26 = vpop.f32.mrf.mxu1 }
 0x115   : > { %v774_v41 = vpop.f32.mrf.mxu3 }
 0x116   : > { %v2881_v13 = vadd.f32 %v774_v41, %v710_v0 }
 0x117   : > { %841 = vmatmul.f32.gmra.mxu0 %v2707_v2  ;;  %906 = vmatmul.f32.gmra.mxu1 %v2710_v3 }
 0x118   : > { %971 = vmatmul.f32.gmra.mxu2 %v2707_v2  ;;  %v1227_v2 = vld [vmem:[#allocation9 + $0x230] sm:$0xff] }
 0x119   : > { %1036 = vmatmul.f32.gmra.mxu3 %v2710_v3  ;;  %v1259_v3 = vld [vmem:[#allocation9 + $0x330] sm:$0xff]  ;;  %1427 = vmatpush.msra.mxu2 %v1227_v2 }
 0x11a   : > { %1492 = vmatpush.msra.mxu3 %v1259_v3  ;;  %v1191_v2 = vld [vmem:[#allocation9 + $0x110] sm:$0xff] }
 0x11b   : > { %v2887_v14 = vpop.f32.mrf.mxu2  ;;  %1364 = vmatpush.msra.mxu1 %v1191_v2  ;;  %v1188_v2 = vld [vmem:[#allocation9 + $0xf8] sm:$0xff] }
 0x11c   : > { %v2889_v50 = vpop.f32.mrf.mxu0  ;;  %v2891_v51 = vpop.f32.mrf.mxu1  ;;  %1545 = vmatpush.msrb.mxu0 %v1188_v2  ;;  %v1186_v2 = vld [vmem:[#allocation9 + $0xe8] sm:$0xff] }
 0x11d   : > { %v2893_v47 = vpop.f32.mrf.mxu3 }
 0x11e   : > { %1546 = vmatpush.msrb.mxu0 %v1186_v2 }
 0x11f   : > { %844 = vmatmul.f32.gmra.mxu0 %v2717_v8  ;;  %909 = vmatmul.f32.gmra.mxu1 %v2720_v9 }
 0x120   : > { %974 = vmatmul.f32.gmra.mxu2 %v2717_v8  ;;  %v1225_v8 = vld [vmem:[#allocation9 + $0x220] sm:$0xff] }
 0x121   : > { %1039 = vmatmul.f32.gmra.mxu3 %v2720_v9  ;;  %v1257_v9 = vld [vmem:[#allocation9 + $0x320] sm:$0xff]  ;;  %1428 = vmatpush.msra.mxu2 %v1225_v8 }
 0x122   : > { %1493 = vmatpush.msra.mxu3 %v1257_v9 }
 0x123   : > { %v2899_v28 = vpop.f32.mrf.mxu2 }
 0x124   : > { %v2901_v60 = vpop.f32.mrf.mxu0  ;;  %v2903_v7 = vpop.f32.mrf.mxu1 }
 0x125   : > { %v2905_v52 = vpop.f32.mrf.mxu3 }
 0x127   : > { %847 = vmatmul.f32.gmra.mxu0 %v2727_v16  ;;  %912 = vmatmul.f32.gmra.mxu1 %v2730_v17 }
 0x128   : > { %977 = vmatmul.f32.gmra.mxu2 %v2727_v16  ;;  %v1223_v16 = vld [vmem:[#allocation9 + $0x210] sm:$0xff] }
 0x129   : > { %1042 = vmatmul.f32.gmra.mxu3 %v2730_v17  ;;  %v1255_v17 = vld [vmem:[#allocation9 + $0x310] sm:$0xff]  ;;  %1429 = vmatpush.msra.mxu2 %v1223_v16 }
 0x12a   : > { %1494 = vmatpush.msra.mxu3 %v1255_v17 }
 0x12b   : > { %v2911_v53 = vpop.f32.mrf.mxu2 }
 0x12c   : > { %v2913_v18 = vpop.f32.mrf.mxu0  ;;  %v2915_v0 = vpop.f32.mrf.mxu1  ;;  %1495 = vmatpush.msra.mxu3 %v1253_v34 }
 0x12d   : > { %v2917_v41 = vpop.f32.mrf.mxu3 }
 0x12f   : > { %850 = vmatmul.f32.gmra.mxu0 %v2737_v22  ;;  %915 = vmatmul.f32.gmra.mxu1 %v2740_v23 }
 0x130   : > { %980 = vmatmul.f32.gmra.mxu2 %v2737_v22  ;;  %v1189_v22 = vld [vmem:[#allocation9 + $0x100] sm:$0xff] }
 0x131   : > { %1045 = vmatmul.f32.gmra.mxu3 %v2740_v23  ;;  %1365 = vmatpush.msra.mxu1 %v1189_v22  ;;  %v1221_v23 = vld [vmem:[#allocation9 + $0x200] sm:$0xff] }
 0x132   : > { %1430 = vmatpush.msra.mxu2 %v1221_v23  ;;  %v1282_v23 = vld [vmem:[#allocation9 + $0x3e8] sm:$0xff] }
 0x133   : > { %v2923_v58 = vpop.f32.mrf.mxu2  ;;  %1610 = vmatpush.msrb.mxu1 %v1220_v12  ;;  %v1218_v12 = vld [vmem:[#allocation9 + $0x1e8] sm:$0xff] }
 0x134   : > { %v2925_v59 = vpop.f32.mrf.mxu0  ;;  %v2927_v54 = vpop.f32.mrf.mxu1 }
 0x135   : > { %v2929_v3 = vpop.f32.mrf.mxu3  ;;  %1611 = vmatpush.msrb.mxu1 %v1218_v12 }
 0x137   : > { %853 = vmatmul.f32.gmra.mxu0 %v2747_v29  ;;  %918 = vmatmul.f32.gmra.mxu1 %v2750_v30 }
 0x138   : > { %983 = vmatmul.f32.gmra.mxu2 %v2747_v29  ;;  %v1252_v29 = vld [vmem:[#allocation9 + $0x2f8] sm:$0xff] }
 0x139   : > { %1048 = vmatmul.f32.gmra.mxu3 %v2750_v30  ;;  %1675 = vmatpush.msrb.mxu2 %v1252_v29  ;;  %v1284_v30 = vld [vmem:[#allocation9 + $0x3f8] sm:$0xff] }
 0x13a   : > { %1740 = vmatpush.msrb.mxu3 %v1284_v30 }
 0x13b   : > { %v2935_v8 = vpop.f32.mrf.mxu2 }
 0x13c   : > { %v2937_v9 = vpop.f32.mrf.mxu0  ;;  %v2939_v31 = vpop.f32.mrf.mxu1  ;;  %1741 = vmatpush.msrb.mxu3 %v1282_v23  ;;  %v1248_v23 = vld [vmem:[#allocation9 + $0x2d8] sm:$0xff] }
 0x13d   : > { %v2941_v40 = vpop.f32.mrf.mxu3 }
 0x13f   : > { %856 = vmatmul.f32.gmra.mxu0 %v2757_v32  ;;  %921 = vmatmul.f32.gmra.mxu1 %v2760_v33 }
 0x140   : > { %986 = vmatmul.f32.gmra.mxu2 %v2757_v32  ;;  %v2959_v32 = vperm.slane %v2790_v62, 0 }
 0x141   : > { %1051 = vmatmul.f32.gmra.mxu3 %v2760_v33  ;;  %v1250_v33 = vld [vmem:[#allocation9 + $0x2e8] sm:$0xff] }
 0x142   : > { %1676 = vmatpush.msrb.mxu2 %v1250_v33  ;;  %v2980_v33 = vperm.slane %v2790_v62, 2 }
 0x143   : > { %v2947_v16 = vpop.f32.mrf.mxu2 }
 0x144   : > { %v2949_v17 = vpop.f32.mrf.mxu0  ;;  %v2951_v46 = vpop.f32.mrf.mxu1  ;;  %1677 = vmatpush.msrb.mxu2 %v1248_v23 }
 0x145   : > { %3740 = vst [vmem:[#allocation17_spill] sm:$0xff] %v2951_v46  ;;  %v2953_v22 = vpop.f32.mrf.mxu3 }
 0x147   : > { %859 = vmatmul.f32.gmra.mxu0 %v2767_v38  ;;  %924 = vmatmul.f32.gmra.mxu1 %v2770_v39 }
 0x148   : > { %989 = vmatmul.f32.gmra.mxu2 %v2767_v38  ;;  %v559_v38 = vadd.f32 %v2786_v56, %v2959_v32  ;;  %v1280_v56 = vld [vmem:[#allocation9 + $0x3d8] sm:$0xff] }
 0x149   : > { %1054 = vmatmul.f32.gmra.mxu3 %v2770_v39 }
 0x14a   : > { %v2976_v39 = vadd.f32 %v2788_v57, %v559_v38  ;;  %1742 = vmatpush.msrb.mxu3 %v1280_v56  ;;  %v562_v57 = vadd.f32 %v2800_v10, %v2959_v32  ;;  %v2998_v56 = vperm.slane %v2790_v62, 3  ;;  %v1214_v62 = vld [vmem:[#allocation9 + $0x1c8] sm:$0xff] }
 0x14b   : > { %v2962_v34 = vpop.f32.mrf.mxu2 }
 0x14c   : > { %3741 = vst [vmem:[#allocation18_spill] sm:$0xff] %v2962_v34  ;;  %v2964_v29 = vpop.f32.mrf.mxu0  ;;  %v2966_v30 = vpop.f32.mrf.mxu1  ;;  %v3001_v10 = vadd.f32 %v2802_v11, %v562_v57  ;;  %v565_v11 = vadd.f32 %v2811_v24, %v2959_v32  ;;  %v3650_v57 = vmax.f32 %v2815_v37, 0.0 }
 0x14d   : > { %3742 = vst [vmem:[#allocation19_spill] sm:$0xff] %v2964_v29  ;;  %v2970_v46 = vpop.f32.mrf.mxu3  ;;  %v1184_v29 = vld [vmem:[#allocation9 + $0xd8] sm:$0xff] }
 0x14e   : > { %3743 = vst [vmem:[#allocation20_spill] sm:$0xff] %v2966_v30  ;;  %1547 = vmatpush.msrb.mxu0 %v1184_v29  ;;  %v1278_v29 = vld [vmem:[#allocation9 + $0x3c8] sm:$0xff]  ;;  %v3022_v24 = vadd.f32 %v2813_v25, %v565_v11  ;;  %v1212_v25 = vld [vmem:[#allocation9 + $0x1b8] sm:$0xff] }
 0x14f   : > { %3744 = vst [vmem:[#allocation21_spill] sm:$0xff] %v2970_v46  ;;  %862 = vmatmul.f32.gmra.mxu0 %v2777_v48  ;;  %927 = vmatmul.f32.gmra.mxu1 %v2780_v49  ;;  %v1216_v46 = vld [vmem:[#allocation9 + $0x1d8] sm:$0xff] }
 0x150   : > { %992 = vmatmul.f32.gmra.mxu2 %v2777_v48  ;;  %v3646_v48 = vmax.f32 %v2976_v39, 0.0  ;;  %1612 = vmatpush.msrb.mxu1 %v1216_v46  ;;  %v3657_v11 = vmax.f32 %v3022_v24, 0.0 }
 0x151   : > { %1057 = vmatmul.f32.gmra.mxu3 %v2780_v49  ;;  %v3645_v49 = vmax.f32 %v2804_v63, 0.0 }
 0x152   : > { %1743 = vmatpush.msrb.mxu3 %v1278_v29  ;;  %1613 = vmatpush.msrb.mxu1 %v1214_v62 }
 0x153   : > { %v2982_v30 = vpop.f32.mrf.mxu2 }
 0x154   : > { %3745 = vst [vmem:[#allocation22_spill] sm:$0xff] %v2982_v30  ;;  %v818_v2 = vpop.f32.mrf.mxu0  ;;  %v883_v12 = vpop.f32.mrf.mxu1  ;;  %v1246_v30 = vld [vmem:[#allocation9 + $0x2c8] sm:$0xff]  ;;  %1614 = vmatpush.msrb.mxu1 %v1212_v25 }
 0x155   : > { %v2988_v38 = vpop.f32.mrf.mxu3  ;;  %v819_v34 = vadd.f32 %v818_v2, %v2980_v33  ;;  %1678 = vmatpush.msrb.mxu2 %v1246_v30 }
 0x156   : > { %3746 = vst [vmem:[#allocation23_spill] sm:$0xff] %v2988_v38 }
 0x157   : > { %v2991_v23 = vadd.f32 %v883_v12, %v819_v34  ;;  %1301 = vmatmul.f32.vlgmr.msra.gmra.mxu0 %v3646_v48  ;;  %1366 = vmatmul.f32.vlgmr.msra.gmra.mxu1 %v3645_v49  ;;  %v1182_v49 = vld [vmem:[#allocation9 + $0xc8] sm:$0xff]  ;;  %v3652_v48 = vmax.f32 %v3001_v10, 0.0 }
 0x158   : > { %1548 = vmatpush.msrb.mxu0 %v1182_v49 }
 0x159   : > { %3747 = vst [vmem:[#allocation24_spill] sm:$0xff] %v2991_v23  ;;  %v3648_v38 = vmax.f32 %v2991_v23, 0.0  ;;  %v1244_v23 = vld [vmem:[#allocation9 + $0x2b8] sm:$0xff] }
 0x15a   : > { %1679 = vmatpush.msrb.mxu2 %v1244_v23 }
 0x15b   : > { %v948_v46 = vpop.f32.mrf.mxu2  ;;  %1431 = vmatmul.f32.vlgmr.msra.gmra.mxu2 %v3648_v38 }
 0x15c   : > { %v949_v34 = vadd.f32 %v948_v46, %v2998_v56  ;;  %v821_v2 = vpop.f32.mrf.mxu0  ;;  %v886_v12 = vpop.f32.mrf.mxu1 }
 0x15d   : > { %v822_v30 = vadd.f32 %v821_v2, %v2980_v33  ;;  %v1013_v63 = vpop.f32.mrf.mxu3 }
 0x15e   : > { %v3012_v38 = vadd.f32 %v1013_v63, %v949_v34  ;;  %v1276_v63 = vld [vmem:[#allocation9 + $0x3b8] sm:$0xff] }
 0x15f   : > { %v3014_v29 = vadd.f32 %v886_v12, %v822_v30  ;;  %1304 = vmatmul.f32.gmra.mxu0 %v3652_v48  ;;  %1369 = vmatmul.f32.gmra.mxu1 %v3650_v57  ;;  %v1180_v30 = vld [vmem:[#allocation9 + $0xb8] sm:$0xff]  ;;  %v568_v57 = vadd.f32 %v2822_v44, %v2959_v32 }
 0x160   : > { %v3651_v46 = vmax.f32 %v3012_v38, 0.0  ;;  %1744 = vmatpush.msrb.mxu3 %v1276_v63  ;;  %1549 = vmatpush.msrb.mxu0 %v1180_v30 }
 0x161   : > { %3748 = vst [vmem:[#allocation25_spill] sm:$0xff] %v3014_v29  ;;  %v3653_v2 = vmax.f32 %v3014_v29, 0.0  ;;  %v3045_v44 = vadd.f32 %v2824_v45, %v568_v57  ;;  %v1242_v29 = vld [vmem:[#allocation9 + $0x2a8] sm:$0xff] }
 0x162   : > { %1496 = vmatmul.f32.vlgmr.msra.gmra.mxu3 %v3651_v46  ;;  %v3655_v46 = vmax.f32 %v2826_v55, 0.0  ;;  %1680 = vmatpush.msrb.mxu2 %v1242_v29  ;;  %v1210_v45 = vld [vmem:[#allocation9 + $0x1a8] sm:$0xff] }
 0x163   : > { %v951_v49 = vpop.f32.mrf.mxu2  ;;  %1434 = vmatmul.f32.gmra.mxu2 %v3653_v2  ;;  %v3662_v57 = vmax.f32 %v3045_v44, 0.0  ;;  %1615 = vmatpush.msrb.mxu1 %v1210_v45 }
 0x164   : > { %v952_v34 = vadd.f32 %v951_v49, %v2998_v56  ;;  %v824_v12 = vpop.f32.mrf.mxu0  ;;  %v889_v62 = vpop.f32.mrf.mxu1 }
 0x165   : > { %v825_v23 = vadd.f32 %v824_v12, %v2980_v33  ;;  %v1016_v48 = vpop.f32.mrf.mxu3 }
 0x166   : > { %v3035_v2 = vadd.f32 %v1016_v48, %v952_v34  ;;  %v1274_v48 = vld [vmem:[#allocation9 + $0x3a8] sm:$0xff] }
 0x167   : > { %v3037_v63 = vadd.f32 %v889_v62, %v825_v23  ;;  %1307 = vmatmul.f32.gmra.mxu0 %v3657_v11  ;;  %1372 = vmatmul.f32.gmra.mxu1 %v3655_v46  ;;  %v1178_v23 = vld [vmem:[#allocation9 + $0xa8] sm:$0xff]  ;;  %v571_v46 = vadd.f32 %v2833_v4, %v2959_v32 }
 0x168   : > { %v3656_v49 = vmax.f32 %v3035_v2, 0.0  ;;  %1745 = vmatpush.msrb.mxu3 %v1274_v48  ;;  %1550 = vmatpush.msrb.mxu0 %v1178_v23 }
 0x169   : > { %3749 = vst [vmem:[#allocation26_spill] sm:$0xff] %v3037_v63  ;;  %v3658_v12 = vmax.f32 %v3037_v63, 0.0  ;;  %v3068_v4 = vadd.f32 %v2835_v5, %v571_v46  ;;  %v1240_v63 = vld [vmem:[#allocation9 + $0x298] sm:$0xff] }
 0x16a   : > { %1499 = vmatmul.f32.gmra.mxu3 %v3656_v49  ;;  %v3660_v49 = vmax.f32 %v2837_v15, 0.0  ;;  %1681 = vmatpush.msrb.mxu2 %v1240_v63  ;;  %v1208_v5 = vld [vmem:[#allocation9 + $0x198] sm:$0xff] }
 0x16b   : > { %v954_v34 = vpop.f32.mrf.mxu2  ;;  %1437 = vmatmul.f32.gmra.mxu2 %v3658_v12  ;;  %v3667_v46 = vmax.f32 %v3068_v4, 0.0  ;;  %1616 = vmatpush.msrb.mxu1 %v1208_v5 }
 0x16c   : > { %v955_v62 = vadd.f32 %v954_v34, %v2998_v56  ;;  %v827_v30 = vpop.f32.mrf.mxu0  ;;  %v892_v25 = vpop.f32.mrf.mxu1 }
 0x16d   : > { %v828_v29 = vadd.f32 %v827_v30, %v2980_v33  ;;  %v1019_v11 = vpop.f32.mrf.mxu3 }
 0x16e   : > { %v3058_v12 = vadd.f32 %v1019_v11, %v955_v62  ;;  %v1272_v11 = vld [vmem:[#allocation9 + $0x398] sm:$0xff] }
 0x16f   : > { %v3060_v48 = vadd.f32 %v892_v25, %v828_v29  ;;  %1310 = vmatmul.f32.gmra.mxu0 %v3662_v57  ;;  %1375 = vmatmul.f32.gmra.mxu1 %v3660_v49  ;;  %v1176_v29 = vld [vmem:[#allocation9 + $0x98] sm:$0xff]  ;;  %v574_v49 = vadd.f32 %v2844_v19, %v2959_v32 }
 0x170   : > { %v3661_v34 = vmax.f32 %v3058_v12, 0.0  ;;  %1746 = vmatpush.msrb.mxu3 %v1272_v11  ;;  %1551 = vmatpush.msrb.mxu0 %v1176_v29 }
 0x171   : > { %3750 = vst [vmem:[#allocation27_spill] sm:$0xff] %v3060_v48  ;;  %v3663_v30 = vmax.f32 %v3060_v48, 0.0  ;;  %v3091_v19 = vadd.f32 %v2846_v20, %v574_v49  ;;  %v1238_v48 = vld [vmem:[#allocation9 + $0x288] sm:$0xff] }
 0x172   : > { %1502 = vmatmul.f32.gmra.mxu3 %v3661_v34  ;;  %v3665_v34 = vmax.f32 %v2848_v36, 0.0  ;;  %1682 = vmatpush.msrb.mxu2 %v1238_v48  ;;  %v1206_v20 = vld [vmem:[#allocation9 + $0x188] sm:$0xff] }
 0x173   : > { %v957_v62 = vpop.f32.mrf.mxu2  ;;  %1440 = vmatmul.f32.gmra.mxu2 %v3663_v30  ;;  %v3672_v49 = vmax.f32 %v3091_v19, 0.0  ;;  %1617 = vmatpush.msrb.mxu1 %v1206_v20 }
 0x174   : > { %v958_v25 = vadd.f32 %v957_v62, %v2998_v56  ;;  %v830_v23 = vpop.f32.mrf.mxu0  ;;  %v895_v45 = vpop.f32.mrf.mxu1 }
 0x175   : > { %v831_v63 = vadd.f32 %v830_v23, %v2980_v33  ;;  %v1022_v57 = vpop.f32.mrf.mxu3 }
 0x176   : > { %v3081_v30 = vadd.f32 %v1022_v57, %v958_v25  ;;  %v1270_v57 = vld [vmem:[#allocation9 + $0x388] sm:$0xff] }
 0x177   : > { %v3083_v11 = vadd.f32 %v895_v45, %v831_v63  ;;  %1313 = vmatmul.f32.gmra.mxu0 %v3667_v46  ;;  %1378 = vmatmul.f32.gmra.mxu1 %v3665_v34  ;;  %v1174_v63 = vld [vmem:[#allocation9 + $0x88] sm:$0xff]  ;;  %v577_v34 = vadd.f32 %v2855_v42, %v2959_v32 }
 0x178   : > { %v3666_v62 = vmax.f32 %v3081_v30, 0.0  ;;  %1747 = vmatpush.msrb.mxu3 %v1270_v57  ;;  %1552 = vmatpush.msrb.mxu0 %v1174_v63 }
 0x179   : > { %3751 = vst [vmem:[#allocation28_spill] sm:$0xff] %v3083_v11  ;;  %v3668_v23 = vmax.f32 %v3083_v11, 0.0  ;;  %v3114_v42 = vadd.f32 %v2857_v43, %v577_v34  ;;  %v1236_v11 = vld [vmem:[#allocation9 + $0x278] sm:$0xff] }
 0x17a   : > { %1505 = vmatmul.f32.gmra.mxu3 %v3666_v62  ;;  %v3670_v62 = vmax.f32 %v2859_v27, 0.0  ;;  %1683 = vmatpush.msrb.mxu2 %v1236_v11  ;;  %v1204_v43 = vld [vmem:[#allocation9 + $0x178] sm:$0xff] }
 0x17b   : > { %v960_v25 = vpop.f32.mrf.mxu2  ;;  %1443 = vmatmul.f32.gmra.mxu2 %v3668_v23  ;;  %v3677_v34 = vmax.f32 %v3114_v42, 0.0  ;;  %1618 = vmatpush.msrb.mxu1 %v1204_v43  ;;  %v1170_v43 = vld [vmem:[#allocation9 + $0x68] sm:$0xff] }
 0x17c   : > { %v961_v45 = vadd.f32 %v960_v25, %v2998_v56  ;;  %v833_v29 = vpop.f32.mrf.mxu0  ;;  %v898_v5 = vpop.f32.mrf.mxu1 }
 0x17d   : > { %v834_v48 = vadd.f32 %v833_v29, %v2980_v33  ;;  %v1025_v46 = vpop.f32.mrf.mxu3 }
 0x17e   : > { %v3104_v23 = vadd.f32 %v1025_v46, %v961_v45  ;;  %v1268_v46 = vld [vmem:[#allocation9 + $0x378] sm:$0xff] }
 0x17f   : > { %v3106_v57 = vadd.f32 %v898_v5, %v834_v48  ;;  %1316 = vmatmul.f32.gmra.mxu0 %v3672_v49  ;;  %1381 = vmatmul.f32.gmra.mxu1 %v3670_v62  ;;  %v1172_v48 = vld [vmem:[#allocation9 + $0x78] sm:$0xff]  ;;  %v580_v62 = vadd.f32 %v2866_v61, %v2959_v32 }
 0x180   : > { %v3671_v25 = vmax.f32 %v3104_v23, 0.0  ;;  %1748 = vmatpush.msrb.mxu3 %v1268_v46  ;;  %1553 = vmatpush.msrb.mxu0 %v1172_v48 }
 0x181   : > { %3752 = vst [vmem:[#allocation29_spill] sm:$0xff] %v3106_v57  ;;  %v3673_v29 = vmax.f32 %v3106_v57, 0.0  ;;  %v3137_v61 = vadd.f32 %v2868_v6, %v580_v62  ;;  %v1234_v57 = vld [vmem:[#allocation9 + $0x268] sm:$0xff] }
 0x182   : > { %1508 = vmatmul.f32.gmra.mxu3 %v3671_v25  ;;  %v3675_v25 = vmax.f32 %v2870_v35, 0.0  ;;  %1684 = vmatpush.msrb.mxu2 %v1234_v57  ;;  %v713_v57 = vadd.f32 %v2887_v14, %v2796_v1 }
 0x183   : > { %v963_v45 = vpop.f32.mrf.mxu2  ;;  %1446 = vmatmul.f32.gmra.mxu2 %v3673_v29  ;;  %1554 = vmatpush.msrb.mxu0 %v1170_v43 }
 0x184   : > { %v964_v5 = vadd.f32 %v963_v45, %v2998_v56  ;;  %v836_v63 = vpop.f32.mrf.mxu0  ;;  %v901_v20 = vpop.f32.mrf.mxu1 }
 0x185   : > { %v837_v11 = vadd.f32 %v836_v63, %v2980_v33  ;;  %v1028_v49 = vpop.f32.mrf.mxu3 }
 0x186   : > { %v3127_v29 = vadd.f32 %v1028_v49, %v964_v5  ;;  %v1266_v49 = vld [vmem:[#allocation9 + $0x368] sm:$0xff] }
 0x187   : > { %v3129_v46 = vadd.f32 %v901_v20, %v837_v11  ;;  %1319 = vmatmul.f32.gmra.mxu0 %v3677_v34  ;;  %1384 = vmatmul.f32.gmra.mxu1 %v3675_v25  ;;  %v583_v20 = vadd.f32 %v2877_v21, %v2959_v32  ;;  %v1202_v11 = vld [vmem:[#allocation9 + $0x168] sm:$0xff]  ;;  %v3681_v25 = vmax.f32 %v3137_v61, 0.0 }
 0x188   : > { %v3676_v45 = vmax.f32 %v3127_v29, 0.0  ;;  %1749 = vmatpush.msrb.mxu3 %v1266_v49  ;;  %1619 = vmatpush.msrb.mxu1 %v1202_v11  ;;  %v1168_v11 = vld [vmem:[#allocation9 + $0x58] sm:$0xff] }
 0x189   : > { %v3678_v63 = vmax.f32 %v3129_v46, 0.0  ;;  %1555 = vmatpush.msrb.mxu0 %v1168_v11  ;;  %v1166_v11 = vld [vmem:[#allocation9 + $0x48] sm:$0xff] }
 0x18a   : > { %1511 = vmatmul.f32.gmra.mxu3 %v3676_v45  ;;  %v3679_v45 = vmax.f32 %v2881_v13, 0.0 }
 0x18b   : > { %v966_v5 = vpop.f32.mrf.mxu2  ;;  %1449 = vmatmul.f32.gmra.mxu2 %v3678_v63  ;;  %1556 = vmatpush.msrb.mxu0 %v1166_v11 }
 0x18c   : > { %v967_v48 = vadd.f32 %v966_v5, %v2998_v56  ;;  %v839_v6 = vpop.f32.mrf.mxu0  ;;  %v904_v62 = vpop.f32.mrf.mxu1  ;;  %v3161_v5 = vadd.f32 %v2879_v26, %v583_v20 }
 0x18d   : > { %v840_v34 = vadd.f32 %v839_v6, %v2980_v33  ;;  %v1031_v63 = vpop.f32.mrf.mxu3  ;;  %v3165_v6 = vadd.f32 %v2893_v47, %v713_v57  ;;  %v1200_v57 = vld [vmem:[#allocation9 + $0x158] sm:$0xff] }
 0x18e   : > { %v3152_v49 = vadd.f32 %v1031_v63, %v967_v48  ;;  %v1232_v63 = vld [vmem:[#allocation9 + $0x258] sm:$0xff]  ;;  %v3691_v26 = vmax.f32 %v3161_v5, 0.0  ;;  %1620 = vmatpush.msrb.mxu1 %v1200_v57  ;;  %v1198_v57 = vld [vmem:[#allocation9 + $0x148] sm:$0xff] }
 0x18f   : > { %v3154_v21 = vadd.f32 %v904_v62, %v840_v34  ;;  %1322 = vmatmul.f32.gmra.mxu0 %v3681_v25  ;;  %1387 = vmatmul.f32.gmra.mxu1 %v3679_v45  ;;  %v1264_v34 = vld [vmem:[#allocation9 + $0x358] sm:$0xff]  ;;  %v586_v45 = vadd.f32 %v2889_v50, %v2959_v32 }
 0x190   : > { %v3680_v14 = vmax.f32 %v3152_v49, 0.0  ;;  %1685 = vmatpush.msrb.mxu2 %v1232_v63  ;;  %1750 = vmatpush.msrb.mxu3 %v1264_v34  ;;  %v716_v63 = vadd.f32 %v2899_v28, %v2796_v1 }
 0x191   : > { %3753 = vst [vmem:[#allocation30_spill] sm:$0xff] %v3154_v21  ;;  %v3682_v43 = vmax.f32 %v3154_v21, 0.0  ;;  %v3190_v21 = vadd.f32 %v2891_v51, %v586_v45  ;;  %v589_v51 = vadd.f32 %v2901_v60, %v2959_v32  ;;  %1621 = vmatpush.msrb.mxu1 %v1198_v57  ;;  %v1164_v57 = vld [vmem:[#allocation9 + $0x38] sm:$0xff] }
 0x192   : > { %1514 = vmatmul.f32.gmra.mxu3 %v3680_v14  ;;  %v3685_v14 = vmax.f32 %v3165_v6, 0.0  ;;  %v3193_v28 = vadd.f32 %v2905_v52, %v716_v63  ;;  %1557 = vmatpush.msrb.mxu0 %v1164_v57  ;;  %v1162_v57 = vld [vmem:[#allocation9 + $0x28] sm:$0xff] }
 0x193   : > { %v969_v48 = vpop.f32.mrf.mxu2  ;;  %1452 = vmatmul.f32.gmra.mxu2 %v3682_v43  ;;  %v3689_v63 = vmax.f32 %v3190_v21, 0.0 }
 0x194   : > { %v970_v20 = vadd.f32 %v969_v48, %v2998_v56  ;;  %v842_v62 = vpop.f32.mrf.mxu0  ;;  %v907_v47 = vpop.f32.mrf.mxu1  ;;  %1558 = vmatpush.msrb.mxu0 %v1162_v57 }
 0x195   : > { %v843_v25 = vadd.f32 %v842_v62, %v2980_v33  ;;  %v1034_v43 = vpop.f32.mrf.mxu3 }
 0x196   : > { %v3180_v34 = vadd.f32 %v1034_v43, %v970_v20  ;;  %v1230_v43 = vld [vmem:[#allocation9 + $0x248] sm:$0xff] }
 0x197   : > { %v3182_v48 = vadd.f32 %v907_v47, %v843_v25  ;;  %1325 = vmatmul.f32.gmra.mxu0 %v3691_v26  ;;  %1390 = vmatmul.f32.gmra.mxu1 %v3685_v14  ;;  %v1262_v25 = vld [vmem:[#allocation9 + $0x348] sm:$0xff] }
 0x198   : > { %v3684_v50 = vmax.f32 %v3180_v34, 0.0  ;;  %1686 = vmatpush.msrb.mxu2 %v1230_v43  ;;  %1751 = vmatpush.msrb.mxu3 %v1262_v25  ;;  %v719_v43 = vadd.f32 %v2911_v53, %v2796_v1 }
 0x199   : > { %v3686_v62 = vmax.f32 %v3182_v48, 0.0 }
 0x19a   : > { %1517 = vmatmul.f32.gmra.mxu3 %v3684_v50  ;;  %v3687_v50 = vmax.f32 %v3193_v28, 0.0 }
 0x19b   : > { %v972_v20 = vpop.f32.mrf.mxu2  ;;  %1455 = vmatmul.f32.gmra.mxu2 %v3686_v62 }
 0x19c   : > { %v973_v45 = vadd.f32 %v972_v20, %v2998_v56  ;;  %v845_v52 = vpop.f32.mrf.mxu0  ;;  %v910_v47 = vpop.f32.mrf.mxu1  ;;  %v3217_v20 = vadd.f32 %v2903_v7, %v589_v51 }
 0x19d   : > { %v846_v14 = vadd.f32 %v845_v52, %v2980_v33  ;;  %v1037_v62 = vpop.f32.mrf.mxu3  ;;  %v3221_v52 = vadd.f32 %v2917_v41, %v719_v43  ;;  %v1196_v43 = vld [vmem:[#allocation9 + $0x138] sm:$0xff] }
 0x19e   : > { %v3208_v25 = vadd.f32 %v1037_v62, %v973_v45  ;;  %v1228_v62 = vld [vmem:[#allocation9 + $0x238] sm:$0xff]  ;;  %v3699_v7 = vmax.f32 %v3217_v20, 0.0  ;;  %1622 = vmatpush.msrb.mxu1 %v1196_v43  ;;  %v1194_v43 = vld [vmem:[#allocation9 + $0x128] sm:$0xff] }
 0x19f   : > { %v3210_v60 = vadd.f32 %v910_v47, %v846_v14  ;;  %1328 = vmatmul.f32.gmra.mxu0 %v3689_v63  ;;  %1393 = vmatmul.f32.gmra.mxu1 %v3687_v50  ;;  %v1260_v14 = vld [vmem:[#allocation9 + $0x338] sm:$0xff]  ;;  %v592_v50 = vadd.f32 %v2913_v18, %v2959_v32 }
 0x1a0   : > { %v3688_v53 = vmax.f32 %v3208_v25, 0.0  ;;  %1687 = vmatpush.msrb.mxu2 %v1228_v62  ;;  %1752 = vmatpush.msrb.mxu3 %v1260_v14  ;;  %v722_v62 = vadd.f32 %v2923_v58, %v2796_v1 }
 0x1a1   : > { %v3690_v11 = vmax.f32 %v3210_v60, 0.0  ;;  %v3246_v26 = vadd.f32 %v2915_v0, %v592_v50  ;;  %v595_v0 = vadd.f32 %v2925_v59, %v2959_v32  ;;  %1623 = vmatpush.msrb.mxu1 %v1194_v43  ;;  %v1160_v43 = vld [vmem:[#allocation9 + $0x18] sm:$0xff] }
 0x1a2   : > { %1520 = vmatmul.f32.gmra.mxu3 %v3688_v53  ;;  %v3693_v53 = vmax.f32 %v3221_v52, 0.0  ;;  %v3249_v58 = vadd.f32 %v2929_v3, %v722_v62  ;;  %1559 = vmatpush.msrb.mxu0 %v1160_v43 }
 0x1a3   : > { %v975_v45 = vpop.f32.mrf.mxu2  ;;  %1458 = vmatmul.f32.gmra.mxu2 %v3690_v11  ;;  %v3697_v62 = vmax.f32 %v3246_v26, 0.0 }
 0x1a4   : > { %v976_v51 = vadd.f32 %v975_v45, %v2998_v56  ;;  %v848_v47 = vpop.f32.mrf.mxu0  ;;  %v913_v41 = vpop.f32.mrf.mxu1 }
 0x1a5   : > { %v849_v63 = vadd.f32 %v848_v47, %v2980_v33  ;;  %v1040_v11 = vpop.f32.mrf.mxu3 }
 0x1a6   : > { %v3236_v14 = vadd.f32 %v1040_v11, %v976_v51  ;;  %v1226_v11 = vld [vmem:[#allocation9 + $0x228] sm:$0xff] }
 0x1a7   : > { %v3238_v45 = vadd.f32 %v913_v41, %v849_v63  ;;  %1331 = vmatmul.f32.gmra.mxu0 %v3699_v7  ;;  %1396 = vmatmul.f32.gmra.mxu1 %v3693_v53  ;;  %v1258_v63 = vld [vmem:[#allocation9 + $0x328] sm:$0xff] }
 0x1a8   : > { %v3692_v18 = vmax.f32 %v3236_v14, 0.0  ;;  %1688 = vmatpush.msrb.mxu2 %v1226_v11  ;;  %1753 = vmatpush.msrb.mxu3 %v1258_v63  ;;  %v725_v11 = vadd.f32 %v2935_v8, %v2796_v1  ;;  %v1190_v7 = vld [vmem:[#allocation9 + $0x108] sm:$0xff] }
 0x1a9   : > { %v3694_v47 = vmax.f32 %v3238_v45, 0.0 }
 0x1aa   : > { %1523 = vmatmul.f32.gmra.mxu3 %v3692_v18  ;;  %v3695_v18 = vmax.f32 %v3249_v58, 0.0 }
 0x1ab   : > { %v978_v51 = vpop.f32.mrf.mxu2  ;;  %1461 = vmatmul.f32.gmra.mxu2 %v3694_v47 }
 0x1ac   : > { %v979_v50 = vadd.f32 %v978_v51, %v2998_v56  ;;  %v851_v3 = vpop.f32.mrf.mxu0  ;;  %v916_v41 = vpop.f32.mrf.mxu1  ;;  %v3273_v51 = vadd.f32 %v2927_v54, %v595_v0 }
 0x1ad   : > { %v852_v53 = vadd.f32 %v851_v3, %v2980_v33  ;;  %v1043_v47 = vpop.f32.mrf.mxu3  ;;  %v3277_v3 = vadd.f32 %v2941_v40, %v725_v11  ;;  %v1192_v11 = vld [vmem:[#allocation9 + $0x118] sm:$0xff] }
 0x1ae   : > { %v3264_v63 = vadd.f32 %v1043_v47, %v979_v50  ;;  %v1224_v47 = vld [vmem:[#allocation9 + $0x218] sm:$0xff]  ;;  %1624 = vmatpush.msrb.mxu1 %v1192_v11  ;;  %v3757_v11 = vld [vmem:[#allocation18_spill] sm:$0xff] }
 0x1af   : > { %v3266_v59 = vadd.f32 %v916_v41, %v852_v53  ;;  %1334 = vmatmul.f32.gmra.mxu0 %v3697_v62  ;;  %1399 = vmatmul.f32.gmra.mxu1 %v3695_v18  ;;  %v1256_v53 = vld [vmem:[#allocation9 + $0x318] sm:$0xff]  ;;  %v598_v18 = vadd.f32 %v2937_v9, %v2959_v32 }
 0x1b0   : > { %v3696_v8 = vmax.f32 %v3264_v63, 0.0  ;;  %1689 = vmatpush.msrb.mxu2 %v1224_v47  ;;  %1754 = vmatpush.msrb.mxu3 %v1256_v53  ;;  %v728_v47 = vadd.f32 %v2947_v16, %v2796_v1  ;;  %v1222_v16 = vld [vmem:[#allocation9 + $0x208] sm:$0xff] }
 0x1b1   : > { %3754 = vst [vmem:[#allocation31_spill] sm:$0xff] %v3266_v59  ;;  %v3698_v57 = vmax.f32 %v3266_v59, 0.0  ;;  %v3755_v59 = vmax.f32 %v3273_v51, 0.0  ;;  %1625 = vmatpush.msrb.mxu1 %v1190_v7  ;;  %v601_v7 = vadd.f32 %v2949_v17, %v2959_v32  ;;  %v3760_v17 = vld [vmem:[#allocation17_spill] sm:$0xff] }
 0x1b2   : > { %1526 = vmatmul.f32.gmra.mxu3 %v3696_v8  ;;  %v3703_v8 = vmax.f32 %v3277_v3, 0.0  ;;  %1690 = vmatpush.msrb.mxu2 %v1222_v16 }
 0x1b3   : > { %v981_v50 = vpop.f32.mrf.mxu2  ;;  %1464 = vmatmul.f32.gmra.mxu2 %v3698_v57 }
 0x1b4   : > { %v982_v0 = vadd.f32 %v981_v50, %v2998_v56  ;;  %v854_v41 = vpop.f32.mrf.mxu0  ;;  %v919_v40 = vpop.f32.mrf.mxu1  ;;  %v1158_v50 = vld [vmem:[#allocation9 + $0x8] sm:$0xff] }
 0x1b5   : > { %v855_v62 = vadd.f32 %v854_v41, %v2980_v33  ;;  %v1046_v57 = vpop.f32.mrf.mxu3  ;;  %1560 = vmatpush.msrb.mxu0 %v1158_v50  ;;  %v3302_v41 = vadd.f32 %v2939_v31, %v598_v18 }
 0x1b6   : > { %v3292_v53 = vadd.f32 %v1046_v57, %v982_v0  ;;  %v3305_v57 = vadd.f32 %v2953_v22, %v728_v47  ;;  %v731_v47 = vadd.f32 %v3757_v11, %v2796_v1 }
 0x1b7   : > { %v3294_v54 = vadd.f32 %v919_v40, %v855_v62  ;;  %1337 = vmatmul.f32.gmra.mxu0 %v3755_v59  ;;  %1402 = vmatmul.f32.gmra.mxu1 %v3703_v8  ;;  %v1254_v59 = vld [vmem:[#allocation9 + $0x308] sm:$0xff]  ;;  %v3705_v40 = vmax.f32 %v3302_v41, 0.0 }
 0x1b8   : > { %v3701_v9 = vmax.f32 %v3292_v53, 0.0  ;;  %3756 = vst [vmem:[#allocation32_spill] sm:$0xff] %v3305_v57  ;;  %1755 = vmatpush.msrb.mxu3 %v1254_v59  ;;  %v3704_v43 = vmax.f32 %v3305_v57, 0.0  ;;  %v3761_v8 = vld [vmem:[#allocation21_spill] sm:$0xff] }
 0x1b9   : > { %v3702_v62 = vmax.f32 %v3294_v54, 0.0  ;;  %v3333_v11 = vadd.f32 %v3761_v8, %v731_v47  ;;  %v3763_v47 = vld [vmem:[#allocation22_spill] sm:$0xff] }
 0x1ba   : > { %1529 = vmatmul.f32.gmra.mxu3 %v3701_v9 }
 0x1bb   : > { %v984_v0 = vpop.f32.mrf.mxu2  ;;  %1467 = vmatmul.f32.gmra.mxu2 %v3702_v62  ;;  %v3711_v8 = vmax.f32 %v3333_v11, 0.0 }
 0x1bc   : > { %v985_v31 = vadd.f32 %v984_v0, %v2998_v56  ;;  %v857_v18 = vpop.f32.mrf.mxu0  ;;  %v922_v22 = vpop.f32.mrf.mxu1  ;;  %v3329_v0 = vadd.f32 %v3760_v17, %v601_v7  ;;  %v3762_v17 = vld [vmem:[#allocation19_spill] sm:$0xff] }
 0x1bd   : > { %v858_v50 = vadd.f32 %v857_v18, %v2980_v33  ;;  %v1049_v16 = vpop.f32.mrf.mxu3 }
 0x1be   : > { %v3320_v9 = vadd.f32 %v1049_v16, %v985_v31 }
 0x1bf   : > { %v3322_v59 = vadd.f32 %v922_v22, %v858_v50  ;;  %1340 = vmatmul.f32.gmra.mxu0 %v3705_v40  ;;  %1405 = vmatmul.f32.gmra.mxu1 %v3704_v43  ;;  %v3716_v22 = vmax.f32 %v3329_v0, 0.0  ;;  %v604_v43 = vadd.f32 %v3762_v17, %v2959_v32  ;;  %v734_v40 = vadd.f32 %v3763_v47, %v2796_v1 }
 0x1c0   : > { %3758 = vst [vmem:[#allocation18_spill] sm:$0xff] %v3320_v9  ;;  %v3706_v62 = vmax.f32 %v3320_v9, 0.0 }
 0x1c1   : > { %3759 = vst [vmem:[#allocation33_spill] sm:$0xff] %v3322_v59  ;;  %v3709_v18 = vmax.f32 %v3322_v59, 0.0  ;;  %v3765_v59 = vld [vmem:[#allocation23_spill] sm:$0xff] }
 0x1c2   : > { %1532 = vmatmul.f32.gmra.mxu3 %v3706_v62  ;;  %v3361_v1 = vadd.f32 %v3765_v59, %v734_v40 }
 0x1c3   : > { %v987_v31 = vpop.f32.mrf.mxu2  ;;  %1470 = vmatmul.f32.gmra.mxu2 %v3709_v18 }
 0x1c4   : > { %v988_v50 = vadd.f32 %v987_v31, %v2998_v56  ;;  %v860_v7 = vpop.f32.mrf.mxu0  ;;  %v925_v16 = vpop.f32.mrf.mxu1  ;;  %v3764_v31 = vld [vmem:[#allocation20_spill] sm:$0xff] }
 0x1c5   : > { %v861_v62 = vadd.f32 %v860_v7, %v2980_v33  ;;  %v1052_v9 = vpop.f32.mrf.mxu3  ;;  %v3358_v17 = vadd.f32 %v3764_v31, %v604_v43  ;;  %v3714_v43 = vmax.f32 %v3361_v1, 0.0 }
 0x1c6   : > { %v3348_v57 = vadd.f32 %v1052_v9, %v988_v50 }
 0x1c7   : > { %v3350_v18 = vadd.f32 %v925_v16, %v861_v62  ;;  %1343 = vmatmul.f32.gmra.mxu0 %v3716_v22  ;;  %1408 = vmatmul.f32.gmra.mxu1 %v3711_v8  ;;  %v3715_v47 = vmax.f32 %v3358_v17, 0.0 }
 0x1c8   : > { %v3713_v32 = vmax.f32 %v3348_v57, 0.0 }
 0x1c9   : > { %v3712_v7 = vmax.f32 %v3350_v18, 0.0 }
 0x1ca   : > { %1535 = vmatmul.f32.gmra.mxu3 %v3713_v32 }
 0x1cb   : > { %v990_v9 = vpop.f32.mrf.mxu2  ;;  %1473 = vmatmul.f32.gmra.mxu2 %v3712_v7 }
 0x1cc   : > { %v991_v62 = vadd.f32 %v990_v9, %v2998_v56  ;;  %v863_v50 = vpop.f32.mrf.mxu0  ;;  %v928_v16 = vpop.f32.mrf.mxu1 }
 0x1cd   : > { %v864_v40 = vadd.f32 %v863_v50, %v2980_v33  ;;  %v1055_v59 = vpop.f32.mrf.mxu3 }
 0x1ce   : > { %v3372_v31 = vadd.f32 %v1055_v59, %v991_v62  ;;  %v3769_v59 = vmax.f32 %v2976_v39, 0.0  ;;  %v3775_v39 = vmax.f32 %v2815_v37, 0.0 }
 0x1cf   : > { %v3374_v8 = vadd.f32 %v928_v16, %v864_v40  ;;  %1346 = vmatmul.f32.gmra.mxu0 %v3715_v47  ;;  %1411 = vmatmul.f32.gmra.mxu1 %v3714_v43  ;;  %v3770_v43 = vld [vmem:[#allocation16_spill] sm:$0xff] }
 0x1d0   : > { %3766 = vst [vmem:[#allocation17_spill] sm:$0xff] %v3372_v31  ;;  %v3717_v9 = vmax.f32 %v3372_v31, 0.0  ;;  %v3771_v47 = vmax.f32 %v3770_v43, 0.0  ;;  %v3779_v31 = vmax.f32 %v3022_v24, 0.0 }
 0x1d1   : > { %3767 = vst [vmem:[#allocation21_spill] sm:$0xff] %v3374_v8  ;;  %v3718_v7 = vmax.f32 %v3374_v8, 0.0 }
 0x1d2   : > { %1538 = vmatmul.f32.gmra.mxu3 %v3717_v9  ;;  %v3772_v9 = vld [vmem:[#allocation24_spill] sm:$0xff] }
 0x1d3   : > { %v993_v32 = vpop.f32.mrf.mxu2  ;;  %1476 = vmatmul.f32.gmra.mxu2 %v3718_v7  ;;  %v3773_v7 = vmax.f32 %v3772_v9, 0.0 }
 0x1d4   : > { %v994_v33 = vadd.f32 %v993_v32, %v2998_v56  ;;  %v1302_v62 = vpop.f32.mrf.mxu0  ;;  %v1367_v50 = vpop.f32.mrf.mxu1 }
 0x1d5   : > { %v1058_v16 = vpop.f32.mrf.mxu3  ;;  %v1368_v43 = vadd.f32 %v1367_v50, %v1302_v62  ;;  %v3780_v62 = vmax.f32 %v2826_v55, 0.0 }
 0x1d6   : > { %v3387_v40 = vadd.f32 %v1058_v16, %v994_v33  ;;  %v3774_v33 = vmax.f32 %v3001_v10, 0.0  ;;  %v3776_v16 = vmax.f32 %v3012_v38, 0.0 }
 0x1d7   : > { %1561 = vmatmul.f32.vlgmr.msrb.gmra.mxu0 %v3769_v59  ;;  %1626 = vmatmul.f32.vlgmr.msrb.gmra.mxu1 %v3771_v47  ;;  %v3405_v47 = vld [vmem:[%s3641_s4] sm:$0x3] }
 0x1d8   : > { %3768 = vst [vmem:[#allocation19_spill] sm:$0xff] %v3387_v40  ;;  %v3720_v22 = vmax.f32 %v3387_v40, 0.0 }
 0x1da   : > { %1541 = vmatmul.f32.gmra.mxu3 %v3720_v22 }
 0x1db   : > { %1691 = vmatmul.f32.vlgmr.msrb.gmra.mxu2 %v3773_v7  ;;  %v3777_v7 = vld [vmem:[#allocation25_spill] sm:$0xff] }
 0x1dc   : > { %v1305_v56 = vpop.f32.mrf.mxu0  ;;  %v1370_v32 = vpop.f32.mrf.mxu1  ;;  %v3778_v9 = vmax.f32 %v3777_v7, 0.0 }
 0x1dd   : > { %v1371_v50 = vadd.f32 %v1370_v32, %v1305_v56  ;;  %v3784_v56 = vmax.f32 %v3045_v44, 0.0  ;;  %v3785_v32 = vmax.f32 %v2837_v15, 0.0  ;;  %v3789_v15 = vmax.f32 %v3068_v4, 0.0 }
 0x1de   : > { %v1432_v8 = vpop.f32.mrf.mxu2 }
 0x1df   : > { %1564 = vmatmul.f32.gmra.mxu0 %v3774_v33  ;;  %1629 = vmatmul.f32.gmra.mxu1 %v3775_v39  ;;  %v1433_v59 = vadd.f32 %v1432_v8, %v1368_v43  ;;  %v3412_v33 = vperm.slane %v3405_v47, 0  ;;  %v3781_v8 = vmax.f32 %v3035_v2, 0.0  ;;  %v3782_v43 = vld [vmem:[#allocation26_spill] sm:$0xff] }
 0x1e2   : > { %1756 = vmatmul.f32.vlgmr.msrb.gmra.mxu3 %v3776_v16  ;;  %v3783_v16 = vmax.f32 %v3782_v43, 0.0 }
 0x1e3   : > { %1694 = vmatmul.f32.gmra.mxu2 %v3778_v9 }
 0x1e4   : > { %v1308_v22 = vpop.f32.mrf.mxu0  ;;  %v1373_v10 = vpop.f32.mrf.mxu1 }
 0x1e5   : > { %v1497_v37 = vpop.f32.mrf.mxu3  ;;  %v1374_v2 = vadd.f32 %v1373_v10, %v1308_v22  ;;  %v3791_v10 = vmax.f32 %v3081_v30, 0.0 }
 0x1e6   : > { %v1498_v39 = vadd.f32 %v1497_v37, %v1433_v59  ;;  %v1435_v40 = vpop.f32.mrf.mxu2 }
 0x1e7   : > { %1567 = vmatmul.f32.gmra.mxu0 %v3779_v31  ;;  %1632 = vmatmul.f32.gmra.mxu1 %v3780_v62  ;;  %v1436_v24 = vadd.f32 %v1435_v40, %v1371_v50  ;;  %v3787_v40 = vld [vmem:[#allocation27_spill] sm:$0xff] }
 0x1e8   : > { %v1910_v38 = vadd.f32 %v3412_v33, %v1498_v39  ;;  %v3786_v39 = vmax.f32 %v3058_v12, 0.0  ;;  %v3788_v62 = vmax.f32 %v3787_v40, 0.0  ;;  %v3797_v40 = vld [vmem:[#allocation29_spill] sm:$0xff] }
 0x1ea   : > { %1942 = vst [vmem:[%s3421_s3] sm:$0xff] %v1910_v38  ;;  %1759 = vmatmul.f32.gmra.mxu3 %v3781_v8 }
 0x1eb   : > { %1697 = vmatmul.f32.gmra.mxu2 %v3783_v16 }
 0x1ec   : > { %v1311_v31 = vpop.f32.mrf.mxu0  ;;  %v1376_v7 = vpop.f32.mrf.mxu1 }
 0x1ed   : > { %v1500_v55 = vpop.f32.mrf.mxu3  ;;  %v1377_v12 = vadd.f32 %v1376_v7, %v1311_v31  ;;  %v3796_v7 = vmax.f32 %v3104_v23, 0.0 }
 0x1ee   : > { %v1501_v9 = vadd.f32 %v1500_v55, %v1436_v24  ;;  %v1438_v59 = vpop.f32.mrf.mxu2  ;;  %v3790_v24 = vmax.f32 %v2848_v36, 0.0  ;;  %v3792_v55 = vld [vmem:[#allocation28_spill] sm:$0xff]  ;;  %v3794_v36 = vmax.f32 %v3091_v19, 0.0 }
 0x1ef   : > { %1570 = vmatmul.f32.gmra.mxu0 %v3784_v56  ;;  %1635 = vmatmul.f32.gmra.mxu1 %v3785_v32  ;;  %v1439_v38 = vadd.f32 %v1438_v59, %v1374_v2 }
 0x1f0   : > { %v1912_v37 = vadd.f32 %v3412_v33, %v1501_v9  ;;  %v3793_v9 = vmax.f32 %v3792_v55, 0.0 }
 0x1f2   : > { %1944 = vst [vmem:[%s3421_s3 + $0x10] sm:$0xff] %v1912_v37  ;;  %1762 = vmatmul.f32.gmra.mxu3 %v3786_v39  ;;  %v3795_v39 = vmax.f32 %v2859_v27, 0.0  ;;  %v3799_v27 = vmax.f32 %v3114_v42, 0.0 }
 0x1f3   : > { %1700 = vmatmul.f32.gmra.mxu2 %v3788_v62  ;;  %v3798_v62 = vmax.f32 %v3797_v40, 0.0 }
 0x1f4   : > { %v1314_v50 = vpop.f32.mrf.mxu0  ;;  %v1379_v8 = vpop.f32.mrf.mxu1 }
 0x1f5   : > { %v1503_v43 = vpop.f32.mrf.mxu3  ;;  %v1380_v30 = vadd.f32 %v1379_v8, %v1314_v50  ;;  %v3801_v8 = vmax.f32 %v3127_v29, 0.0 }
 0x1f6   : > { %v1504_v44 = vadd.f32 %v1503_v43, %v1439_v38  ;;  %v1441_v16 = vpop.f32.mrf.mxu2 }
 0x1f7   : > { %1573 = vmatmul.f32.gmra.mxu0 %v3789_v15  ;;  %1638 = vmatmul.f32.gmra.mxu1 %v3790_v24  ;;  %v1442_v59 = vadd.f32 %v1441_v16, %v1377_v12  ;;  %v3800_v24 = vmax.f32 %v2870_v35, 0.0  ;;  %v3803_v35 = vmax.f32 %v3137_v61, 0.0 }
 0x1f8   : > { %v1914_v22 = vadd.f32 %v3412_v33, %v1504_v44 }
 0x1fa   : > { %1946 = vst [vmem:[%s3421_s3 + $0x20] sm:$0xff] %v1914_v22  ;;  %1765 = vmatmul.f32.gmra.mxu3 %v3791_v10  ;;  %v3802_v22 = vmax.f32 %v3129_v46, 0.0  ;;  %v3805_v46 = vmax.f32 %v3152_v49, 0.0 }
 0x1fb   : > { %1703 = vmatmul.f32.gmra.mxu2 %v3793_v9 }
 0x1fc   : > { %v1317_v56 = vpop.f32.mrf.mxu0  ;;  %v1382_v32 = vpop.f32.mrf.mxu1 }
 0x1fd   : > { %v1506_v37 = vpop.f32.mrf.mxu3  ;;  %v1383_v23 = vadd.f32 %v1382_v32, %v1317_v56  ;;  %v3806_v32 = vld [vmem:[#allocation30_spill] sm:$0xff] }
 0x1fe   : > { %v1507_v4 = vadd.f32 %v1506_v37, %v1442_v59  ;;  %v1444_v2 = vpop.f32.mrf.mxu2  ;;  %v3804_v37 = vmax.f32 %v2881_v13, 0.0  ;;  %v3808_v13 = vmax.f32 %v3161_v5, 0.0 }
 0x1ff   : > { %1576 = vmatmul.f32.gmra.mxu0 %v3794_v36  ;;  %1641 = vmatmul.f32.gmra.mxu1 %v3795_v39  ;;  %v1445_v38 = vadd.f32 %v1444_v2, %v1380_v30 }
 0x200   : > { %v1916_v31 = vadd.f32 %v3412_v33, %v1507_v4  ;;  %v3807_v4 = vmax.f32 %v3806_v32, 0.0 }
 0x202   : > { %1948 = vst [vmem:[%s3421_s3 + $0x30] sm:$0xff] %v1916_v31  ;;  %1768 = vmatmul.f32.gmra.mxu3 %v3796_v7  ;;  %v3809_v7 = vmax.f32 %v3165_v6, 0.0  ;;  %v3812_v6 = vmax.f32 %v3190_v21, 0.0 }
 0x203   : > { %1706 = vmatmul.f32.gmra.mxu2 %v3798_v62  ;;  %v3810_v62 = vmax.f32 %v3180_v34, 0.0 }
 0x204   : > { %v1320_v43 = vpop.f32.mrf.mxu0  ;;  %v1385_v44 = vpop.f32.mrf.mxu1 }
 0x205   : > { %v1509_v16 = vpop.f32.mrf.mxu3  ;;  %v1386_v29 = vadd.f32 %v1385_v44, %v1320_v43 }
 0x206   : > { %v1510_v19 = vadd.f32 %v1509_v16, %v1445_v38  ;;  %v1447_v15 = vpop.f32.mrf.mxu2  ;;  %v3811_v38 = vmax.f32 %v3182_v48, 0.0  ;;  %v3814_v48 = vmax.f32 %v3208_v25, 0.0 }
 0x207   : > { %1579 = vmatmul.f32.gmra.mxu0 %v3799_v27  ;;  %1644 = vmatmul.f32.gmra.mxu1 %v3800_v24  ;;  %v1448_v12 = vadd.f32 %v1447_v15, %v1383_v23  ;;  %v3813_v27 = vmax.f32 %v3193_v28, 0.0  ;;  %v3816_v28 = vmax.f32 %v3217_v20, 0.0 }
 0x208   : > { %v1918_v50 = vadd.f32 %v3412_v33, %v1510_v19 }
 0x20a   : > { %1950 = vst [vmem:[%s3421_s3 + $0x40] sm:$0xff] %v1918_v50  ;;  %1771 = vmatmul.f32.gmra.mxu3 %v3801_v8  ;;  %v3815_v50 = vmax.f32 %v3210_v60, 0.0  ;;  %v3818_v60 = vmax.f32 %v3236_v14, 0.0 }
 0x20b   : > { %1709 = vmatmul.f32.gmra.mxu2 %v3802_v22 }
 0x20c   : > { %v1323_v10 = vpop.f32.mrf.mxu0  ;;  %v1388_v55 = vpop.f32.mrf.mxu1 }
 0x20d   : > { %v1512_v9 = vpop.f32.mrf.mxu3  ;;  %v1389_v49 = vadd.f32 %v1388_v55, %v1323_v10  ;;  %v3817_v55 = vmax.f32 %v3221_v52, 0.0  ;;  %v3820_v52 = vmax.f32 %v3246_v26, 0.0 }
 0x20e   : > { %v1513_v42 = vadd.f32 %v1512_v9, %v1448_v12  ;;  %v1450_v59 = vpop.f32.mrf.mxu2 }
 0x20f   : > { %1582 = vmatmul.f32.gmra.mxu0 %v3803_v35  ;;  %1647 = vmatmul.f32.gmra.mxu1 %v3804_v37  ;;  %v1451_v2 = vadd.f32 %v1450_v59, %v1386_v29 }
 0x210   : > { %v1920_v56 = vadd.f32 %v3412_v33, %v1513_v42  ;;  %v3819_v42 = vmax.f32 %v3238_v45, 0.0  ;;  %v3822_v45 = vmax.f32 %v3264_v63, 0.0 }
 0x212   : > { %1952 = vst [vmem:[%s3421_s3 + $0x50] sm:$0xff] %v1920_v56  ;;  %1774 = vmatmul.f32.gmra.mxu3 %v3805_v46  ;;  %v3821_v46 = vmax.f32 %v3249_v58, 0.0  ;;  %v3825_v58 = vmax.f32 %v3273_v51, 0.0 }
 0x213   : > { %1712 = vmatmul.f32.gmra.mxu2 %v3807_v4  ;;  %v3823_v4 = vld [vmem:[#allocation31_spill] sm:$0xff] }
 0x214   : > { %v1326_v36 = vpop.f32.mrf.mxu0  ;;  %v1391_v39 = vpop.f32.mrf.mxu1 }
 0x215   : > { %v1515_v31 = vpop.f32.mrf.mxu3  ;;  %v1392_v34 = vadd.f32 %v1391_v39, %v1326_v36 }
 0x216   : > { %v1516_v61 = vadd.f32 %v1515_v31, %v1451_v2  ;;  %v1453_v30 = vpop.f32.mrf.mxu2  ;;  %v3824_v2 = vmax.f32 %v3823_v4, 0.0 }
 0x217   : > { %1585 = vmatmul.f32.gmra.mxu0 %v3808_v13  ;;  %1650 = vmatmul.f32.gmra.mxu1 %v3809_v7  ;;  %v1454_v43 = vadd.f32 %v1453_v30, %v1389_v49  ;;  %v3826_v13 = vmax.f32 %v3277_v3, 0.0  ;;  %v3828_v49 = vmax.f32 %v3294_v54, 0.0  ;;  %v3829_v3 = vmax.f32 %v3302_v41, 0.0 }
 0x218   : > { %v1922_v40 = vadd.f32 %v3412_v33, %v1516_v61 }
 0x21a   : > { %1954 = vst [vmem:[%s3421_s3 + $0x60] sm:$0xff] %v1922_v40  ;;  %1777 = vmatmul.f32.gmra.mxu3 %v3810_v62  ;;  %v3827_v40 = vmax.f32 %v3292_v53, 0.0 }
 0x21b   : > { %1715 = vmatmul.f32.gmra.mxu2 %v3811_v38 }
 0x21c   : > { %v1329_v44 = vpop.f32.mrf.mxu0  ;;  %v1394_v16 = vpop.f32.mrf.mxu1 }
 0x21d   : > { %v1518_v19 = vpop.f32.mrf.mxu3  ;;  %v1395_v25 = vadd.f32 %v1394_v16, %v1329_v44 }
 0x21e   : > { %v1519_v5 = vadd.f32 %v1518_v19, %v1454_v43  ;;  %v1456_v15 = vpop.f32.mrf.mxu2  ;;  %v3830_v19 = vld [vmem:[#allocation32_spill] sm:$0xff] }
 0x21f   : > { %1588 = vmatmul.f32.gmra.mxu0 %v3812_v6  ;;  %1653 = vmatmul.f32.gmra.mxu1 %v3813_v27  ;;  %v1457_v23 = vadd.f32 %v1456_v15, %v1392_v34  ;;  %v3832_v6 = vld [vmem:[#allocation18_spill] sm:$0xff]  ;;  %v3834_v27 = vld [vmem:[#allocation33_spill] sm:$0xff] }
 0x220   : > { %v1924_v24 = vadd.f32 %v3412_v33, %v1519_v5  ;;  %v3831_v5 = vmax.f32 %v3830_v19, 0.0  ;;  %v3833_v54 = vmax.f32 %v3832_v6, 0.0 }
 0x222   : > { %1956 = vst [vmem:[%s3421_s3 + $0x70] sm:$0xff] %v1924_v24  ;;  %1780 = vmatmul.f32.gmra.mxu3 %v3814_v48  ;;  %v3835_v24 = vmax.f32 %v3834_v27, 0.0 }
 0x223   : > { %1718 = vmatmul.f32.gmra.mxu2 %v3815_v50 }
 0x224   : > { %v1332_v8 = vpop.f32.mrf.mxu0  ;;  %v1397_v22 = vpop.f32.mrf.mxu1 }
 0x225   : > { %v1521_v12 = vpop.f32.mrf.mxu3  ;;  %v1398_v14 = vadd.f32 %v1397_v22, %v1332_v8  ;;  %v3836_v22 = vmax.f32 %v3329_v0, 0.0 }
 0x226   : > { %v1522_v21 = vadd.f32 %v1521_v12, %v1457_v23  ;;  %v1459_v10 = vpop.f32.mrf.mxu2  ;;  %v3837_v12 = vmax.f32 %v3333_v11, 0.0  ;;  %v3840_v11 = vmax.f32 %v3358_v17, 0.0 }
 0x227   : > { %1591 = vmatmul.f32.gmra.mxu0 %v3816_v28  ;;  %1656 = vmatmul.f32.gmra.mxu1 %v3817_v55  ;;  %v1460_v59 = vadd.f32 %v1459_v10, %v1395_v25  ;;  %v3838_v28 = vmax.f32 %v3348_v57, 0.0  ;;  %v3839_v55 = vmax.f32 %v3350_v18, 0.0 }
 0x228   : > { %v1926_v9 = vadd.f32 %v3412_v33, %v1522_v21 }
 0x22a   : > { %1958 = vst [vmem:[%s3421_s3 + $0x80] sm:$0xff] %v1926_v9  ;;  %1783 = vmatmul.f32.gmra.mxu3 %v3818_v60 }
 0x22b   : > { %1721 = vmatmul.f32.gmra.mxu2 %v3819_v42 }
 0x22c   : > { %v1335_v35 = vpop.f32.mrf.mxu0  ;;  %v1400_v37 = vpop.f32.mrf.mxu1 }
 0x22d   : > { %v1524_v56 = vpop.f32.mrf.mxu3  ;;  %v1401_v63 = vadd.f32 %v1400_v37, %v1335_v35  ;;  %v3841_v35 = vmax.f32 %v3361_v1, 0.0 }
 0x22e   : > { %v1525_v20 = vadd.f32 %v1524_v56, %v1460_v59  ;;  %v1462_v29 = vpop.f32.mrf.mxu2  ;;  %v3842_v56 = vld [vmem:[#allocation17_spill] sm:$0xff] }
 0x22f   : > { %1594 = vmatmul.f32.gmra.mxu0 %v3820_v52  ;;  %1659 = vmatmul.f32.gmra.mxu1 %v3821_v46  ;;  %v1463_v36 = vadd.f32 %v1462_v29, %v1398_v14  ;;  %v3843_v18 = vmax.f32 %v3842_v56, 0.0 }
 0x230   : > { %v1928_v32 = vadd.f32 %v3412_v33, %v1525_v20  ;;  %v3844_v20 = vld [vmem:[#allocation21_spill] sm:$0xff] }
 0x231   : > { %v3845_v29 = vmax.f32 %v3844_v20, 0.0 }
 0x232   : > { %1960 = vst [vmem:[%s3421_s3 + $0x90] sm:$0xff] %v1928_v32  ;;  %1786 = vmatmul.f32.gmra.mxu3 %v3822_v45 }
 0x233   : > { %1724 = vmatmul.f32.gmra.mxu2 %v3824_v2  ;;  %v3846_v2 = vld [vmem:[#allocation19_spill] sm:$0xff] }
 0x234   : > { %v1338_v39 = vpop.f32.mrf.mxu0  ;;  %v1403_v31 = vpop.f32.mrf.mxu1 }
 0x235   : > { %v1527_v61 = vpop.f32.mrf.mxu3  ;;  %v1404_v53 = vadd.f32 %v1403_v31, %v1338_v39 }
 0x236   : > { %v1528_v26 = vadd.f32 %v1527_v61, %v1463_v36  ;;  %v1465_v30 = vpop.f32.mrf.mxu2  ;;  %v3847_v36 = vmax.f32 %v3846_v2, 0.0 }
 0x237   : > { %1597 = vmatmul.f32.gmra.mxu0 %v3825_v58  ;;  %1662 = vmatmul.f32.gmra.mxu1 %v3826_v13  ;;  %v1466_v62 = vadd.f32 %v1465_v30, %v1401_v63 }
 0x238   : > { %v1930_v7 = vadd.f32 %v3412_v33, %v1528_v26 }
 0x23a   : > { %1962 = vst [vmem:[%s3421_s3 + $0xa0] sm:$0xff] %v1930_v7  ;;  %1789 = vmatmul.f32.gmra.mxu3 %v3827_v40 }
 0x23b   : > { %1727 = vmatmul.f32.gmra.mxu2 %v3828_v49 }
 0x23c   : > { %v1341_v38 = vpop.f32.mrf.mxu0  ;;  %v1406_v43 = vpop.f32.mrf.mxu1 }
 0x23d   : > { %v1530_v44 = vpop.f32.mrf.mxu3  ;;  %v1407_v10 = vadd.f32 %v1406_v43, %v1341_v38 }
 0x23e   : > { %v1531_v51 = vadd.f32 %v1530_v44, %v1466_v62  ;;  %v1468_v16 = vpop.f32.mrf.mxu2  ;;  %v3565_v62 = vperm.slane %v3405_v47, 1 }
 0x23f   : > { %1600 = vmatmul.f32.gmra.mxu0 %v3829_v3  ;;  %1665 = vmatmul.f32.gmra.mxu1 %v3831_v5  ;;  %v1469_v34 = vadd.f32 %v1468_v16, %v1404_v53 }
 0x240   : > { %v1932_v15 = vadd.f32 %v3412_v33, %v1531_v51 }
 0x242   : > { %1964 = vst [vmem:[%s3421_s3 + $0xb0] sm:$0xff] %v1932_v15  ;;  %1792 = vmatmul.f32.gmra.mxu3 %v3833_v54 }
 0x243   : > { %1730 = vmatmul.f32.gmra.mxu2 %v3835_v24 }
 0x244   : > { %v1344_v48 = vpop.f32.mrf.mxu0  ;;  %v1409_v50 = vpop.f32.mrf.mxu1 }
 0x245   : > { %v1533_v23 = vpop.f32.mrf.mxu3  ;;  %v1410_v57 = vadd.f32 %v1409_v50, %v1344_v48 }
 0x246   : > { %v1534_v41 = vadd.f32 %v1533_v23, %v1469_v34  ;;  %v1471_v8 = vpop.f32.mrf.mxu2 }
 0x247   : > { %1603 = vmatmul.f32.gmra.mxu0 %v3836_v22  ;;  %1668 = vmatmul.f32.gmra.mxu1 %v3837_v12  ;;  %v1472_v9 = vadd.f32 %v1471_v8, %v1407_v10 }
 0x248   : > { %v1934_v21 = vadd.f32 %v3412_v33, %v1534_v41 }
 0x24a   : > { %1966 = vst [vmem:[%s3421_s3 + $0xc0] sm:$0xff] %v1934_v21  ;;  %1795 = vmatmul.f32.gmra.mxu3 %v3838_v28 }
 0x24b   : > { %1733 = vmatmul.f32.gmra.mxu2 %v3839_v55 }
 0x24c   : > { %v1347_v25 = vpop.f32.mrf.mxu0  ;;  %v1412_v60 = vpop.f32.mrf.mxu1 }
 0x24d   : > { %v1536_v42 = vpop.f32.mrf.mxu3  ;;  %v1413_v4 = vadd.f32 %v1412_v60, %v1347_v25 }
 0x24e   : > { %v1537_v0 = vadd.f32 %v1536_v42, %v1472_v9  ;;  %v1474_v59 = vpop.f32.mrf.mxu2 }
 0x24f   : > { %1606 = vmatmul.f32.gmra.mxu0 %v3840_v11  ;;  %1671 = vmatmul.f32.gmra.mxu1 %v3841_v35  ;;  %v1475_v52 = vadd.f32 %v1474_v59, %v1410_v57 }
 0x250   : > { %v1936_v37 = vadd.f32 %v3412_v33, %v1537_v0 }
 0x252   : > { %1968 = vst [vmem:[%s3421_s3 + $0xd0] sm:$0xff] %v1936_v37  ;;  %1798 = vmatmul.f32.gmra.mxu3 %v3843_v18 }
 0x253   : > { %1736 = vmatmul.f32.gmra.mxu2 %v3845_v29 }
 0x254   : > { %v1562_v46 = vpop.f32.mrf.mxu0  ;;  %v1627_v32 = vpop.f32.mrf.mxu1 }
 0x255   : > { %v1539_v17 = vpop.f32.mrf.mxu3  ;;  %v1628_v7 = vadd.f32 %v1627_v32, %v1562_v46 }
 0x256   : > { %v1540_v14 = vadd.f32 %v1539_v17, %v1475_v52  ;;  %v1477_v45 = vpop.f32.mrf.mxu2 }
 0x257   : > { %v1478_v39 = vadd.f32 %v1477_v45, %v1413_v4 }
 0x258   : > { %v1938_v1 = vadd.f32 %v3412_v33, %v1540_v14 }
 0x25a   : > { %1970 = vst [vmem:[%s3421_s3 + $0xe0] sm:$0xff] %v1938_v1  ;;  %1801 = vmatmul.f32.gmra.mxu3 %v3847_v36 }
 0x25c   : > { %v1565_v31 = vpop.f32.mrf.mxu0  ;;  %v1630_v61 = vpop.f32.mrf.mxu1 }
 0x25d   : > { %v1542_v26 = vpop.f32.mrf.mxu3  ;;  %v1631_v16 = vadd.f32 %v1630_v61, %v1565_v31 }
 0x25e   : > { %v1543_v30 = vadd.f32 %v1542_v26, %v1478_v39  ;;  %v1692_v58 = vpop.f32.mrf.mxu2 }
 0x25f   : > { %v1693_v63 = vadd.f32 %v1692_v58, %v1628_v7 }
 0x260   : > { %v1940_v13 = vadd.f32 %v3412_v33, %v1543_v30 }
 0x262   : > { %1972 = vst [vmem:[%s3421_s3 + $0xf0] sm:$0xff] %v1940_v13 }
 0x264   : > { %v1568_v40 = vpop.f32.mrf.mxu0  ;;  %v1633_v49 = vpop.f32.mrf.mxu1 }
 0x265   : > { %v1757_v38 = vpop.f32.mrf.mxu3  ;;  %v1634_v54 = vadd.f32 %v1633_v49, %v1568_v40 }
 0x266   : > { %v1758_v43 = vadd.f32 %v1757_v38, %v1693_v63  ;;  %v1695_v44 = vpop.f32.mrf.mxu2 }
 0x267   : > { %v1696_v3 = vadd.f32 %v1695_v44, %v1631_v16 }
 0x268   : > { %v1911_v51 = vadd.f32 %v3565_v62, %v1758_v43 }
 0x26a   : > { %1943 = vst [vmem:[%s3421_s3 + $0x8] sm:$0xff] %v1911_v51 }
 0x26c   : > { %v1571_v19 = vpop.f32.mrf.mxu0  ;;  %v1636_v33 = vpop.f32.mrf.mxu1 }
 0x26d   : > { %v1760_v5 = vpop.f32.mrf.mxu3  ;;  %v1637_v41 = vadd.f32 %v1636_v33, %v1571_v19 }
 0x26e   : > { %v1761_v15 = vadd.f32 %v1760_v5, %v1696_v3  ;;  %v1698_v53 = vpop.f32.mrf.mxu2 }
 0x26f   : > { %v1699_v47 = vadd.f32 %v1698_v53, %v1634_v54 }
 0x270   : > { %v1913_v6 = vadd.f32 %v3565_v62, %v1761_v15 }
 0x272   : > { %1945 = vst [vmem:[%s3421_s3 + $0x18] sm:$0xff] %v1913_v6 }
 0x274   : > { %v1574_v27 = vpop.f32.mrf.mxu0  ;;  %v1639_v24 = vpop.f32.mrf.mxu1 }
 0x275   : > { %v1763_v34 = vpop.f32.mrf.mxu3  ;;  %v1640_v9 = vadd.f32 %v1639_v24, %v1574_v27 }
 0x276   : > { %v1764_v48 = vadd.f32 %v1763_v34, %v1699_v47  ;;  %v1701_v50 = vpop.f32.mrf.mxu2 }
 0x277   : > { %v1702_v8 = vadd.f32 %v1701_v50, %v1637_v41 }
 0x278   : > { %v1915_v23 = vadd.f32 %v3565_v62, %v1764_v48 }
 0x27a   : > { %1947 = vst [vmem:[%s3421_s3 + $0x28] sm:$0xff] %v1915_v23 }
 0x27c   : > { %v1577_v22 = vpop.f32.mrf.mxu0  ;;  %v1642_v12 = vpop.f32.mrf.mxu1 }
 0x27d   : > { %v1766_v21 = vpop.f32.mrf.mxu3  ;;  %v1643_v37 = vadd.f32 %v1642_v12, %v1577_v22 }
 0x27e   : > { %v1767_v10 = vadd.f32 %v1766_v21, %v1702_v8  ;;  %v1704_v28 = vpop.f32.mrf.mxu2 }
 0x27f   : > { %v1705_v25 = vadd.f32 %v1704_v28, %v1640_v9 }
 0x280   : > { %v1917_v55 = vadd.f32 %v3565_v62, %v1767_v10 }
 0x282   : > { %1949 = vst [vmem:[%s3421_s3 + $0x38] sm:$0xff] %v1917_v55 }
 0x284   : > { %v1580_v60 = vpop.f32.mrf.mxu0  ;;  %v1645_v42 = vpop.f32.mrf.mxu1 }
 0x285   : > { %v1769_v0 = vpop.f32.mrf.mxu3  ;;  %v1646_v32 = vadd.f32 %v1645_v42, %v1580_v60 }
 0x286   : > { %v1770_v59 = vadd.f32 %v1769_v0, %v1705_v25  ;;  %v1707_v11 = vpop.f32.mrf.mxu2 }
 0x287   : > { %v1708_v57 = vadd.f32 %v1707_v11, %v1643_v37 }
 0x288   : > { %v1919_v35 = vadd.f32 %v3565_v62, %v1770_v59 }
 0x28a   : > { %1951 = vst [vmem:[%s3421_s3 + $0x48] sm:$0xff] %v1919_v35 }
 0x28c   : > { %v1583_v56 = vpop.f32.mrf.mxu0  ;;  %v1648_v18 = vpop.f32.mrf.mxu1 }
 0x28d   : > { %v1772_v20 = vpop.f32.mrf.mxu3  ;;  %v1649_v39 = vadd.f32 %v1648_v18, %v1583_v56 }
 0x28e   : > { %v1773_v29 = vadd.f32 %v1772_v20, %v1708_v57  ;;  %v1710_v52 = vpop.f32.mrf.mxu2 }
 0x28f   : > { %v1711_v17 = vadd.f32 %v1710_v52, %v1646_v32 }
 0x290   : > { %v1921_v46 = vadd.f32 %v3565_v62, %v1773_v29 }
 0x292   : > { %1953 = vst [vmem:[%s3421_s3 + $0x58] sm:$0xff] %v1921_v46 }
 0x294   : > { %v1586_v14 = vpop.f32.mrf.mxu0  ;;  %v1651_v45 = vpop.f32.mrf.mxu1 }
 0x295   : > { %v1775_v1 = vpop.f32.mrf.mxu3  ;;  %v1652_v63 = vadd.f32 %v1651_v45, %v1586_v14 }
 0x296   : > { %v1776_v4 = vadd.f32 %v1775_v1, %v1711_v17  ;;  %v1713_v2 = vpop.f32.mrf.mxu2 }
 0x297   : > { %v1714_v31 = vadd.f32 %v1713_v2, %v1649_v39 }
 0x298   : > { %v1923_v36 = vadd.f32 %v3565_v62, %v1776_v4 }
 0x29a   : > { %1955 = vst [vmem:[%s3421_s3 + $0x68] sm:$0xff] %v1923_v36 }
 0x29c   : > { %v1589_v61 = vpop.f32.mrf.mxu0  ;;  %v1654_v26 = vpop.f32.mrf.mxu1 }
 0x29d   : > { %v1778_v30 = vpop.f32.mrf.mxu3  ;;  %v1655_v3 = vadd.f32 %v1654_v26, %v1589_v61 }
 0x29e   : > { %v1779_v58 = vadd.f32 %v1778_v30, %v1714_v31  ;;  %v1716_v13 = vpop.f32.mrf.mxu2 }
 0x29f   : > { %v1717_v40 = vadd.f32 %v1716_v13, %v1652_v63 }
 0x2a0   : > { %v1925_v7 = vadd.f32 %v3565_v62, %v1779_v58 }
 0x2a2   : > { %1957 = vst [vmem:[%s3421_s3 + $0x78] sm:$0xff] %v1925_v7 }
 0x2a4   : > { %v1592_v49 = vpop.f32.mrf.mxu0  ;;  %v1657_v38 = vpop.f32.mrf.mxu1 }
 0x2a5   : > { %v1781_v43 = vpop.f32.mrf.mxu3  ;;  %v1658_v47 = vadd.f32 %v1657_v38, %v1592_v49 }
 0x2a6   : > { %v1782_v44 = vadd.f32 %v1781_v43, %v1717_v40  ;;  %v1719_v51 = vpop.f32.mrf.mxu2 }
 0x2a7   : > { %v1720_v19 = vadd.f32 %v1719_v51, %v1655_v3 }
 0x2a8   : > { %v1927_v16 = vadd.f32 %v3565_v62, %v1782_v44 }
 0x2aa   : > { %1959 = vst [vmem:[%s3421_s3 + $0x88] sm:$0xff] %v1927_v16 }
 0x2ac   : > { %v1595_v5 = vpop.f32.mrf.mxu0  ;;  %v1660_v6 = vpop.f32.mrf.mxu1 }
 0x2ad   : > { %v1784_v33 = vpop.f32.mrf.mxu3  ;;  %v1661_v8 = vadd.f32 %v1660_v6, %v1595_v5 }
 0x2ae   : > { %v1785_v15 = vadd.f32 %v1784_v33, %v1720_v19  ;;  %v1722_v53 = vpop.f32.mrf.mxu2 }
 0x2af   : > { %v1723_v27 = vadd.f32 %v1722_v53, %v1658_v47 }
 0x2b0   : > { %v1929_v54 = vadd.f32 %v3565_v62, %v1785_v15 }
 0x2b2   : > { %1961 = vst [vmem:[%s3421_s3 + $0x98] sm:$0xff] %v1929_v54 }
 0x2b4   : > { %v1598_v50 = vpop.f32.mrf.mxu0  ;;  %v1663_v41 = vpop.f32.mrf.mxu1 }
 0x2b5   : > { %v1787_v24 = vpop.f32.mrf.mxu3  ;;  %v1664_v55 = vadd.f32 %v1663_v41, %v1598_v50 }
 0x2b6   : > { %v1788_v34 = vadd.f32 %v1787_v24, %v1723_v27  ;;  %v1725_v48 = vpop.f32.mrf.mxu2 }
 0x2b7   : > { %v1726_v22 = vadd.f32 %v1725_v48, %v1661_v8 }
 0x2b8   : > { %v1931_v23 = vadd.f32 %v3565_v62, %v1788_v34 }
 0x2ba   : > { %1963 = vst [vmem:[%s3421_s3 + $0xa8] sm:$0xff] %v1931_v23 }
 0x2bc   : > { %v1601_v9 = vpop.f32.mrf.mxu0  ;;  %v1666_v25 = vpop.f32.mrf.mxu1 }
 0x2bd   : > { %v1790_v12 = vpop.f32.mrf.mxu3  ;;  %v1667_v35 = vadd.f32 %v1666_v25, %v1601_v9 }
 0x2be   : > { %v1791_v21 = vadd.f32 %v1790_v12, %v1726_v22  ;;  %v1728_v10 = vpop.f32.mrf.mxu2 }
 0x2bf   : > { %v1729_v60 = vadd.f32 %v1728_v10, %v1664_v55 }
 0x2c0   : > { %v1933_v28 = vadd.f32 %v3565_v62, %v1791_v21 }
 0x2c2   : > { %1965 = vst [vmem:[%s3421_s3 + $0xb8] sm:$0xff] %v1933_v28 }
 0x2c4   : > { %v1604_v37 = vpop.f32.mrf.mxu0  ;;  %v1669_v56 = vpop.f32.mrf.mxu1 }
 0x2c5   : > { %v1793_v42 = vpop.f32.mrf.mxu3  ;;  %v1670_v46 = vadd.f32 %v1669_v56, %v1604_v37 }
 0x2c6   : > { %v1794_v0 = vadd.f32 %v1793_v42, %v1729_v60  ;;  %v1731_v59 = vpop.f32.mrf.mxu2 }
 0x2c7   : > { %v1732_v57 = vadd.f32 %v1731_v59, %v1667_v35 }
 0x2c8   : > { %v1935_v11 = vadd.f32 %v3565_v62, %v1794_v0 }
 0x2ca   : > { %1967 = vst [vmem:[%s3421_s3 + $0xc8] sm:$0xff] %v1935_v11 }
 0x2cc   : > { %v1607_v45 = vpop.f32.mrf.mxu0  ;;  %v1672_v1 = vpop.f32.mrf.mxu1 }
 0x2cd   : > { %v1796_v18 = vpop.f32.mrf.mxu3  ;;  %v1673_v36 = vadd.f32 %v1672_v1, %v1607_v45 }
 0x2ce   : > { %v1797_v20 = vadd.f32 %v1796_v18, %v1732_v57  ;;  %v1734_v29 = vpop.f32.mrf.mxu2 }
 0x2cf   : > { %v1735_v32 = vadd.f32 %v1734_v29, %v1670_v46 }
 0x2d0   : > { %v1937_v52 = vadd.f32 %v3565_v62, %v1797_v20 }
 0x2d2   : > { %1969 = vst [vmem:[%s3421_s3 + $0xd8] sm:$0xff] %v1937_v52 }
 0x2d5   : > { %v1799_v17 = vpop.f32.mrf.mxu3 }
 0x2d6   : > { %v1800_v14 = vadd.f32 %v1799_v17, %v1735_v32  ;;  %v1737_v2 = vpop.f32.mrf.mxu2 }
 0x2d7   : > { %v1738_v39 = vadd.f32 %v1737_v2, %v1673_v36 }
 0x2d8   : > { %v1939_v4 = vadd.f32 %v3565_v62, %v1800_v14 }
 0x2da   : > { %1971 = vst [vmem:[%s3421_s3 + $0xe8] sm:$0xff] %v1939_v4 }
 0x2dd   : > { %v1802_v31 = vpop.f32.mrf.mxu3 }
 0x2de   : > { %v1803_v61 = vadd.f32 %v1802_v31, %v1738_v39 }
 0x2e0   : > { %v1941_v26 = vadd.f32 %v3565_v62, %v1803_v61 }
 0x2e2   : > { %1973 = vst [vmem:[%s3421_s3 + $0xf8] sm:$0xff] %v1941_v26 }
 0x2e3   : > { %2380 = shalt.err (!%p2377_p12)
}
 0x2e4   : > { %s2452_s10 = smov 256   ;;  %s2453_s11 = smov 16  }
 0x2e5   : > { %2148 = dma.vmem_to_hbm [thread:$0]  (%p2575_p0), %s1989_s7, 4096, %s1991_s16, %s1975_s21, %s2452_s10, %s2452_s10, %s2453_s11  }
 0x2e6 PF: > { %p2175_p13 = scmp.ge.s32.totalorder %s2443_s23, 2  ;;  %s2005_s1 = sand.u32 1, %s2423_s18  }
 0x2e7   : > { %s2006_s2 = scalar_lea.sflag [#allocation5], %s2005_s1 }
 0x2e8   : > { %p2165_p3 = pnand %p2175_p13, %p2533_p6 }
 0x2ea   : > { %p2166_p5 = pneg %p2165_p3 }
 0x2ec   : > { %2418 = dma.done.wait (%p2166_p5), %s2006_s2, 4096  }
 0x2ed   : > { %2420 = vsyncadd (%p2166_p5), %s2006_s2, 4294963200  ;;  %s23_s23 = sadd.s32 1, %s2443_s23   ;;  %s3848_s18 = smov %s2427_s19 }
 0x2ee   : > { %p20_p7 = scmp.ge.s32.totalorder %s23_s23, 10   ;;  %s3849_s19 = smov %s2431_s20 }
 0x2ef   : > { %s3850_s20 = smov %s2591_s27  ;;  %s3851_s21 = smov %s2439_s22 }
 0x2f0   : > { %s3852_s22 = smov %s3854_s15  ;;  %22 = sbr.rel (!%p20_p7) target bundleno = 12 (0xc), region = 108 }
 0x2f5   :  { %2012 = vsyncpa [#allocation4], 1 }
 0x2f6   :  { %2014 = vsyncpa [#allocation4 + $0x1], 1 }
 0x2f7   :  { %2015 = vsyncpa [#allocation7], 1 }
 0x2f8   :  { %2016 = vsyncpa [#allocation10], 1 }
 0x2f9   :  { %2017 = vsyncpa [#allocation5], 1 }
 0x2fa   :  { %2019 = vsyncpa [#allocation5 + $0x1], 1 }

</bundles_post_ra>
